<compile_context>
chip_gen: v7x
topology: tpu7x:2x2x1
jax: 0.10.0
libtpu: 0.0.40
codegen_flags: <defaults>
</compile_context>

<pallas_src>
import jax
import jax.numpy as jnp
from jax import lax
from jax.experimental import pallas as pl
from jax.experimental.pallas import tpu as pltpu


# (heads, out_channels, concat, relu_after) for conv1..conv6 of the PyTorch module.
LAYER_CONFIGS = [
    (8, 40, True, True),    # conv1: 20  -> 40 * 8 heads (concat) = 320
    (1, 100, True, True),   # conv2: 320 -> 100
    (1, 80, True, True),    # conv3: 100 -> 80
    (1, 40, True, True),    # conv4: 80  -> 40
    (1, 20, True, True),    # conv5: 40  -> 20
    (1, 3, False, False),   # conv6: 20  -> 3   (mean over heads, no relu)
]

HEAD_PAD = 128  # pad per-head channels to one full lane tile when heads > 1


def _gat_layer(h, adj, w, a_src, a_dst, bias, *, heads, cpad, concat, relu):
    """One GATConv layer on values resident in VMEM/vregs.

    h      : [N, Fin]            node features (padded layout if previous layer padded)
    adj    : [N, N]              adj[i, j] = 1 iff edge j -> i (self-loops included)
    w      : [Fin, heads*cpad]   projection, head h in lane block [h*cpad, h*cpad+C)
    a_src  : [heads*cpad, heads] block-diagonal attention (source) vectors
    a_dst  : [heads*cpad, heads] block-diagonal attention (destination) vectors
    bias   : [1, heads*cpad] (concat) or [1, C] (mean)
    """
    # Projection for all heads at once (MXU).
    xp = jnp.dot(h, w, preferred_element_type=jnp.float32)            # [N, H*cpad]

    # All-head attention coefficients with two matmuls (no M=1 pushes per head).
    alpha_dst = jnp.dot(xp, a_dst, preferred_element_type=jnp.float32)      # [N, H]
    alpha_src_t = lax.dot_general(a_src, xp, (((0,), (1,)), ((), ())),
                                  preferred_element_type=jnp.float32)       # [H, N]

    head_outs = []
    acc = None
    for hd in range(heads):
        # scores[i, j] = LeakyReLU(alpha_dst[i] + alpha_src[j], slope 0.2)
        s = alpha_dst[:, hd:hd + 1] + alpha_src_t[hd:hd + 1, :]        # [N, N]
        s = jnp.where(s > 0, s, 0.2 * s)

        # Masked softmax over incoming edges j (single masking pass; exp of the
        # -1e30 sentinel underflows to exactly 0 in f32 after max-subtraction).
        s = jnp.where(adj > 0, s, -1e30)
        s = s - jnp.max(s, axis=1, keepdims=True)
        p = jnp.exp(s)
        attn = p / jnp.sum(p, axis=1, keepdims=True)                   # [N, N]

        # Aggregate; xp slice is 128-lane aligned when heads > 1 (cpad = 128).
        out_h = jnp.dot(attn, xp[:, hd * cpad:(hd + 1) * cpad],
                        preferred_element_type=jnp.float32)            # [N, cpad]
        if concat:
            head_outs.append(out_h)
        else:
            acc = out_h if acc is None else acc + out_h

    if concat:
        out = head_outs[0] if heads == 1 else jnp.concatenate(head_outs, axis=1)
    else:
        out = acc / float(heads)

    out = out + bias
    if relu:
        out = jnp.maximum(out, 0.0)
    return out


def fused_gat_kernel(*refs):
    """All 6 GAT layers in one kernel; only the final [N, 3] result is stored."""
    x_ref, adj_ref = refs[0], refs[1]
    o_ref = refs[-1]
    param_refs = refs[2:-1]

    adj = adj_ref[...]
    h = x_ref[...]
    for li, (heads, oc, concat, relu) in enumerate(LAYER_CONFIGS):
        w_r, as_r, ad_r, b_r = param_refs[4 * li: 4 * li + 4]
        cpad = HEAD_PAD if heads > 1 else oc
        h = _gat_layer(h, adj, w_r[...], as_r[...], ad_r[...], b_r[...],
                       heads=heads, cpad=cpad, concat=concat, relu=relu)
    o_ref[...] = h


# ----------------------------- parameters ---------------------------------- #

def init_gat_params(key, in_c, out_c, heads, concat):
    """Logical (unpadded) GATConv parameters."""
    k1, k2, k3 = jax.random.split(key, 3)
    w = jax.random.normal(k1, (in_c, heads * out_c), jnp.float32) / jnp.sqrt(in_c)
    att_src = jax.random.normal(k2, (heads, out_c), jnp.float32) / jnp.sqrt(out_c)
    att_dst = jax.random.normal(k3, (heads, out_c), jnp.float32) / jnp.sqrt(out_c)
    bias_dim = heads * out_c if concat else out_c
    bias = jnp.zeros((1, bias_dim), jnp.float32)
    return w, att_src, att_dst, bias


def init_encoder_params(key, in_channels):
    params = []
    fin = in_channels
    for heads, oc, concat, _ in LAYER_CONFIGS:
        key, sub = jax.random.split(key)
        params.append(init_gat_params(sub, fin, oc, heads, concat))
        fin = heads * oc if concat else oc
    return params


def pack_params(params):
    """Re-layout logical params into the lane-aligned layout the kernel expects."""
    packed = []
    prev = None  # (heads, out_c, cpad) of previous (concat) layer, or None
    for (w, a_s, a_d, bias), (heads, oc, concat, _) in zip(params, LAYER_CONFIGS):
        cpad = HEAD_PAD if heads > 1 else oc
        cols = heads * oc

        # Pad input rows if previous layer's output used the padded head layout.
        if prev is not None:
            ph, pc, pcp = prev
            if pcp != pc:
                w_r = w.reshape(ph, pc, cols)
                w = (jnp.zeros((ph, pcp, cols), jnp.float32)
                     .at[:, :pc, :].set(w_r).reshape(ph * pcp, cols))
        in_rows = w.shape[0]

        # Pad output columns: head h occupies lane block [h*cpad, h*cpad + oc).
        if cpad != oc:
            w_r = w.reshape(in_rows, heads, oc)
            w_p = (jnp.zeros((in_rows, heads, cpad), jnp.float32)
                   .at[:, :, :oc].set(w_r).reshape(in_rows, heads * cpad))
        else:
            w_p = w

        # Block-diagonal attention matrices [heads*cpad, heads].
        A_src = jnp.zeros((heads, cpad, heads), jnp.float32)
        A_dst = jnp.zeros((heads, cpad, heads), jnp.float32)
        for h in range(heads):
            A_src = A_src.at[h, :oc, h].set(a_s[h])
            A_dst = A_dst.at[h, :oc, h].set(a_d[h])
        A_src = A_src.reshape(heads * cpad, heads)
        A_dst = A_dst.reshape(heads * cpad, heads)

        # Bias in the same (padded) layout as the layer output.
        if concat and cpad != oc:
            b_r = bias.reshape(1, heads, oc)
            bias_p = (jnp.zeros((1, heads, cpad), jnp.float32)
                      .at[:, :, :oc].set(b_r).reshape(1, heads * cpad))
        else:
            bias_p = bias

        packed.append((w_p, A_src, A_dst, bias_p))
        prev = (heads, oc, cpad) if concat else None
    return packed


# ------------------------------- wrapper ------------------------------------ #

def gcn_encoder(x, edge_index, packed_params):
    n = x.shape[0]
    src, dst = edge_index[0], edge_index[1]
    # Dense adjacency mask: adj[dst, src] = 1, plus self-loops (PyG's add_self_loops).
    adj = jnp.zeros((n, n), jnp.float32).at[dst, src].set(1.0)
    adj = adj.at[jnp.arange(n), jnp.arange(n)].set(1.0)

    flat_inputs = [x.astype(jnp.float32), adj]
    for p in packed_params:
        flat_inputs.extend(p)

    vmem = pl.BlockSpec(memory_space=pltpu.MemorySpace.VMEM)
    out_dim = LAYER_CONFIGS[-1][1]
    return pl.pallas_call(
        fused_gat_kernel,
        out_shape=jax.ShapeDtypeStruct((n, out_dim), jnp.float32),
        in_specs=[vmem] * len(flat_inputs),
        out_specs=vmem,
    )(*flat_inputs)


if __name__ == "__main__":
    key = jax.random.PRNGKey(0)
    k_x, k_e1, k_e2, k_p = jax.random.split(key, 4)

    num_nodes = 16
    in_channels = 20
    num_edges = 40

    x = jax.random.normal(k_x, (num_nodes, in_channels), jnp.float32)
    edge_index = jnp.stack([
        jax.random.randint(k_e1, (num_edges,), 0, num_nodes),
        jax.random.randint(k_e2, (num_edges,), 0, num_nodes),
    ], axis=0).astype(jnp.int32)

    params = init_encoder_params(k_p, in_channels)
    packed = pack_params(params)

    out = gcn_encoder(x, edge_index, packed)
    out = jax.block_until_ready(out)
    assert out.shape == (num_nodes, 3), out.shape
    assert jnp.all(jnp.isfinite(out))
    print("KERNEL_OK")
</pallas_src>

<mosaic_0001>
module attributes {stable_mosaic.version = 11 : i64} {
  func.func @fused_gat_kernel(%arg0: memref<16x20xf32, #tpu.memory_space<vmem>>, %arg1: memref<16x16xf32, #tpu.memory_space<vmem>>, %arg2: memref<20x1024xf32, #tpu.memory_space<vmem>>, %arg3: memref<1024x8xf32, #tpu.memory_space<vmem>>, %arg4: memref<1024x8xf32, #tpu.memory_space<vmem>>, %arg5: memref<1x1024xf32, #tpu.memory_space<vmem>>, %arg6: memref<1024x100xf32, #tpu.memory_space<vmem>>, %arg7: memref<100x1xf32, #tpu.memory_space<vmem>>, %arg8: memref<100x1xf32, #tpu.memory_space<vmem>>, %arg9: memref<1x100xf32, #tpu.memory_space<vmem>>, %arg10: memref<100x80xf32, #tpu.memory_space<vmem>>, %arg11: memref<80x1xf32, #tpu.memory_space<vmem>>, %arg12: memref<80x1xf32, #tpu.memory_space<vmem>>, %arg13: memref<1x80xf32, #tpu.memory_space<vmem>>, %arg14: memref<80x40xf32, #tpu.memory_space<vmem>>, %arg15: memref<40x1xf32, #tpu.memory_space<vmem>>, %arg16: memref<40x1xf32, #tpu.memory_space<vmem>>, %arg17: memref<1x40xf32, #tpu.memory_space<vmem>>, %arg18: memref<40x20xf32, #tpu.memory_space<vmem>>, %arg19: memref<20x1xf32, #tpu.memory_space<vmem>>, %arg20: memref<20x1xf32, #tpu.memory_space<vmem>>, %arg21: memref<1x20xf32, #tpu.memory_space<vmem>>, %arg22: memref<20x3xf32, #tpu.memory_space<vmem>>, %arg23: memref<3x1xf32, #tpu.memory_space<vmem>>, %arg24: memref<3x1xf32, #tpu.memory_space<vmem>>, %arg25: memref<1x3xf32, #tpu.memory_space<vmem>>, %arg26: memref<16x3xf32, #tpu.memory_space<vmem>>) attributes {dimension_semantics = [], scalar_prefetch = 0 : i64, scratch_operands = 0 : i64, tpu.core_type = #tpu.core_type<tc>} {
    %c0 = arith.constant 0 : index
    %c0_0 = arith.constant 0 : index
    %0 = vector.load %arg1[%c0, %c0_0] : memref<16x16xf32, #tpu.memory_space<vmem>>, vector<16x16xf32>
    %c0_1 = arith.constant 0 : index
    %c0_2 = arith.constant 0 : index
    %1 = vector.load %arg0[%c0_1, %c0_2] : memref<16x20xf32, #tpu.memory_space<vmem>>, vector<16x20xf32>
    %c0_3 = arith.constant 0 : index
    %c0_4 = arith.constant 0 : index
    %2 = vector.load %arg2[%c0_3, %c0_4] : memref<20x1024xf32, #tpu.memory_space<vmem>>, vector<20x1024xf32>
    %c0_5 = arith.constant 0 : index
    %c0_6 = arith.constant 0 : index
    %3 = vector.load %arg3[%c0_5, %c0_6] : memref<1024x8xf32, #tpu.memory_space<vmem>>, vector<1024x8xf32>
    %c0_7 = arith.constant 0 : index
    %c0_8 = arith.constant 0 : index
    %4 = vector.load %arg4[%c0_7, %c0_8] : memref<1024x8xf32, #tpu.memory_space<vmem>>, vector<1024x8xf32>
    %c0_9 = arith.constant 0 : index
    %c0_10 = arith.constant 0 : index
    %5 = vector.load %arg5[%c0_9, %c0_10] : memref<1x1024xf32, #tpu.memory_space<vmem>>, vector<1x1024xf32>
    %cst = arith.constant dense<0.000000e+00> : vector<16x1024xf32>
    %6 = tpu.matmul %1, %2, %cst {dimension_numbers = #tpu.dot_dimension_numbers<[1], [0], [0], [1], [0, 0, 1, 1], [], []>} : vector<16x20xf32>, vector<20x1024xf32>, vector<16x1024xf32> -> vector<16x1024xf32>
    %cst_11 = arith.constant dense<0.000000e+00> : vector<16x8xf32>
    %7 = tpu.matmul %6, %4, %cst_11 {dimension_numbers = #tpu.dot_dimension_numbers<[1], [0], [0], [1], [0, 0, 1, 1], [], []>} : vector<16x1024xf32>, vector<1024x8xf32>, vector<16x8xf32> -> vector<16x8xf32>
    %cst_12 = arith.constant dense<0.000000e+00> : vector<8x16xf32>
    %8 = tpu.matmul %3, %6, %cst_12 {dimension_numbers = #tpu.dot_dimension_numbers<[0], [1], [1], [0], [0, 1, 1, 0], [], []>} : vector<1024x8xf32>, vector<16x1024xf32>, vector<8x16xf32> -> vector<8x16xf32>
    %9 = vector.extract_strided_slice %7 {offsets = [0, 0], sizes = [16, 1], strides = [1, 1]} : vector<16x8xf32> to vector<16x1xf32>
    %10 = vector.extract_strided_slice %8 {offsets = [0, 0], sizes = [1, 16], strides = [1, 1]} : vector<8x16xf32> to vector<1x16xf32>
    %11 = vector.broadcast %9 : vector<16x1xf32> to vector<16x16xf32>
    %12 = vector.broadcast %10 : vector<1x16xf32> to vector<16x16xf32>
    %13 = arith.addf %11, %12 : vector<16x16xf32>
    %cst_13 = arith.constant 0.000000e+00 : f32
    %14 = vector.broadcast %cst_13 : f32 to vector<16x16xf32>
    %15 = arith.cmpf ogt, %13, %14 : vector<16x16xf32>
    %cst_14 = arith.constant 2.000000e-01 : f32
    %16 = vector.broadcast %cst_14 : f32 to vector<16x16xf32>
    %17 = arith.mulf %16, %13 : vector<16x16xf32>
    %18 = arith.select %15, %13, %17 : vector<16x16xi1>, vector<16x16xf32>
    %cst_15 = arith.constant 0.000000e+00 : f32
    %19 = vector.broadcast %cst_15 : f32 to vector<16x16xf32>
    %20 = arith.cmpf ogt, %0, %19 : vector<16x16xf32>
    %cst_16 = arith.constant -1.000000e+30 : f32
    %21 = vector.broadcast %cst_16 : f32 to vector<16x16xf32>
    %22 = arith.select %20, %18, %21 : vector<16x16xi1>, vector<16x16xf32>
    %cst_17 = arith.constant dense<0xFF800000> : vector<16xf32>
    %23 = vector.multi_reduction <maximumf>, %22, %cst_17 [1] : vector<16x16xf32> to vector<16xf32>
    %24 = vector.shape_cast %23 : vector<16xf32> to vector<16x1xf32>
    %25 = vector.broadcast %24 : vector<16x1xf32> to vector<16x16xf32>
    %26 = arith.subf %22, %25 : vector<16x16xf32>
    %27 = math.exp %26 : vector<16x16xf32>
    %cst_18 = arith.constant dense<0.000000e+00> : vector<16xf32>
    %28 = vector.multi_reduction <add>, %27, %cst_18 [1] : vector<16x16xf32> to vector<16xf32>
    %29 = vector.shape_cast %28 : vector<16xf32> to vector<16x1xf32>
    %30 = vector.broadcast %29 : vector<16x1xf32> to vector<16x16xf32>
    %31 = arith.divf %27, %30 : vector<16x16xf32>
    %32 = vector.extract_strided_slice %6 {offsets = [0, 0], sizes = [16, 128], strides = [1, 1]} : vector<16x1024xf32> to vector<16x128xf32>
    %cst_19 = arith.constant dense<0.000000e+00> : vector<16x128xf32>
    %33 = tpu.matmul %31, %32, %cst_19 {dimension_numbers = #tpu.dot_dimension_numbers<[1], [0], [0], [1], [0, 0, 1, 1], [], []>} : vector<16x16xf32>, vector<16x128xf32>, vector<16x128xf32> -> vector<16x128xf32>
    %34 = vector.extract_strided_slice %7 {offsets = [0, 1], sizes = [16, 1], strides = [1, 1]} : vector<16x8xf32> to vector<16x1xf32>
    %35 = vector.extract_strided_slice %8 {offsets = [1, 0], sizes = [1, 16], strides = [1, 1]} : vector<8x16xf32> to vector<1x16xf32>
    %36 = vector.broadcast %34 : vector<16x1xf32> to vector<16x16xf32>
    %37 = vector.broadcast %35 : vector<1x16xf32> to vector<16x16xf32>
    %38 = arith.addf %36, %37 : vector<16x16xf32>
    %cst_20 = arith.constant 0.000000e+00 : f32
    %39 = vector.broadcast %cst_20 : f32 to vector<16x16xf32>
    %40 = arith.cmpf ogt, %38, %39 : vector<16x16xf32>
    %cst_21 = arith.constant 2.000000e-01 : f32
    %41 = vector.broadcast %cst_21 : f32 to vector<16x16xf32>
    %42 = arith.mulf %41, %38 : vector<16x16xf32>
    %43 = arith.select %40, %38, %42 : vector<16x16xi1>, vector<16x16xf32>
    %cst_22 = arith.constant 0.000000e+00 : f32
    %44 = vector.broadcast %cst_22 : f32 to vector<16x16xf32>
    %45 = arith.cmpf ogt, %0, %44 : vector<16x16xf32>
    %cst_23 = arith.constant -1.000000e+30 : f32
    %46 = vector.broadcast %cst_23 : f32 to vector<16x16xf32>
    %47 = arith.select %45, %43, %46 : vector<16x16xi1>, vector<16x16xf32>
    %cst_24 = arith.constant dense<0xFF800000> : vector<16xf32>
    %48 = vector.multi_reduction <maximumf>, %47, %cst_24 [1] : vector<16x16xf32> to vector<16xf32>
    %49 = vector.shape_cast %48 : vector<16xf32> to vector<16x1xf32>
    %50 = vector.broadcast %49 : vector<16x1xf32> to vector<16x16xf32>
    %51 = arith.subf %47, %50 : vector<16x16xf32>
    %52 = math.exp %51 : vector<16x16xf32>
    %cst_25 = arith.constant dense<0.000000e+00> : vector<16xf32>
    %53 = vector.multi_reduction <add>, %52, %cst_25 [1] : vector<16x16xf32> to vector<16xf32>
    %54 = vector.shape_cast %53 : vector<16xf32> to vector<16x1xf32>
    %55 = vector.broadcast %54 : vector<16x1xf32> to vector<16x16xf32>
    %56 = arith.divf %52, %55 : vector<16x16xf32>
    %57 = vector.extract_strided_slice %6 {offsets = [0, 128], sizes = [16, 128], strides = [1, 1]} : vector<16x1024xf32> to vector<16x128xf32>
    %cst_26 = arith.constant dense<0.000000e+00> : vector<16x128xf32>
    %58 = tpu.matmul %56, %57, %cst_26 {dimension_numbers = #tpu.dot_dimension_numbers<[1], [0], [0], [1], [0, 0, 1, 1], [], []>} : vector<16x16xf32>, vector<16x128xf32>, vector<16x128xf32> -> vector<16x128xf32>
    %59 = vector.extract_strided_slice %7 {offsets = [0, 2], sizes = [16, 1], strides = [1, 1]} : vector<16x8xf32> to vector<16x1xf32>
    %60 = vector.extract_strided_slice %8 {offsets = [2, 0], sizes = [1, 16], strides = [1, 1]} : vector<8x16xf32> to vector<1x16xf32>
    %61 = vector.broadcast %59 : vector<16x1xf32> to vector<16x16xf32>
    %62 = vector.broadcast %60 : vector<1x16xf32> to vector<16x16xf32>
    %63 = arith.addf %61, %62 : vector<16x16xf32>
    %cst_27 = arith.constant 0.000000e+00 : f32
    %64 = vector.broadcast %cst_27 : f32 to vector<16x16xf32>
    %65 = arith.cmpf ogt, %63, %64 : vector<16x16xf32>
    %cst_28 = arith.constant 2.000000e-01 : f32
    %66 = vector.broadcast %cst_28 : f32 to vector<16x16xf32>
    %67 = arith.mulf %66, %63 : vector<16x16xf32>
    %68 = arith.select %65, %63, %67 : vector<16x16xi1>, vector<16x16xf32>
    %cst_29 = arith.constant 0.000000e+00 : f32
    %69 = vector.broadcast %cst_29 : f32 to vector<16x16xf32>
    %70 = arith.cmpf ogt, %0, %69 : vector<16x16xf32>
    %cst_30 = arith.constant -1.000000e+30 : f32
    %71 = vector.broadcast %cst_30 : f32 to vector<16x16xf32>
    %72 = arith.select %70, %68, %71 : vector<16x16xi1>, vector<16x16xf32>
    %cst_31 = arith.constant dense<0xFF800000> : vector<16xf32>
    %73 = vector.multi_reduction <maximumf>, %72, %cst_31 [1] : vector<16x16xf32> to vector<16xf32>
    %74 = vector.shape_cast %73 : vector<16xf32> to vector<16x1xf32>
    %75 = vector.broadcast %74 : vector<16x1xf32> to vector<16x16xf32>
    %76 = arith.subf %72, %75 : vector<16x16xf32>
    %77 = math.exp %76 : vector<16x16xf32>
    %cst_32 = arith.constant dense<0.000000e+00> : vector<16xf32>
    %78 = vector.multi_reduction <add>, %77, %cst_32 [1] : vector<16x16xf32> to vector<16xf32>
    %79 = vector.shape_cast %78 : vector<16xf32> to vector<16x1xf32>
    %80 = vector.broadcast %79 : vector<16x1xf32> to vector<16x16xf32>
    %81 = arith.divf %77, %80 : vector<16x16xf32>
    %82 = vector.extract_strided_slice %6 {offsets = [0, 256], sizes = [16, 128], strides = [1, 1]} : vector<16x1024xf32> to vector<16x128xf32>
    %cst_33 = arith.constant dense<0.000000e+00> : vector<16x128xf32>
    %83 = tpu.matmul %81, %82, %cst_33 {dimension_numbers = #tpu.dot_dimension_numbers<[1], [0], [0], [1], [0, 0, 1, 1], [], []>} : vector<16x16xf32>, vector<16x128xf32>, vector<16x128xf32> -> vector<16x128xf32>
    %84 = vector.extract_strided_slice %7 {offsets = [0, 3], sizes = [16, 1], strides = [1, 1]} : vector<16x8xf32> to vector<16x1xf32>
    %85 = vector.extract_strided_slice %8 {offsets = [3, 0], sizes = [1, 16], strides = [1, 1]} : vector<8x16xf32> to vector<1x16xf32>
    %86 = vector.broadcast %84 : vector<16x1xf32> to vector<16x16xf32>
    %87 = vector.broadcast %85 : vector<1x16xf32> to vector<16x16xf32>
    %88 = arith.addf %86, %87 : vector<16x16xf32>
    %cst_34 = arith.constant 0.000000e+00 : f32
    %89 = vector.broadcast %cst_34 : f32 to vector<16x16xf32>
    %90 = arith.cmpf ogt, %88, %89 : vector<16x16xf32>
    %cst_35 = arith.constant 2.000000e-01 : f32
    %91 = vector.broadcast %cst_35 : f32 to vector<16x16xf32>
    %92 = arith.mulf %91, %88 : vector<16x16xf32>
    %93 = arith.select %90, %88, %92 : vector<16x16xi1>, vector<16x16xf32>
    %cst_36 = arith.constant 0.000000e+00 : f32
    %94 = vector.broadcast %cst_36 : f32 to vector<16x16xf32>
    %95 = arith.cmpf ogt, %0, %94 : vector<16x16xf32>
    %cst_37 = arith.constant -1.000000e+30 : f32
    %96 = vector.broadcast %cst_37 : f32 to vector<16x16xf32>
    %97 = arith.select %95, %93, %96 : vector<16x16xi1>, vector<16x16xf32>
    %cst_38 = arith.constant dense<0xFF800000> : vector<16xf32>
    %98 = vector.multi_reduction <maximumf>, %97, %cst_38 [1] : vector<16x16xf32> to vector<16xf32>
    %99 = vector.shape_cast %98 : vector<16xf32> to vector<16x1xf32>
    %100 = vector.broadcast %99 : vector<16x1xf32> to vector<16x16xf32>
    %101 = arith.subf %97, %100 : vector<16x16xf32>
    %102 = math.exp %101 : vector<16x16xf32>
    %cst_39 = arith.constant dense<0.000000e+00> : vector<16xf32>
    %103 = vector.multi_reduction <add>, %102, %cst_39 [1] : vector<16x16xf32> to vector<16xf32>
    %104 = vector.shape_cast %103 : vector<16xf32> to vector<16x1xf32>
    %105 = vector.broadcast %104 : vector<16x1xf32> to vector<16x16xf32>
    %106 = arith.divf %102, %105 : vector<16x16xf32>
    %107 = vector.extract_strided_slice %6 {offsets = [0, 384], sizes = [16, 128], strides = [1, 1]} : vector<16x1024xf32> to vector<16x128xf32>
    %cst_40 = arith.constant dense<0.000000e+00> : vector<16x128xf32>
    %108 = tpu.matmul %106, %107, %cst_40 {dimension_numbers = #tpu.dot_dimension_numbers<[1], [0], [0], [1], [0, 0, 1, 1], [], []>} : vector<16x16xf32>, vector<16x128xf32>, vector<16x128xf32> -> vector<16x128xf32>
    %109 = vector.extract_strided_slice %7 {offsets = [0, 4], sizes = [16, 1], strides = [1, 1]} : vector<16x8xf32> to vector<16x1xf32>
    %110 = vector.extract_strided_slice %8 {offsets = [4, 0], sizes = [1, 16], strides = [1, 1]} : vector<8x16xf32> to vector<1x16xf32>
    %111 = vector.broadcast %109 : vector<16x1xf32> to vector<16x16xf32>
    %112 = vector.broadcast %110 : vector<1x16xf32> to vector<16x16xf32>
    %113 = arith.addf %111, %112 : vector<16x16xf32>
    %cst_41 = arith.constant 0.000000e+00 : f32
    %114 = vector.broadcast %cst_41 : f32 to vector<16x16xf32>
    %115 = arith.cmpf ogt, %113, %114 : vector<16x16xf32>
    %cst_42 = arith.constant 2.000000e-01 : f32
    %116 = vector.broadcast %cst_42 : f32 to vector<16x16xf32>
    %117 = arith.mulf %116, %113 : vector<16x16xf32>
    %118 = arith.select %115, %113, %117 : vector<16x16xi1>, vector<16x16xf32>
    %cst_43 = arith.constant 0.000000e+00 : f32
    %119 = vector.broadcast %cst_43 : f32 to vector<16x16xf32>
    %120 = arith.cmpf ogt, %0, %119 : vector<16x16xf32>
    %cst_44 = arith.constant -1.000000e+30 : f32
    %121 = vector.broadcast %cst_44 : f32 to vector<16x16xf32>
    %122 = arith.select %120, %118, %121 : vector<16x16xi1>, vector<16x16xf32>
    %cst_45 = arith.constant dense<0xFF800000> : vector<16xf32>
    %123 = vector.multi_reduction <maximumf>, %122, %cst_45 [1] : vector<16x16xf32> to vector<16xf32>
    %124 = vector.shape_cast %123 : vector<16xf32> to vector<16x1xf32>
    %125 = vector.broadcast %124 : vector<16x1xf32> to vector<16x16xf32>
    %126 = arith.subf %122, %125 : vector<16x16xf32>
    %127 = math.exp %126 : vector<16x16xf32>
    %cst_46 = arith.constant dense<0.000000e+00> : vector<16xf32>
    %128 = vector.multi_reduction <add>, %127, %cst_46 [1] : vector<16x16xf32> to vector<16xf32>
    %129 = vector.shape_cast %128 : vector<16xf32> to vector<16x1xf32>
    %130 = vector.broadcast %129 : vector<16x1xf32> to vector<16x16xf32>
    %131 = arith.divf %127, %130 : vector<16x16xf32>
    %132 = vector.extract_strided_slice %6 {offsets = [0, 512], sizes = [16, 128], strides = [1, 1]} : vector<16x1024xf32> to vector<16x128xf32>
    %cst_47 = arith.constant dense<0.000000e+00> : vector<16x128xf32>
    %133 = tpu.matmul %131, %132, %cst_47 {dimension_numbers = #tpu.dot_dimension_numbers<[1], [0], [0], [1], [0, 0, 1, 1], [], []>} : vector<16x16xf32>, vector<16x128xf32>, vector<16x128xf32> -> vector<16x128xf32>
    %134 = vector.extract_strided_slice %7 {offsets = [0, 5], sizes = [16, 1], strides = [1, 1]} : vector<16x8xf32> to vector<16x1xf32>
    %135 = vector.extract_strided_slice %8 {offsets = [5, 0], sizes = [1, 16], strides = [1, 1]} : vector<8x16xf32> to vector<1x16xf32>
    %136 = vector.broadcast %134 : vector<16x1xf32> to vector<16x16xf32>
    %137 = vector.broadcast %135 : vector<1x16xf32> to vector<16x16xf32>
    %138 = arith.addf %136, %137 : vector<16x16xf32>
    %cst_48 = arith.constant 0.000000e+00 : f32
    %139 = vector.broadcast %cst_48 : f32 to vector<16x16xf32>
    %140 = arith.cmpf ogt, %138, %139 : vector<16x16xf32>
    %cst_49 = arith.constant 2.000000e-01 : f32
    %141 = vector.broadcast %cst_49 : f32 to vector<16x16xf32>
    %142 = arith.mulf %141, %138 : vector<16x16xf32>
    %143 = arith.select %140, %138, %142 : vector<16x16xi1>, vector<16x16xf32>
    %cst_50 = arith.constant 0.000000e+00 : f32
    %144 = vector.broadcast %cst_50 : f32 to vector<16x16xf32>
    %145 = arith.cmpf ogt, %0, %144 : vector<16x16xf32>
    %cst_51 = arith.constant -1.000000e+30 : f32
    %146 = vector.broadcast %cst_51 : f32 to vector<16x16xf32>
    %147 = arith.select %145, %143, %146 : vector<16x16xi1>, vector<16x16xf32>
    %cst_52 = arith.constant dense<0xFF800000> : vector<16xf32>
    %148 = vector.multi_reduction <maximumf>, %147, %cst_52 [1] : vector<16x16xf32> to vector<16xf32>
    %149 = vector.shape_cast %148 : vector<16xf32> to vector<16x1xf32>
    %150 = vector.broadcast %149 : vector<16x1xf32> to vector<16x16xf32>
    %151 = arith.subf %147, %150 : vector<16x16xf32>
    %152 = math.exp %151 : vector<16x16xf32>
    %cst_53 = arith.constant dense<0.000000e+00> : vector<16xf32>
    %153 = vector.multi_reduction <add>, %152, %cst_53 [1] : vector<16x16xf32> to vector<16xf32>
    %154 = vector.shape_cast %153 : vector<16xf32> to vector<16x1xf32>
    %155 = vector.broadcast %154 : vector<16x1xf32> to vector<16x16xf32>
    %156 = arith.divf %152, %155 : vector<16x16xf32>
    %157 = vector.extract_strided_slice %6 {offsets = [0, 640], sizes = [16, 128], strides = [1, 1]} : vector<16x1024xf32> to vector<16x128xf32>
    %cst_54 = arith.constant dense<0.000000e+00> : vector<16x128xf32>
    %158 = tpu.matmul %156, %157, %cst_54 {dimension_numbers = #tpu.dot_dimension_numbers<[1], [0], [0], [1], [0, 0, 1, 1], [], []>} : vector<16x16xf32>, vector<16x128xf32>, vector<16x128xf32> -> vector<16x128xf32>
    %159 = vector.extract_strided_slice %7 {offsets = [0, 6], sizes = [16, 1], strides = [1, 1]} : vector<16x8xf32> to vector<16x1xf32>
    %160 = vector.extract_strided_slice %8 {offsets = [6, 0], sizes = [1, 16], strides = [1, 1]} : vector<8x16xf32> to vector<1x16xf32>
    %161 = vector.broadcast %159 : vector<16x1xf32> to vector<16x16xf32>
    %162 = vector.broadcast %160 : vector<1x16xf32> to vector<16x16xf32>
    %163 = arith.addf %161, %162 : vector<16x16xf32>
    %cst_55 = arith.constant 0.000000e+00 : f32
    %164 = vector.broadcast %cst_55 : f32 to vector<16x16xf32>
    %165 = arith.cmpf ogt, %163, %164 : vector<16x16xf32>
    %cst_56 = arith.constant 2.000000e-01 : f32
    %166 = vector.broadcast %cst_56 : f32 to vector<16x16xf32>
    %167 = arith.mulf %166, %163 : vector<16x16xf32>
    %168 = arith.select %165, %163, %167 : vector<16x16xi1>, vector<16x16xf32>
    %cst_57 = arith.constant 0.000000e+00 : f32
    %169 = vector.broadcast %cst_57 : f32 to vector<16x16xf32>
    %170 = arith.cmpf ogt, %0, %169 : vector<16x16xf32>
    %cst_58 = arith.constant -1.000000e+30 : f32
    %171 = vector.broadcast %cst_58 : f32 to vector<16x16xf32>
    %172 = arith.select %170, %168, %171 : vector<16x16xi1>, vector<16x16xf32>
    %cst_59 = arith.constant dense<0xFF800000> : vector<16xf32>
    %173 = vector.multi_reduction <maximumf>, %172, %cst_59 [1] : vector<16x16xf32> to vector<16xf32>
    %174 = vector.shape_cast %173 : vector<16xf32> to vector<16x1xf32>
    %175 = vector.broadcast %174 : vector<16x1xf32> to vector<16x16xf32>
    %176 = arith.subf %172, %175 : vector<16x16xf32>
    %177 = math.exp %176 : vector<16x16xf32>
    %cst_60 = arith.constant dense<0.000000e+00> : vector<16xf32>
    %178 = vector.multi_reduction <add>, %177, %cst_60 [1] : vector<16x16xf32> to vector<16xf32>
    %179 = vector.shape_cast %178 : vector<16xf32> to vector<16x1xf32>
    %180 = vector.broadcast %179 : vector<16x1xf32> to vector<16x16xf32>
    %181 = arith.divf %177, %180 : vector<16x16xf32>
    %182 = vector.extract_strided_slice %6 {offsets = [0, 768], sizes = [16, 128], strides = [1, 1]} : vector<16x1024xf32> to vector<16x128xf32>
    %cst_61 = arith.constant dense<0.000000e+00> : vector<16x128xf32>
    %183 = tpu.matmul %181, %182, %cst_61 {dimension_numbers = #tpu.dot_dimension_numbers<[1], [0], [0], [1], [0, 0, 1, 1], [], []>} : vector<16x16xf32>, vector<16x128xf32>, vector<16x128xf32> -> vector<16x128xf32>
    %184 = vector.extract_strided_slice %7 {offsets = [0, 7], sizes = [16, 1], strides = [1, 1]} : vector<16x8xf32> to vector<16x1xf32>
    %185 = vector.extract_strided_slice %8 {offsets = [7, 0], sizes = [1, 16], strides = [1, 1]} : vector<8x16xf32> to vector<1x16xf32>
    %186 = vector.broadcast %184 : vector<16x1xf32> to vector<16x16xf32>
    %187 = vector.broadcast %185 : vector<1x16xf32> to vector<16x16xf32>
    %188 = arith.addf %186, %187 : vector<16x16xf32>
    %cst_62 = arith.constant 0.000000e+00 : f32
    %189 = vector.broadcast %cst_62 : f32 to vector<16x16xf32>
    %190 = arith.cmpf ogt, %188, %189 : vector<16x16xf32>
    %cst_63 = arith.constant 2.000000e-01 : f32
    %191 = vector.broadcast %cst_63 : f32 to vector<16x16xf32>
    %192 = arith.mulf %191, %188 : vector<16x16xf32>
    %193 = arith.select %190, %188, %192 : vector<16x16xi1>, vector<16x16xf32>
    %cst_64 = arith.constant 0.000000e+00 : f32
    %194 = vector.broadcast %cst_64 : f32 to vector<16x16xf32>
    %195 = arith.cmpf ogt, %0, %194 : vector<16x16xf32>
    %cst_65 = arith.constant -1.000000e+30 : f32
    %196 = vector.broadcast %cst_65 : f32 to vector<16x16xf32>
    %197 = arith.select %195, %193, %196 : vector<16x16xi1>, vector<16x16xf32>
    %cst_66 = arith.constant dense<0xFF800000> : vector<16xf32>
    %198 = vector.multi_reduction <maximumf>, %197, %cst_66 [1] : vector<16x16xf32> to vector<16xf32>
    %199 = vector.shape_cast %198 : vector<16xf32> to vector<16x1xf32>
    %200 = vector.broadcast %199 : vector<16x1xf32> to vector<16x16xf32>
    %201 = arith.subf %197, %200 : vector<16x16xf32>
    %202 = math.exp %201 : vector<16x16xf32>
    %cst_67 = arith.constant dense<0.000000e+00> : vector<16xf32>
    %203 = vector.multi_reduction <add>, %202, %cst_67 [1] : vector<16x16xf32> to vector<16xf32>
    %204 = vector.shape_cast %203 : vector<16xf32> to vector<16x1xf32>
    %205 = vector.broadcast %204 : vector<16x1xf32> to vector<16x16xf32>
    %206 = arith.divf %202, %205 : vector<16x16xf32>
    %207 = vector.extract_strided_slice %6 {offsets = [0, 896], sizes = [16, 128], strides = [1, 1]} : vector<16x1024xf32> to vector<16x128xf32>
    %cst_68 = arith.constant dense<0.000000e+00> : vector<16x128xf32>
    %208 = tpu.matmul %206, %207, %cst_68 {dimension_numbers = #tpu.dot_dimension_numbers<[1], [0], [0], [1], [0, 0, 1, 1], [], []>} : vector<16x16xf32>, vector<16x128xf32>, vector<16x128xf32> -> vector<16x128xf32>
    %209 = tpu.concatenate %33, %58, %83, %108, %133, %158, %183, %208 in 1 : vector<16x128xf32>, vector<16x128xf32>, vector<16x128xf32>, vector<16x128xf32>, vector<16x128xf32>, vector<16x128xf32>, vector<16x128xf32>, vector<16x128xf32> -> vector<16x1024xf32>
    %210 = vector.broadcast %5 : vector<1x1024xf32> to vector<16x1024xf32>
    %211 = arith.addf %209, %210 : vector<16x1024xf32>
    %cst_69 = arith.constant 0.000000e+00 : f32
    %212 = vector.broadcast %cst_69 : f32 to vector<16x1024xf32>
    %213 = arith.maximumf %211, %212 : vector<16x1024xf32>
    %c0_70 = arith.constant 0 : index
    %c0_71 = arith.constant 0 : index
    %214 = vector.load %arg6[%c0_70, %c0_71] : memref<1024x100xf32, #tpu.memory_space<vmem>>, vector<1024x100xf32>
    %c0_72 = arith.constant 0 : index
    %c0_73 = arith.constant 0 : index
    %215 = vector.load %arg7[%c0_72, %c0_73] : memref<100x1xf32, #tpu.memory_space<vmem>>, vector<100x1xf32>
    %c0_74 = arith.constant 0 : index
    %c0_75 = arith.constant 0 : index
    %216 = vector.load %arg8[%c0_74, %c0_75] : memref<100x1xf32, #tpu.memory_space<vmem>>, vector<100x1xf32>
    %c0_76 = arith.constant 0 : index
    %c0_77 = arith.constant 0 : index
    %217 = vector.load %arg9[%c0_76, %c0_77] : memref<1x100xf32, #tpu.memory_space<vmem>>, vector<1x100xf32>
    %cst_78 = arith.constant dense<0.000000e+00> : vector<16x100xf32>
    %218 = tpu.matmul %213, %214, %cst_78 {dimension_numbers = #tpu.dot_dimension_numbers<[1], [0], [0], [1], [0, 0, 1, 1], [], []>} : vector<16x1024xf32>, vector<1024x100xf32>, vector<16x100xf32> -> vector<16x100xf32>
    %cst_79 = arith.constant dense<0.000000e+00> : vector<16x1xf32>
    %219 = tpu.matmul %218, %216, %cst_79 {dimension_numbers = #tpu.dot_dimension_numbers<[1], [0], [0], [1], [0, 0, 1, 1], [], []>} : vector<16x100xf32>, vector<100x1xf32>, vector<16x1xf32> -> vector<16x1xf32>
    %cst_80 = arith.constant dense<0.000000e+00> : vector<1x16xf32>
    %220 = tpu.matmul %215, %218, %cst_80 {dimension_numbers = #tpu.dot_dimension_numbers<[0], [1], [1], [0], [0, 1, 1, 0], [], []>} : vector<100x1xf32>, vector<16x100xf32>, vector<1x16xf32> -> vector<1x16xf32>
    %221 = vector.broadcast %219 : vector<16x1xf32> to vector<16x16xf32>
    %222 = vector.broadcast %220 : vector<1x16xf32> to vector<16x16xf32>
    %223 = arith.addf %221, %222 : vector<16x16xf32>
    %cst_81 = arith.constant 0.000000e+00 : f32
    %224 = vector.broadcast %cst_81 : f32 to vector<16x16xf32>
    %225 = arith.cmpf ogt, %223, %224 : vector<16x16xf32>
    %cst_82 = arith.constant 2.000000e-01 : f32
    %226 = vector.broadcast %cst_82 : f32 to vector<16x16xf32>
    %227 = arith.mulf %226, %223 : vector<16x16xf32>
    %228 = arith.select %225, %223, %227 : vector<16x16xi1>, vector<16x16xf32>
    %cst_83 = arith.constant 0.000000e+00 : f32
    %229 = vector.broadcast %cst_83 : f32 to vector<16x16xf32>
    %230 = arith.cmpf ogt, %0, %229 : vector<16x16xf32>
    %cst_84 = arith.constant -1.000000e+30 : f32
    %231 = vector.broadcast %cst_84 : f32 to vector<16x16xf32>
    %232 = arith.select %230, %228, %231 : vector<16x16xi1>, vector<16x16xf32>
    %cst_85 = arith.constant dense<0xFF800000> : vector<16xf32>
    %233 = vector.multi_reduction <maximumf>, %232, %cst_85 [1] : vector<16x16xf32> to vector<16xf32>
    %234 = vector.shape_cast %233 : vector<16xf32> to vector<16x1xf32>
    %235 = vector.broadcast %234 : vector<16x1xf32> to vector<16x16xf32>
    %236 = arith.subf %232, %235 : vector<16x16xf32>
    %237 = math.exp %236 : vector<16x16xf32>
    %cst_86 = arith.constant dense<0.000000e+00> : vector<16xf32>
    %238 = vector.multi_reduction <add>, %237, %cst_86 [1] : vector<16x16xf32> to vector<16xf32>
    %239 = vector.shape_cast %238 : vector<16xf32> to vector<16x1xf32>
    %240 = vector.broadcast %239 : vector<16x1xf32> to vector<16x16xf32>
    %241 = arith.divf %237, %240 : vector<16x16xf32>
    %cst_87 = arith.constant dense<0.000000e+00> : vector<16x100xf32>
    %242 = tpu.matmul %241, %218, %cst_87 {dimension_numbers = #tpu.dot_dimension_numbers<[1], [0], [0], [1], [0, 0, 1, 1], [], []>} : vector<16x16xf32>, vector<16x100xf32>, vector<16x100xf32> -> vector<16x100xf32>
    %243 = vector.broadcast %217 : vector<1x100xf32> to vector<16x100xf32>
    %244 = arith.addf %242, %243 : vector<16x100xf32>
    %cst_88 = arith.constant 0.000000e+00 : f32
    %245 = vector.broadcast %cst_88 : f32 to vector<16x100xf32>
    %246 = arith.maximumf %244, %245 : vector<16x100xf32>
    %c0_89 = arith.constant 0 : index
    %c0_90 = arith.constant 0 : index
    %247 = vector.load %arg10[%c0_89, %c0_90] : memref<100x80xf32, #tpu.memory_space<vmem>>, vector<100x80xf32>
    %c0_91 = arith.constant 0 : index
    %c0_92 = arith.constant 0 : index
    %248 = vector.load %arg11[%c0_91, %c0_92] : memref<80x1xf32, #tpu.memory_space<vmem>>, vector<80x1xf32>
    %c0_93 = arith.constant 0 : index
    %c0_94 = arith.constant 0 : index
    %249 = vector.load %arg12[%c0_93, %c0_94] : memref<80x1xf32, #tpu.memory_space<vmem>>, vector<80x1xf32>
    %c0_95 = arith.constant 0 : index
    %c0_96 = arith.constant 0 : index
    %250 = vector.load %arg13[%c0_95, %c0_96] : memref<1x80xf32, #tpu.memory_space<vmem>>, vector<1x80xf32>
    %cst_97 = arith.constant dense<0.000000e+00> : vector<16x80xf32>
    %251 = tpu.matmul %246, %247, %cst_97 {dimension_numbers = #tpu.dot_dimension_numbers<[1], [0], [0], [1], [0, 0, 1, 1], [], []>} : vector<16x100xf32>, vector<100x80xf32>, vector<16x80xf32> -> vector<16x80xf32>
    %cst_98 = arith.constant dense<0.000000e+00> : vector<16x1xf32>
    %252 = tpu.matmul %251, %249, %cst_98 {dimension_numbers = #tpu.dot_dimension_numbers<[1], [0], [0], [1], [0, 0, 1, 1], [], []>} : vector<16x80xf32>, vector<80x1xf32>, vector<16x1xf32> -> vector<16x1xf32>
    %cst_99 = arith.constant dense<0.000000e+00> : vector<1x16xf32>
    %253 = tpu.matmul %248, %251, %cst_99 {dimension_numbers = #tpu.dot_dimension_numbers<[0], [1], [1], [0], [0, 1, 1, 0], [], []>} : vector<80x1xf32>, vector<16x80xf32>, vector<1x16xf32> -> vector<1x16xf32>
    %254 = vector.broadcast %252 : vector<16x1xf32> to vector<16x16xf32>
    %255 = vector.broadcast %253 : vector<1x16xf32> to vector<16x16xf32>
    %256 = arith.addf %254, %255 : vector<16x16xf32>
    %cst_100 = arith.constant 0.000000e+00 : f32
    %257 = vector.broadcast %cst_100 : f32 to vector<16x16xf32>
    %258 = arith.cmpf ogt, %256, %257 : vector<16x16xf32>
    %cst_101 = arith.constant 2.000000e-01 : f32
    %259 = vector.broadcast %cst_101 : f32 to vector<16x16xf32>
    %260 = arith.mulf %259, %256 : vector<16x16xf32>
    %261 = arith.select %258, %256, %260 : vector<16x16xi1>, vector<16x16xf32>
    %cst_102 = arith.constant 0.000000e+00 : f32
    %262 = vector.broadcast %cst_102 : f32 to vector<16x16xf32>
    %263 = arith.cmpf ogt, %0, %262 : vector<16x16xf32>
    %cst_103 = arith.constant -1.000000e+30 : f32
    %264 = vector.broadcast %cst_103 : f32 to vector<16x16xf32>
    %265 = arith.select %263, %261, %264 : vector<16x16xi1>, vector<16x16xf32>
    %cst_104 = arith.constant dense<0xFF800000> : vector<16xf32>
    %266 = vector.multi_reduction <maximumf>, %265, %cst_104 [1] : vector<16x16xf32> to vector<16xf32>
    %267 = vector.shape_cast %266 : vector<16xf32> to vector<16x1xf32>
    %268 = vector.broadcast %267 : vector<16x1xf32> to vector<16x16xf32>
    %269 = arith.subf %265, %268 : vector<16x16xf32>
    %270 = math.exp %269 : vector<16x16xf32>
    %cst_105 = arith.constant dense<0.000000e+00> : vector<16xf32>
    %271 = vector.multi_reduction <add>, %270, %cst_105 [1] : vector<16x16xf32> to vector<16xf32>
    %272 = vector.shape_cast %271 : vector<16xf32> to vector<16x1xf32>
    %273 = vector.broadcast %272 : vector<16x1xf32> to vector<16x16xf32>
    %274 = arith.divf %270, %273 : vector<16x16xf32>
    %cst_106 = arith.constant dense<0.000000e+00> : vector<16x80xf32>
    %275 = tpu.matmul %274, %251, %cst_106 {dimension_numbers = #tpu.dot_dimension_numbers<[1], [0], [0], [1], [0, 0, 1, 1], [], []>} : vector<16x16xf32>, vector<16x80xf32>, vector<16x80xf32> -> vector<16x80xf32>
    %276 = vector.broadcast %250 : vector<1x80xf32> to vector<16x80xf32>
    %277 = arith.addf %275, %276 : vector<16x80xf32>
    %cst_107 = arith.constant 0.000000e+00 : f32
    %278 = vector.broadcast %cst_107 : f32 to vector<16x80xf32>
    %279 = arith.maximumf %277, %278 : vector<16x80xf32>
    %c0_108 = arith.constant 0 : index
    %c0_109 = arith.constant 0 : index
    %280 = vector.load %arg14[%c0_108, %c0_109] : memref<80x40xf32, #tpu.memory_space<vmem>>, vector<80x40xf32>
    %c0_110 = arith.constant 0 : index
    %c0_111 = arith.constant 0 : index
    %281 = vector.load %arg15[%c0_110, %c0_111] : memref<40x1xf32, #tpu.memory_space<vmem>>, vector<40x1xf32>
    %c0_112 = arith.constant 0 : index
    %c0_113 = arith.constant 0 : index
    %282 = vector.load %arg16[%c0_112, %c0_113] : memref<40x1xf32, #tpu.memory_space<vmem>>, vector<40x1xf32>
    %c0_114 = arith.constant 0 : index
    %c0_115 = arith.constant 0 : index
    %283 = vector.load %arg17[%c0_114, %c0_115] : memref<1x40xf32, #tpu.memory_space<vmem>>, vector<1x40xf32>
    %cst_116 = arith.constant dense<0.000000e+00> : vector<16x40xf32>
    %284 = tpu.matmul %279, %280, %cst_116 {dimension_numbers = #tpu.dot_dimension_numbers<[1], [0], [0], [1], [0, 0, 1, 1], [], []>} : vector<16x80xf32>, vector<80x40xf32>, vector<16x40xf32> -> vector<16x40xf32>
    %cst_117 = arith.constant dense<0.000000e+00> : vector<16x1xf32>
    %285 = tpu.matmul %284, %282, %cst_117 {dimension_numbers = #tpu.dot_dimension_numbers<[1], [0], [0], [1], [0, 0, 1, 1], [], []>} : vector<16x40xf32>, vector<40x1xf32>, vector<16x1xf32> -> vector<16x1xf32>
    %cst_118 = arith.constant dense<0.000000e+00> : vector<1x16xf32>
    %286 = tpu.matmul %281, %284, %cst_118 {dimension_numbers = #tpu.dot_dimension_numbers<[0], [1], [1], [0], [0, 1, 1, 0], [], []>} : vector<40x1xf32>, vector<16x40xf32>, vector<1x16xf32> -> vector<1x16xf32>
    %287 = vector.broadcast %285 : vector<16x1xf32> to vector<16x16xf32>
    %288 = vector.broadcast %286 : vector<1x16xf32> to vector<16x16xf32>
    %289 = arith.addf %287, %288 : vector<16x16xf32>
    %cst_119 = arith.constant 0.000000e+00 : f32
    %290 = vector.broadcast %cst_119 : f32 to vector<16x16xf32>
    %291 = arith.cmpf ogt, %289, %290 : vector<16x16xf32>
    %cst_120 = arith.constant 2.000000e-01 : f32
    %292 = vector.broadcast %cst_120 : f32 to vector<16x16xf32>
    %293 = arith.mulf %292, %289 : vector<16x16xf32>
    %294 = arith.select %291, %289, %293 : vector<16x16xi1>, vector<16x16xf32>
    %cst_121 = arith.constant 0.000000e+00 : f32
    %295 = vector.broadcast %cst_121 : f32 to vector<16x16xf32>
    %296 = arith.cmpf ogt, %0, %295 : vector<16x16xf32>
    %cst_122 = arith.constant -1.000000e+30 : f32
    %297 = vector.broadcast %cst_122 : f32 to vector<16x16xf32>
    %298 = arith.select %296, %294, %297 : vector<16x16xi1>, vector<16x16xf32>
    %cst_123 = arith.constant dense<0xFF800000> : vector<16xf32>
    %299 = vector.multi_reduction <maximumf>, %298, %cst_123 [1] : vector<16x16xf32> to vector<16xf32>
    %300 = vector.shape_cast %299 : vector<16xf32> to vector<16x1xf32>
    %301 = vector.broadcast %300 : vector<16x1xf32> to vector<16x16xf32>
    %302 = arith.subf %298, %301 : vector<16x16xf32>
    %303 = math.exp %302 : vector<16x16xf32>
    %cst_124 = arith.constant dense<0.000000e+00> : vector<16xf32>
    %304 = vector.multi_reduction <add>, %303, %cst_124 [1] : vector<16x16xf32> to vector<16xf32>
    %305 = vector.shape_cast %304 : vector<16xf32> to vector<16x1xf32>
    %306 = vector.broadcast %305 : vector<16x1xf32> to vector<16x16xf32>
    %307 = arith.divf %303, %306 : vector<16x16xf32>
    %cst_125 = arith.constant dense<0.000000e+00> : vector<16x40xf32>
    %308 = tpu.matmul %307, %284, %cst_125 {dimension_numbers = #tpu.dot_dimension_numbers<[1], [0], [0], [1], [0, 0, 1, 1], [], []>} : vector<16x16xf32>, vector<16x40xf32>, vector<16x40xf32> -> vector<16x40xf32>
    %309 = vector.broadcast %283 : vector<1x40xf32> to vector<16x40xf32>
    %310 = arith.addf %308, %309 : vector<16x40xf32>
    %cst_126 = arith.constant 0.000000e+00 : f32
    %311 = vector.broadcast %cst_126 : f32 to vector<16x40xf32>
    %312 = arith.maximumf %310, %311 : vector<16x40xf32>
    %c0_127 = arith.constant 0 : index
    %c0_128 = arith.constant 0 : index
    %313 = vector.load %arg18[%c0_127, %c0_128] : memref<40x20xf32, #tpu.memory_space<vmem>>, vector<40x20xf32>
    %c0_129 = arith.constant 0 : index
    %c0_130 = arith.constant 0 : index
    %314 = vector.load %arg19[%c0_129, %c0_130] : memref<20x1xf32, #tpu.memory_space<vmem>>, vector<20x1xf32>
    %c0_131 = arith.constant 0 : index
    %c0_132 = arith.constant 0 : index
    %315 = vector.load %arg20[%c0_131, %c0_132] : memref<20x1xf32, #tpu.memory_space<vmem>>, vector<20x1xf32>
    %c0_133 = arith.constant 0 : index
    %c0_134 = arith.constant 0 : index
    %316 = vector.load %arg21[%c0_133, %c0_134] : memref<1x20xf32, #tpu.memory_space<vmem>>, vector<1x20xf32>
    %cst_135 = arith.constant dense<0.000000e+00> : vector<16x20xf32>
    %317 = tpu.matmul %312, %313, %cst_135 {dimension_numbers = #tpu.dot_dimension_numbers<[1], [0], [0], [1], [0, 0, 1, 1], [], []>} : vector<16x40xf32>, vector<40x20xf32>, vector<16x20xf32> -> vector<16x20xf32>
    %cst_136 = arith.constant dense<0.000000e+00> : vector<16x1xf32>
    %318 = tpu.matmul %317, %315, %cst_136 {dimension_numbers = #tpu.dot_dimension_numbers<[1], [0], [0], [1], [0, 0, 1, 1], [], []>} : vector<16x20xf32>, vector<20x1xf32>, vector<16x1xf32> -> vector<16x1xf32>
    %cst_137 = arith.constant dense<0.000000e+00> : vector<1x16xf32>
    %319 = tpu.matmul %314, %317, %cst_137 {dimension_numbers = #tpu.dot_dimension_numbers<[0], [1], [1], [0], [0, 1, 1, 0], [], []>} : vector<20x1xf32>, vector<16x20xf32>, vector<1x16xf32> -> vector<1x16xf32>
    %320 = vector.broadcast %318 : vector<16x1xf32> to vector<16x16xf32>
    %321 = vector.broadcast %319 : vector<1x16xf32> to vector<16x16xf32>
    %322 = arith.addf %320, %321 : vector<16x16xf32>
    %cst_138 = arith.constant 0.000000e+00 : f32
    %323 = vector.broadcast %cst_138 : f32 to vector<16x16xf32>
    %324 = arith.cmpf ogt, %322, %323 : vector<16x16xf32>
    %cst_139 = arith.constant 2.000000e-01 : f32
    %325 = vector.broadcast %cst_139 : f32 to vector<16x16xf32>
    %326 = arith.mulf %325, %322 : vector<16x16xf32>
    %327 = arith.select %324, %322, %326 : vector<16x16xi1>, vector<16x16xf32>
    %cst_140 = arith.constant 0.000000e+00 : f32
    %328 = vector.broadcast %cst_140 : f32 to vector<16x16xf32>
    %329 = arith.cmpf ogt, %0, %328 : vector<16x16xf32>
    %cst_141 = arith.constant -1.000000e+30 : f32
    %330 = vector.broadcast %cst_141 : f32 to vector<16x16xf32>
    %331 = arith.select %329, %327, %330 : vector<16x16xi1>, vector<16x16xf32>
    %cst_142 = arith.constant dense<0xFF800000> : vector<16xf32>
    %332 = vector.multi_reduction <maximumf>, %331, %cst_142 [1] : vector<16x16xf32> to vector<16xf32>
    %333 = vector.shape_cast %332 : vector<16xf32> to vector<16x1xf32>
    %334 = vector.broadcast %333 : vector<16x1xf32> to vector<16x16xf32>
    %335 = arith.subf %331, %334 : vector<16x16xf32>
    %336 = math.exp %335 : vector<16x16xf32>
    %cst_143 = arith.constant dense<0.000000e+00> : vector<16xf32>
    %337 = vector.multi_reduction <add>, %336, %cst_143 [1] : vector<16x16xf32> to vector<16xf32>
    %338 = vector.shape_cast %337 : vector<16xf32> to vector<16x1xf32>
    %339 = vector.broadcast %338 : vector<16x1xf32> to vector<16x16xf32>
    %340 = arith.divf %336, %339 : vector<16x16xf32>
    %cst_144 = arith.constant dense<0.000000e+00> : vector<16x20xf32>
    %341 = tpu.matmul %340, %317, %cst_144 {dimension_numbers = #tpu.dot_dimension_numbers<[1], [0], [0], [1], [0, 0, 1, 1], [], []>} : vector<16x16xf32>, vector<16x20xf32>, vector<16x20xf32> -> vector<16x20xf32>
    %342 = vector.broadcast %316 : vector<1x20xf32> to vector<16x20xf32>
    %343 = arith.addf %341, %342 : vector<16x20xf32>
    %cst_145 = arith.constant 0.000000e+00 : f32
    %344 = vector.broadcast %cst_145 : f32 to vector<16x20xf32>
    %345 = arith.maximumf %343, %344 : vector<16x20xf32>
    %c0_146 = arith.constant 0 : index
    %c0_147 = arith.constant 0 : index
    %346 = vector.load %arg22[%c0_146, %c0_147] : memref<20x3xf32, #tpu.memory_space<vmem>>, vector<20x3xf32>
    %c0_148 = arith.constant 0 : index
    %c0_149 = arith.constant 0 : index
    %347 = vector.load %arg23[%c0_148, %c0_149] : memref<3x1xf32, #tpu.memory_space<vmem>>, vector<3x1xf32>
    %c0_150 = arith.constant 0 : index
    %c0_151 = arith.constant 0 : index
    %348 = vector.load %arg24[%c0_150, %c0_151] : memref<3x1xf32, #tpu.memory_space<vmem>>, vector<3x1xf32>
    %c0_152 = arith.constant 0 : index
    %c0_153 = arith.constant 0 : index
    %349 = vector.load %arg25[%c0_152, %c0_153] : memref<1x3xf32, #tpu.memory_space<vmem>>, vector<1x3xf32>
    %cst_154 = arith.constant dense<0.000000e+00> : vector<16x3xf32>
    %350 = tpu.matmul %345, %346, %cst_154 {dimension_numbers = #tpu.dot_dimension_numbers<[1], [0], [0], [1], [0, 0, 1, 1], [], []>} : vector<16x20xf32>, vector<20x3xf32>, vector<16x3xf32> -> vector<16x3xf32>
    %cst_155 = arith.constant dense<0.000000e+00> : vector<16x1xf32>
    %351 = tpu.matmul %350, %348, %cst_155 {dimension_numbers = #tpu.dot_dimension_numbers<[1], [0], [0], [1], [0, 0, 1, 1], [], []>} : vector<16x3xf32>, vector<3x1xf32>, vector<16x1xf32> -> vector<16x1xf32>
    %cst_156 = arith.constant dense<0.000000e+00> : vector<1x16xf32>
    %352 = tpu.matmul %347, %350, %cst_156 {dimension_numbers = #tpu.dot_dimension_numbers<[0], [1], [1], [0], [0, 1, 1, 0], [], []>} : vector<3x1xf32>, vector<16x3xf32>, vector<1x16xf32> -> vector<1x16xf32>
    %353 = vector.broadcast %351 : vector<16x1xf32> to vector<16x16xf32>
    %354 = vector.broadcast %352 : vector<1x16xf32> to vector<16x16xf32>
    %355 = arith.addf %353, %354 : vector<16x16xf32>
    %cst_157 = arith.constant 0.000000e+00 : f32
    %356 = vector.broadcast %cst_157 : f32 to vector<16x16xf32>
    %357 = arith.cmpf ogt, %355, %356 : vector<16x16xf32>
    %cst_158 = arith.constant 2.000000e-01 : f32
    %358 = vector.broadcast %cst_158 : f32 to vector<16x16xf32>
    %359 = arith.mulf %358, %355 : vector<16x16xf32>
    %360 = arith.select %357, %355, %359 : vector<16x16xi1>, vector<16x16xf32>
    %cst_159 = arith.constant 0.000000e+00 : f32
    %361 = vector.broadcast %cst_159 : f32 to vector<16x16xf32>
    %362 = arith.cmpf ogt, %0, %361 : vector<16x16xf32>
    %cst_160 = arith.constant -1.000000e+30 : f32
    %363 = vector.broadcast %cst_160 : f32 to vector<16x16xf32>
    %364 = arith.select %362, %360, %363 : vector<16x16xi1>, vector<16x16xf32>
    %cst_161 = arith.constant dense<0xFF800000> : vector<16xf32>
    %365 = vector.multi_reduction <maximumf>, %364, %cst_161 [1] : vector<16x16xf32> to vector<16xf32>
    %366 = vector.shape_cast %365 : vector<16xf32> to vector<16x1xf32>
    %367 = vector.broadcast %366 : vector<16x1xf32> to vector<16x16xf32>
    %368 = arith.subf %364, %367 : vector<16x16xf32>
    %369 = math.exp %368 : vector<16x16xf32>
    %cst_162 = arith.constant dense<0.000000e+00> : vector<16xf32>
    %370 = vector.multi_reduction <add>, %369, %cst_162 [1] : vector<16x16xf32> to vector<16xf32>
    %371 = vector.shape_cast %370 : vector<16xf32> to vector<16x1xf32>
    %372 = vector.broadcast %371 : vector<16x1xf32> to vector<16x16xf32>
    %373 = arith.divf %369, %372 : vector<16x16xf32>
    %cst_163 = arith.constant dense<0.000000e+00> : vector<16x3xf32>
    %374 = tpu.matmul %373, %350, %cst_163 {dimension_numbers = #tpu.dot_dimension_numbers<[1], [0], [0], [1], [0, 0, 1, 1], [], []>} : vector<16x16xf32>, vector<16x3xf32>, vector<16x3xf32> -> vector<16x3xf32>
    %cst_164 = arith.constant 1.000000e+00 : f32
    %375 = vector.broadcast %cst_164 : f32 to vector<16x3xf32>
    %376 = arith.divf %374, %375 : vector<16x3xf32>
    %377 = vector.broadcast %349 : vector<1x3xf32> to vector<16x3xf32>
    %378 = arith.addf %376, %377 : vector<16x3xf32>
    %c0_165 = arith.constant 0 : index
    %c0_166 = arith.constant 0 : index
    %379 = vector.load %arg26[%c0_165, %c0_166] : memref<16x3xf32, #tpu.memory_space<vmem>>, vector<16x3xf32>
    tpu.vector_store %arg26[%c0_165, %c0_166], %378 {strides = array<i32>} : memref<16x3xf32, #tpu.memory_space<vmem>>, vector<16x3xf32>,
    return
  }
}

</mosaic_0001>

<bundles_post_ra>
// kernel: tpu_custom_call.1
= control target key start
LH: loop header
LB: loop body
LE: loop exit
PB: predicated region body
PF: predicated region fallthrough
CT: control target
= control target key end

     0   :  { %v6676_v3 = vmov 0.0   ;;  %vm375_vm0 = vcmask 1043456   ;;  %vm368_vm1 = vcmask 162816   ;;  %vm1570_vm4 = vcmask 130048   ;;  %s8871_s2 = inlined_call_operand.vmem [shape: f32[20,1024], index: 2, kind: input, shape index: {}]   ;;  %s8872_s0 = inlined_call_operand.vmem [shape: f32[16,20], index: 0, kind: input, shape index: {}]   ;;  %s8873_s3 = inlined_call_operand.vmem [shape: f32[1024,8], index: 3, kind: input, shape index: {}]   ;;  %s8874_s4 = inlined_call_operand.vmem [shape: f32[1024,8], index: 4, kind: input, shape index: {}]   ;;  %s8875_s1 = inlined_call_operand.vmem [shape: f32[16,16], index: 1, kind: input, shape index: {}]   ;;  %s8876_s6 = inlined_call_operand.vmem [shape: f32[1024,100], index: 6, kind: input, shape index: {}]   ;;  %s8877_s7 = inlined_call_operand.vmem [shape: f32[100,1], index: 7, kind: input, shape index: {}]   ;;  %s8878_s5 = inlined_call_operand.vmem [shape: f32[1,1024], index: 5, kind: input, shape index: {}]   ;;  %s8879_s8 = inlined_call_operand.vmem [shape: f32[100,1], index: 8, kind: input, shape index: {}]   ;;  %s8880_s10 = inlined_call_operand.vmem [shape: f32[100,80], index: 10, kind: input, shape index: {}]   ;;  %s8881_s12 = inlined_call_operand.vmem [shape: f32[80,1], index: 12, kind: input, shape index: {}]   ;;  %s8882_s11 = inlined_call_operand.vmem [shape: f32[80,1], index: 11, kind: input, shape index: {}]   ;;  %s8883_s9 = inlined_call_operand.vmem [shape: f32[1,100], index: 9, kind: input, shape index: {}]   ;;  %s8884_s14 = inlined_call_operand.vmem [shape: f32[80,40], index: 14, kind: input, shape index: {}]   ;;  %s8885_s15 = inlined_call_operand.vmem [shape: f32[40,1], index: 15, kind: input, shape index: {}]   ;;  %s8886_s16 = inlined_call_operand.vmem [shape: f32[40,1], index: 16, kind: input, shape index: {}]   ;;  %s8887_s13 = inlined_call_operand.vmem [shape: f32[1,80], index: 13, kind: input, shape index: {}]   ;;  %s8888_s18 = inlined_call_operand.vmem [shape: f32[40,20], index: 18, kind: input, shape index: {}]   ;;  %s8889_s20 = inlined_call_operand.vmem [shape: f32[20,1], index: 20, kind: input, shape index: {}]   ;;  %s8890_s19 = inlined_call_operand.vmem [shape: f32[20,1], index: 19, kind: input, shape index: {}]   ;;  %s8891_s17 = inlined_call_operand.vmem [shape: f32[1,40], index: 17, kind: input, shape index: {}]   ;;  %s8892_s22 = inlined_call_operand.vmem [shape: f32[20,3], index: 22, kind: input, shape index: {}]   ;;  %s8893_s24 = inlined_call_operand.vmem [shape: f32[3,1], index: 24, kind: input, shape index: {}]   ;;  %s8894_s23 = inlined_call_operand.vmem [shape: f32[3,1], index: 23, kind: input, shape index: {}]   ;;  %s8895_s21 = inlined_call_operand.vmem [shape: f32[1,20], index: 21, kind: input, shape index: {}]   ;;  %s8896_s25 = inlined_call_operand.vmem [shape: f32[1,3], index: 25, kind: input, shape index: {}]   ;;  %s8897_s26 = inlined_call_operand.vmem [shape: f32[16,3], index: 26, kind: output, shape index: {}]  }
   0x1   :  { %8908 = sst [smem:[#allocation2_spill]] %s8871_s2  ;;  %464 = vmatprep.mubr.f32.mxu0 %v6676_v3  ;;  %541 = vmatprep.mubr.f32.mxu1 %v6676_v3 }
   0x2   :  { %8909 = sst [smem:[#allocation3_spill]] %s8872_s0 }
   0x3   :  { %8910 = sst [smem:[#allocation4_spill]] %s8873_s3 }
   0x4   :  { %8911 = sst [smem:[#allocation5_spill]] %s8874_s4 }
   0x5   :  { %8912 = sst [smem:[#allocation6_spill]] %s8875_s1 }
   0x6   :  { %8913 = sst [smem:[#allocation7_spill]] %s8876_s6  ;;  %s8921_s6 = sld [smem:[#allocation4_spill]] }
   0x7   :  { %8914 = sst [smem:[#allocation8_spill]] %s8877_s7  ;;  %s8920_s7 = sld [smem:[#allocation3_spill]] }
   0x8   :  { %8915 = sst [smem:[#allocation9_spill]] %s8878_s5  ;;  %s8919_s5 = sld [smem:[#allocation2_spill]] }
   0x9   :  { %8916 = sst [smem:[#allocation10_spill]] %s8879_s8  ;;  %s8923_s29 = sld [smem:[#allocation6_spill]] }
   0xa   :  { %8917 = sst [smem:[#allocation11_spill]] %s8880_s10  ;;  %s8925_s2 = sld [smem:[#allocation8_spill]] }
   0xb   :  { %8918 = sst [smem:[#allocation12_spill]] %s8881_s12  ;;  %s8924_s12 = sld [smem:[#allocation7_spill]] }
   0xc   :  { %v111_v33 = vld [vmem:[%s8921_s6] sm:$0xff]  ;;  %v112_v40 = vld [vmem:[%s8921_s6 + $0x8] sm:$0xff]  ;;  %v113_v46 = vld [vmem:[%s8921_s6 + $0x10] sm:$0xff]  ;;  %s8926_s10 = sld [smem:[#allocation9_spill]]  ;;  %s8927_s8 = sld [smem:[#allocation10_spill]] }
   0xd   :  { %v85_v17 = vld [vmem:[%s8920_s7] sm:$0xff]  ;;  %v86_v30 = vld [vmem:[%s8920_s7 + $0x8] sm:$0xff]  ;;  %v129_v47 = vld [vmem:[%s8921_s6 + $0x90] sm:$0xff]  ;;  %s8928_s4 = sld [smem:[#allocation11_spill]] }
   0xe   :  { %v88_v0 = vld [vmem:[%s8919_s5 + $0x8] sm:$0xff]  ;;  %v90_v2 = vld [vmem:[%s8919_s5 + $0x18] sm:$0xff]  ;;  %v87_v6 = vld [vmem:[%s8919_s5] sm:$0xff]  ;;  %v6412_v51 = vpack.i.bf16 %v113_v46, %v129_v47 }
   0xf   :  { %v96_v1 = vld [vmem:[%s8919_s5 + $0x48] sm:$0xff]  ;;  %v98_v5 = vld [vmem:[%s8919_s5 + $0x58] sm:$0xff]  ;;  %v95_v7 = vld [vmem:[%s8919_s5 + $0x40] sm:$0xff] }
  0x10   :  { %v5919_v4 = vpack.c.bf16 %v96_v1, %v88_v0  ;;  %v5923_v8 = vpack.c.bf16 %v98_v5, %v90_v2  ;;  %v5921_v9 = vpack.c.bf16 %v95_v7, %v87_v6  ;;  %v89_v10 = vld [vmem:[%s8919_s5 + $0x10] sm:$0xff]  ;;  %v104_v12 = vld [vmem:[%s8919_s5 + $0x88] sm:$0xf]  ;;  %v106_v14 = vld [vmem:[%s8919_s5 + $0x98] sm:$0xf] }
  0x11   :  { %v97_v11 = vld [vmem:[%s8919_s5 + $0x50] sm:$0xff]  ;;  %v103_v15 = vld [vmem:[%s8919_s5 + $0x80] sm:$0xf]  ;;  %v92_v18 = vld [vmem:[%s8919_s5 + $0x28] sm:$0xff] }
  0x12   :  { %5920 = vmatprep.subr.bf16.mxu0 %v5919_v4  ;;  %v5925_v13 = vpack.c.bf16 %v97_v11, %v89_v10  ;;  %5924 = vmatprep.subr.bf16.mxu1 %v5923_v8  ;;  %v105_v16 = vld [vmem:[%s8919_s5 + $0x90] sm:$0xf]  ;;  %v100_v19 = vld [vmem:[%s8919_s5 + $0x68] sm:$0xff]  ;;  %v91_v20 = vld [vmem:[%s8919_s5 + $0x20] sm:$0xff] }
  0x13   :  { %5922 = vmatpush1.bf16.msra.mxu0 %v5921_v9  ;;  %v99_v21 = vld [vmem:[%s8919_s5 + $0x60] sm:$0xff]  ;;  %v94_v22 = vld [vmem:[%s8919_s5 + $0x38] sm:$0xff]  ;;  %v93_v24 = vld [vmem:[%s8919_s5 + $0x30] sm:$0xff]  ;;  %v5927_v25 = vpack.c.bf16 %v100_v19, %v92_v18 }
  0x14   :  { %5926 = vmatpush1.bf16.msra.mxu1 %v5925_v13  ;;  %5103 = vmatprep.subr.msk.mxu0 %vm375_vm0, %v104_v12  ;;  %v102_v23 = vld [vmem:[%s8919_s5 + $0x78] sm:$0xff]  ;;  %v101_v26 = vld [vmem:[%s8919_s5 + $0x70] sm:$0xff]  ;;  %v5929_v27 = vpack.c.bf16 %v99_v21, %v91_v20  ;;  %v108_v31 = vld [vmem:[%s8919_s5 + $0xa8] sm:$0xf] }
  0x15   :  { %5107 = vmatprep.subr.msk.mxu1 %vm375_vm0, %v106_v14  ;;  %v5931_v28 = vpack.c.bf16 %v102_v23, %v94_v22  ;;  %v5933_v29 = vpack.c.bf16 %v101_v26, %v93_v24  ;;  %v110_v32 = vld [vmem:[%s8919_s5 + $0xb8] sm:$0xf]  ;;  %v127_v34 = vld [vmem:[%s8921_s6 + $0x80] sm:$0xff]  ;;  %v109_v38 = vld [vmem:[%s8919_s5 + $0xb0] sm:$0xf] }
  0x16   :  { %v107_v35 = vld [vmem:[%s8919_s5 + $0xa0] sm:$0xf]  ;;  %v6408_v39 = vpack.i.bf16 %v111_v33, %v127_v34  ;;  %v128_v41 = vld [vmem:[%s8921_s6 + $0x88] sm:$0xff]  ;;  %v145_v49 = vld [vmem:[%s8921_s6 + $0x110] sm:$0xff]  ;;  %s8922_s5 = sld [smem:[#allocation5_spill]] }
  0x17   :  { %5104 = vmatpush1.msk.msra.mxu0 %vm375_vm0, %v103_v15  ;;  %v143_v36 = vld [vmem:[%s8921_s6 + $0x100] sm:$0xff]  ;;  %v144_v43 = vld [vmem:[%s8921_s6 + $0x108] sm:$0xff]  ;;  %v6410_v45 = vpack.i.bf16 %v112_v40, %v128_v41  ;;  %v161_v50 = vld [vmem:[%s8921_s6 + $0x190] sm:$0xff] }
  0x18   :  { %5108 = vmatpush1.msk.msra.mxu1 %vm375_vm0, %v105_v16  ;;  %5105 = vmatmul.mubr.msk.f32.vlgmr.msra.gmra.mrb[0].mxu0 %vm368_vm1, %v85_v17  ;;  %v159_v37 = vld [vmem:[%s8921_s6 + $0x180] sm:$0xff]  ;;  %v160_v44 = vld [vmem:[%s8921_s6 + $0x188] sm:$0xff]  ;;  %v114_v52 = vld [vmem:[%s8921_s6 + $0x18] sm:$0xff]  ;;  %v6449_v54 = vpack.i.bf16 %v145_v49, %v161_v50 }
  0x19   :  { %5109 = vmatmul.mubr.msk.f32.vlgmr.msra.gmra.mrb[0].mxu1 %vm368_vm1, %v85_v17  ;;  %470 = vmatprep.mubr.f32.mxu0 %v6676_v3  ;;  %v6445_v42 = vpack.i.bf16 %v143_v36, %v159_v37  ;;  %v6447_v48 = vpack.i.bf16 %v144_v43, %v160_v44  ;;  %v130_v53 = vld [vmem:[%s8921_s6 + $0x98] sm:$0xff]  ;;  %v115_v58 = vld [vmem:[%s8921_s6 + $0x20] sm:$0xff]  ;;  %v116_v0 = vld [vmem:[%s8921_s6 + $0x28] sm:$0xff] }
  0x1a   :  { %547 = vmatprep.mubr.f32.mxu1 %v6676_v3  ;;  %5928 = vmatprep.subr.bf16.mxu0 %v5927_v25  ;;  %v146_v55 = vld [vmem:[%s8921_s6 + $0x118] sm:$0xff]  ;;  %v6414_v57 = vpack.i.bf16 %v114_v52, %v130_v53  ;;  %v131_v59 = vld [vmem:[%s8921_s6 + $0xa0] sm:$0xff]  ;;  %v132_v1 = vld [vmem:[%s8921_s6 + $0xa8] sm:$0xff] }
  0x1b   :  { %5930 = vmatpush1.bf16.msra.mxu0 %v5929_v27  ;;  %5932 = vmatprep.subr.bf16.mxu1 %v5931_v28  ;;  %v162_v56 = vld [vmem:[%s8921_s6 + $0x198] sm:$0xff]  ;;  %v147_v61 = vld [vmem:[%s8921_s6 + $0x120] sm:$0xff]  ;;  %v6416_v63 = vpack.i.bf16 %v115_v58, %v131_v59  ;;  %v148_v4 = vld [vmem:[%s8921_s6 + $0x128] sm:$0xff]  ;;  %v6418_v6 = vpack.i.bf16 %v116_v0, %v132_v1 }
  0x1c   :  { %5106 = vmatmul.mubr.msk.f32.gmra.mrb[2].mxu0 %vm368_vm1, %v86_v30  ;;  %5934 = vmatpush1.bf16.msra.mxu1 %v5933_v29  ;;  %v6451_v60 = vpack.i.bf16 %v146_v55, %v162_v56  ;;  %v163_v62 = vld [vmem:[%s8921_s6 + $0x1a0] sm:$0xff]  ;;  %v164_v5 = vld [vmem:[%s8921_s6 + $0x1a8] sm:$0xff]  ;;  %v117_v7 = vld [vmem:[%s8921_s6 + $0x30] sm:$0xff] }
  0x1d   :  { %5110 = vmatmul.mubr.msk.f32.gmra.mrb[2].mxu1 %vm368_vm1, %v86_v30  ;;  %5111 = vmatprep.subr.msk.mxu0 %vm375_vm0, %v108_v31  ;;  %v6453_v2 = vpack.i.bf16 %v147_v61, %v163_v62  ;;  %v133_v8 = vld [vmem:[%s8921_s6 + $0xb0] sm:$0xff]  ;;  %v6455_v9 = vpack.i.bf16 %v148_v4, %v164_v5  ;;  %v118_v13 = vld [vmem:[%s8921_s6 + $0x38] sm:$0xff]  ;;  %v119_v18 = vld [vmem:[%s8921_s6 + $0x40] sm:$0xff] }
  0x1e   :  { %618 = vmatprep.mubr.f32.mxu0 %v6676_v3  ;;  %5115 = vmatprep.subr.msk.mxu1 %vm375_vm0, %v110_v32  ;;  %v149_v10 = vld [vmem:[%s8921_s6 + $0x130] sm:$0xff]  ;;  %v6420_v12 = vpack.i.bf16 %v117_v7, %v133_v8  ;;  %v134_v14 = vld [vmem:[%s8921_s6 + $0xb8] sm:$0xff]  ;;  %v255_v19 = vld [vmem:[%s8922_s5 + $0x80] sm:$0xff] }
  0x1f   :  { %5112 = vmatpush1.msk.msra.mxu0 %vm375_vm0, %v107_v35  ;;  %695 = vmatprep.mubr.f32.mxu1 %v6676_v3  ;;  %v165_v11 = vld [vmem:[%s8921_s6 + $0x1b0] sm:$0xff]  ;;  %v150_v16 = vld [vmem:[%s8921_s6 + $0x138] sm:$0xff]  ;;  %v256_v20 = vld [vmem:[%s8922_s5 + $0x88] sm:$0xff]  ;;  %v6422_v22 = vpack.i.bf16 %v118_v13, %v134_v14 }
  0x20   :  { %5113 = vmatmul.mubr.msk.f32.vlgmr.msra.gmra.mrb[4].mxu0 %vm368_vm1, %v85_v17  ;;  %5116 = vmatpush1.msk.msra.mxu1 %vm375_vm0, %v109_v38  ;;  %v6457_v15 = vpack.i.bf16 %v149_v10, %v165_v11  ;;  %v287_v21 = vld [vmem:[%s8922_s5 + $0x180] sm:$0xff]  ;;  %v5935_v23 = vpack.c.bf16 %v256_v20, %v255_v19  ;;  %v288_v24 = vld [vmem:[%s8922_s5 + $0x188] sm:$0xff]  ;;  %v257_v37 = vld [vmem:[%s8922_s5 + $0x90] sm:$0xff] }
  0x21   :  { %5117 = vmatmul.mubr.msk.f32.vlgmr.msra.gmra.mrb[4].mxu1 %vm368_vm1, %v85_v17  ;;  %624 = vmatprep.mubr.f32.mxu0 %v6676_v3  ;;  %v166_v17 = vld [vmem:[%s8921_s6 + $0x1b8] sm:$0xff]  ;;  %v239_v25 = vld [vmem:[%s8922_s5] sm:$0xff]  ;;  %v240_v26 = vld [vmem:[%s8922_s5 + $0x8] sm:$0xff]  ;;  %v5967_v29 = vpack.c.bf16 %v288_v24, %v287_v21 }
  0x22   :  { %701 = vmatprep.mubr.f32.mxu1 %v6676_v3  ;;  %6409 = vxpose.xlu0.b32.start [1/16] (narrow) %v6408_v39, 8  ;;  %v135_v27 = vld [vmem:[%s8921_s6 + $0xc0] sm:$0xff]  ;;  %v6459_v28 = vpack.i.bf16 %v150_v16, %v166_v17  ;;  %v272_v32 = vld [vmem:[%s8922_s5 + $0x108] sm:$0xff]  ;;  %v258_v38 = vld [vmem:[%s8922_s5 + $0x98] sm:$0xff] }
  0x23   :  { %6446 = vxpose.xlu1.b32.start [1/16] (narrow) %v6445_v42, 8  ;;  %v271_v31 = vld [vmem:[%s8922_s5 + $0x100] sm:$0xff]  ;;  %5936 = vmatprep.subr.bf16.mxu0 %v5935_v23  ;;  %v120_v36 = vld [vmem:[%s8921_s6 + $0x48] sm:$0xff]  ;;  %v289_v39 = vld [vmem:[%s8922_s5 + $0x190] sm:$0xff]  ;;  %v6424_v40 = vpack.i.bf16 %v119_v18, %v135_v27  ;;  %v5939_v41 = vpack.c.bf16 %v258_v38, %v257_v37 }
  0x24   :  { %5114 = vmatmul.mubr.msk.f32.gmra.mrb[6].mxu0 %vm368_vm1, %v86_v30  ;;  %v151_v33 = vld [vmem:[%s8921_s6 + $0x140] sm:$0xff]  ;;  %v5969_v35 = vpack.c.bf16 %v272_v32, %v271_v31  ;;  %5968 = vmatprep.subr.bf16.mxu1 %v5967_v29  ;;  %v290_v42 = vld [vmem:[%s8922_s5 + $0x198] sm:$0xff]  ;;  %v241_v43 = vld [vmem:[%s8922_s5 + $0x10] sm:$0xff] }
  0x25   :  { %5118 = vmatmul.mubr.msk.f32.gmra.mrb[6].mxu1 %vm368_vm1, %v86_v30  ;;  %v5937_v30 = vpack.c.bf16 %v240_v26, %v239_v25  ;;  %v167_v34 = vld [vmem:[%s8921_s6 + $0x1c0] sm:$0xff]  ;;  %v242_v44 = vld [vmem:[%s8922_s5 + $0x18] sm:$0xff]  ;;  %v5971_v47 = vpack.c.bf16 %v290_v42, %v289_v39  ;;  %v273_v49 = vld [vmem:[%s8922_s5 + $0x110] sm:$0xff] }
  0x26   :  { %6411 = vxpose.xlu0.b32.cont [2/16] (narrow) %v6410_v45, 8  ;;  %5970 = vmatpush3.bf16.msra.mxu1 %v5969_v35  ;;  %v136_v45 = vld [vmem:[%s8921_s6 + $0xc8] sm:$0xff]  ;;  %v6461_v46 = vpack.i.bf16 %v151_v33, %v167_v34  ;;  %v274_v50 = vld [vmem:[%s8922_s5 + $0x118] sm:$0xff]  ;;  %v259_v55 = vld [vmem:[%s8922_s5 + $0xa0] sm:$0xff] }
  0x27   :  { %6448 = vxpose.xlu1.b32.cont [2/16] (narrow) %v6447_v48, 8  ;;  %5938 = vmatpush3.bf16.msra.mxu0 %v5937_v30  ;;  %v5941_v48 = vpack.c.bf16 %v242_v44, %v241_v43  ;;  %v168_v52 = vld [vmem:[%s8921_s6 + $0x1c8] sm:$0xff]  ;;  %v5973_v53 = vpack.c.bf16 %v274_v50, %v273_v49  ;;  %v6426_v58 = vpack.i.bf16 %v120_v36, %v136_v45  ;;  %v243_v61 = vld [vmem:[%s8922_s5 + $0x20] sm:$0xff]  ;;  %v169_v7 = vld [vmem:[%s8921_s6 + $0x1d0] sm:$0xff] }
  0x28   :  { %5940 = vmatprep.subr.bf16.mxu0 %v5939_v41  ;;  %5972 = vmatprep.subr.bf16.mxu1 %v5971_v47  ;;  %v260_v56 = vld [vmem:[%s8922_s5 + $0xa8] sm:$0xff]  ;;  %v275_v4 = vld [vmem:[%s8922_s5 + $0x120] sm:$0xff]  ;;  %v261_v10 = vld [vmem:[%s8922_s5 + $0xb0] sm:$0xff] }
  0x29   :  { %v5943_v59 = vpack.c.bf16 %v260_v56, %v259_v55  ;;  %v244_v62 = vld [vmem:[%s8922_s5 + $0x28] sm:$0xff]  ;;  %v262_v11 = vld [vmem:[%s8922_s5 + $0xb8] sm:$0xff]  ;;  %v245_v16 = vld [vmem:[%s8922_s5 + $0x30] sm:$0xff] }
  0x2a   :  { %6413 = vxpose.xlu0.b32.cont [3/16] (narrow) %v6412_v51, 8  ;;  %v152_v51 = vld [vmem:[%s8921_s6 + $0x148] sm:$0xff]  ;;  %5974 = vmatpush3.bf16.msra.mxu1 %v5973_v53  ;;  %v5947_v14 = vpack.c.bf16 %v262_v11, %v261_v10  ;;  %v246_v17 = vld [vmem:[%s8922_s5 + $0x38] sm:$0xff]  ;;  %v123_v27 = vld [vmem:[%s8921_s6 + $0x60] sm:$0xff] }
  0x2b   :  { %6450 = vxpose.xlu1.b32.cont [3/16] (narrow) %v6449_v54, 8  ;;  %v121_v54 = vld [vmem:[%s8921_s6 + $0x50] sm:$0xff]  ;;  %5942 = vmatpush3.bf16.msra.mxu0 %v5941_v48  ;;  %v6463_v0 = vpack.i.bf16 %v152_v51, %v168_v52  ;;  %v276_v5 = vld [vmem:[%s8922_s5 + $0x128] sm:$0xff]  ;;  %v138_v18 = vld [vmem:[%s8921_s6 + $0xd8] sm:$0xff]  ;;  %v5949_v21 = vpack.c.bf16 %v246_v17, %v245_v16 }
  0x2c   :  { %5944 = vmatprep.subr.bf16.mxu0 %v5943_v59  ;;  %v5977_v8 = vpack.c.bf16 %v276_v5, %v275_v4  ;;  %v278_v23 = vld [vmem:[%s8922_s5 + $0x138] sm:$0xff]  ;;  %v264_v29 = vld [vmem:[%s8922_s5 + $0xc8] sm:$0xff]  ;;  %v295_v30 = vld [vmem:[%s8922_s5 + $0x1c0] sm:$0xff] }
  0x2d   :  { %v154_v24 = vld [vmem:[%s8921_s6 + $0x158] sm:$0xff]  ;;  %v296_v33 = vld [vmem:[%s8922_s5 + $0x1c8] sm:$0xff]  ;;  %v247_v34 = vld [vmem:[%s8922_s5 + $0x40] sm:$0xff] }
  0x2e   :  { %6415 = vxpose.xlu0.b32.cont [4/16] (narrow) %v6414_v57, 8  ;;  %v291_v57 = vld [vmem:[%s8922_s5 + $0x1a0] sm:$0xff]  ;;  %v170_v25 = vld [vmem:[%s8921_s6 + $0x1d8] sm:$0xff]  ;;  %v248_v35 = vld [vmem:[%s8922_s5 + $0x48] sm:$0xff]  ;;  %v5983_v38 = vpack.c.bf16 %v296_v33, %v295_v30 }
  0x2f   :  { %6452 = vxpose.xlu1.b32.cont [4/16] (narrow) %v6451_v60, 8  ;;  %v292_v60 = vld [vmem:[%s8922_s5 + $0x1a8] sm:$0xff]  ;;  %v139_v36 = vld [vmem:[%s8921_s6 + $0xe0] sm:$0xff]  ;;  %v6467_v37 = vpack.i.bf16 %v154_v24, %v170_v25  ;;  %v5953_v39 = vpack.c.bf16 %v248_v35, %v247_v34  ;;  %v266_v47 = vld [vmem:[%s8922_s5 + $0xd8] sm:$0xff] }
  0x30   :  { %v5975_v1 = vpack.c.bf16 %v292_v60, %v291_v57  ;;  %v280_v41 = vld [vmem:[%s8922_s5 + $0x148] sm:$0xff]  ;;  %v155_v42 = vld [vmem:[%s8921_s6 + $0x160] sm:$0xff]  ;;  %v297_v48 = vld [vmem:[%s8922_s5 + $0x1d0] sm:$0xff]  ;;  %v6432_v49 = vpack.i.bf16 %v123_v27, %v139_v36 }
  0x31   :  { %v171_v43 = vld [vmem:[%s8921_s6 + $0x1e0] sm:$0xff]  ;;  %v124_v45 = vld [vmem:[%s8921_s6 + $0x68] sm:$0xff]  ;;  %v298_v51 = vld [vmem:[%s8922_s5 + $0x1d8] sm:$0xff] }
  0x32   :  { %6417 = vxpose.xlu0.b32.cont [5/16] (narrow) %v6416_v63, 8  ;;  %v137_v63 = vld [vmem:[%s8921_s6 + $0xd0] sm:$0xff]  ;;  %5976 = vmatprep.subr.bf16.mxu1 %v5975_v1  ;;  %v250_v53 = vld [vmem:[%s8922_s5 + $0x58] sm:$0xff]  ;;  %v6469_v55 = vpack.i.bf16 %v155_v42, %v171_v43  ;;  %v5987_v56 = vpack.c.bf16 %v298_v51, %v297_v48  ;;  %v156_v60 = vld [vmem:[%s8921_s6 + $0x168] sm:$0xff] }
  0x33   :  { %6454 = vxpose.xlu1.b32.cont [5/16] (narrow) %v6453_v2, 8  ;;  %v5945_v2 = vpack.c.bf16 %v244_v62, %v243_v61  ;;  %v6428_v13 = vpack.i.bf16 %v121_v54, %v137_v63  ;;  %5978 = vmatpush3.bf16.msra.mxu1 %v5977_v8  ;;  %v249_v52 = vld [vmem:[%s8922_s5 + $0x50] sm:$0xff]  ;;  %v140_v54 = vld [vmem:[%s8921_s6 + $0xe8] sm:$0xff]  ;;  %v282_v59 = vld [vmem:[%s8922_s5 + $0x158] sm:$0xff] }
  0x34   :  { %v5957_v57 = vpack.c.bf16 %v250_v53, %v249_v52  ;;  %v172_v61 = vld [vmem:[%s8921_s6 + $0x1e8] sm:$0xff]  ;;  %v125_v63 = vld [vmem:[%s8921_s6 + $0x70] sm:$0xff]  ;;  %v267_v1 = vld [vmem:[%s8922_s5 + $0xe0] sm:$0xff]  ;;  %v6434_v5 = vpack.i.bf16 %v124_v45, %v140_v54 }
  0x35   :  { %5946 = vmatpush3.bf16.msra.mxu0 %v5945_v2  ;;  %v268_v2 = vld [vmem:[%s8922_s5 + $0xe8] sm:$0xff]  ;;  %v299_v4 = vld [vmem:[%s8922_s5 + $0x1e0] sm:$0xff]  ;;  %v6471_v10 = vpack.i.bf16 %v156_v60, %v172_v61  ;;  %v157_v11 = vld [vmem:[%s8921_s6 + $0x170] sm:$0xff] }
  0x36   :  { %6419 = vxpose.xlu0.b32.cont [6/16] (narrow) %v6418_v6, 8  ;;  %v153_v6 = vld [vmem:[%s8921_s6 + $0x150] sm:$0xff]  ;;  %5948 = vmatprep.subr.bf16.mxu0 %v5947_v14  ;;  %v251_v8 = vld [vmem:[%s8922_s5 + $0x60] sm:$0xff]  ;;  %v142_v30 = vld [vmem:[%s8921_s6 + $0xf8] sm:$0xff] }
  0x37   :  { %6456 = vxpose.xlu1.b32.cont [6/16] (narrow) %v6455_v9, 8  ;;  %v122_v9 = vld [vmem:[%s8921_s6 + $0x58] sm:$0xff]  ;;  %v6465_v19 = vpack.i.bf16 %v153_v6, %v169_v7  ;;  %v5959_v6 = vpack.c.bf16 %v268_v2, %v267_v1  ;;  %v300_v7 = vld [vmem:[%s8922_s5 + $0x1e8] sm:$0xff]  ;;  %v283_v14 = vld [vmem:[%s8922_s5 + $0x160] sm:$0xff] }
  0x38   :  { %v6430_v31 = vpack.i.bf16 %v122_v9, %v138_v18  ;;  %v252_v9 = vld [vmem:[%s8922_s5 + $0x68] sm:$0xff]  ;;  %v173_v16 = vld [vmem:[%s8921_s6 + $0x1f0] sm:$0xff]  ;;  %v158_v34 = vld [vmem:[%s8921_s6 + $0x178] sm:$0xff] }
  0x39   :  { %5950 = vmatpush3.bf16.msra.mxu0 %v5949_v21  ;;  %v269_v18 = vld [vmem:[%s8922_s5 + $0xf0] sm:$0xff]  ;;  %v174_v35 = vld [vmem:[%s8921_s6 + $0x1f8] sm:$0xff]  ;;  %v176_v43 = vld [vmem:[%s8921_s6 + $0x208] sm:$0xff] }
  0x3a   :  { %6421 = vxpose.xlu0.b32.cont [7/16] (narrow) %v6420_v12, 8  ;;  %v293_v12 = vld [vmem:[%s8922_s5 + $0x1b0] sm:$0xff]  ;;  %v179_v61 = vld [vmem:[%s8921_s6 + $0x220] sm:$0xff]  ;;  %v320_v1 = vld [vmem:[%s8922_s5 + $0x288] sm:$0xff] }
  0x3b   :  { %6458 = vxpose.xlu1.b32.cont [7/16] (narrow) %v6457_v15, 8  ;;  %v294_v15 = vld [vmem:[%s8922_s5 + $0x1b8] sm:$0xff]  ;;  %v301_v21 = vld [vmem:[%s8922_s5 + $0x1f0] sm:$0xff]  ;;  %v351_v2 = vld [vmem:[%s8922_s5 + $0x380] sm:$0xff] }
  0x3c   :  { %v5979_v20 = vpack.c.bf16 %v294_v15, %v293_v12  ;;  %v5991_v12 = vpack.c.bf16 %v300_v7, %v299_v4  ;;  %v284_v15 = vld [vmem:[%s8922_s5 + $0x168] sm:$0xff]  ;;  %v285_v27 = vld [vmem:[%s8922_s5 + $0x170] sm:$0xff]  ;;  %v211_v4 = vld [vmem:[%s8921_s6 + $0x320] sm:$0xff] }
  0x3d   :  { %v5993_v17 = vpack.c.bf16 %v284_v15, %v283_v14  ;;  %v209_v52 = vld [vmem:[%s8921_s6 + $0x310] sm:$0xff]  ;;  %v352_v7 = vld [vmem:[%s8922_s5 + $0x388] sm:$0xff] }
  0x3e   :  { %6423 = vxpose.xlu0.b32.cont [8/16] (narrow) %v6422_v22, 8  ;;  %v277_v22 = vld [vmem:[%s8922_s5 + $0x130] sm:$0xff]  ;;  %5980 = vmatprep.subr.bf16.mxu1 %v5979_v20  ;;  %v228_v14 = vld [vmem:[%s8921_s6 + $0x3a8] sm:$0xff] }
  0x3f   :  { %6460 = vxpose.xlu1.b32.cont [8/16] (narrow) %v6459_v28, 8  ;;  %v5981_v26 = vpack.c.bf16 %v278_v23, %v277_v22  ;;  %v263_v28 = vld [vmem:[%s8922_s5 + $0xc0] sm:$0xff]  ;;  %v302_v22 = vld [vmem:[%s8922_s5 + $0x1f8] sm:$0xff]  ;;  %v253_v23 = vld [vmem:[%s8922_s5 + $0x70] sm:$0xff] }
  0x40   :  { %v5951_v32 = vpack.c.bf16 %v264_v29, %v263_v28  ;;  %v5995_v25 = vpack.c.bf16 %v302_v22, %v301_v21  ;;  %v286_v28 = vld [vmem:[%s8922_s5 + $0x178] sm:$0xff]  ;;  %v225_v53 = vld [vmem:[%s8921_s6 + $0x390] sm:$0xff] }
  0x41   :  { %5982 = vmatpush3.bf16.msra.mxu1 %v5981_v26  ;;  %v254_v26 = vld [vmem:[%s8922_s5 + $0x78] sm:$0xff]  ;;  %v5997_v33 = vpack.c.bf16 %v286_v28, %v285_v27  ;;  %v183_v28 = vld [vmem:[%s8921_s6 + $0x240] sm:$0xff] }
  0x42   :  { %6425 = vxpose.xlu0.b32.cont [9/16] (narrow) %v6424_v40, 8  ;;  %v279_v40 = vld [vmem:[%s8922_s5 + $0x140] sm:$0xff]  ;;  %5952 = vmatprep.subr.bf16.mxu0 %v5951_v32  ;;  %v126_v29 = vld [vmem:[%s8921_s6 + $0x78] sm:$0xff]  ;;  %v5965_v32 = vpack.c.bf16 %v254_v26, %v253_v23 }
  0x43   :  { %6462 = vxpose.xlu1.b32.cont [9/16] (narrow) %v6461_v46, 8  ;;  %v5985_v44 = vpack.c.bf16 %v280_v41, %v279_v40  ;;  %5984 = vmatprep.subr.bf16.mxu1 %v5983_v38  ;;  %v265_v46 = vld [vmem:[%s8922_s5 + $0xd0] sm:$0xff]  ;;  %v6438_v36 = vpack.i.bf16 %v126_v29, %v142_v30  ;;  %v191_v38 = vld [vmem:[%s8921_s6 + $0x280] sm:$0xff]  ;;  %v182_v22 = vld [vmem:[%s8921_s6 + $0x238] sm:$0xff] }
  0x44   :  { %5954 = vmatpush3.bf16.msra.mxu0 %v5953_v39  ;;  %v5955_v50 = vpack.c.bf16 %v266_v47, %v265_v46  ;;  %v6475_v39 = vpack.i.bf16 %v158_v34, %v174_v35  ;;  %v207_v40 = vld [vmem:[%s8921_s6 + $0x300] sm:$0xff]  ;;  %v208_v46 = vld [vmem:[%s8921_s6 + $0x308] sm:$0xff]  ;;  %v198_v23 = vld [vmem:[%s8921_s6 + $0x2b8] sm:$0xff] }
  0x45   :  { %5986 = vmatpush3.bf16.msra.mxu1 %v5985_v44  ;;  %v223_v41 = vld [vmem:[%s8921_s6 + $0x380] sm:$0xff]  ;;  %v192_v44 = vld [vmem:[%s8921_s6 + $0x288] sm:$0xff]  ;;  %v230_v26 = vld [vmem:[%s8921_s6 + $0x3b8] sm:$0xff]  ;;  %v6496_v27 = vpack.i.bf16 %v182_v22, %v198_v23 }
  0x46   :  { %6427 = vxpose.xlu0.b32.cont [10/16] (narrow) %v6426_v58, 8  ;;  %v281_v58 = vld [vmem:[%s8922_s5 + $0x150] sm:$0xff]  ;;  %5956 = vmatprep.subr.bf16.mxu0 %v5955_v50  ;;  %v6519_v45 = vpack.i.bf16 %v207_v40, %v223_v41  ;;  %v224_v47 = vld [vmem:[%s8921_s6 + $0x388] sm:$0xff]  ;;  %v6484_v48 = vpack.i.bf16 %v176_v43, %v192_v44  ;;  %v199_v29 = vld [vmem:[%s8921_s6 + $0x2c0] sm:$0xff] }
  0x47   :  { %6464 = vxpose.xlu1.b32.cont [10/16] (narrow) %v6463_v0, 8  ;;  %v5989_v62 = vpack.c.bf16 %v282_v59, %v281_v58  ;;  %v141_v0 = vld [vmem:[%s8921_s6 + $0xf0] sm:$0xff]  ;;  %5988 = vmatprep.subr.bf16.mxu1 %v5987_v56  ;;  %v6521_v51 = vpack.i.bf16 %v208_v46, %v224_v47  ;;  %v194_v56 = vld [vmem:[%s8921_s6 + $0x298] sm:$0xff]  ;;  %v184_v34 = vld [vmem:[%s8921_s6 + $0x248] sm:$0xff] }
  0x48   :  { %5958 = vmatpush3.bf16.msra.mxu0 %v5957_v57  ;;  %v6436_v24 = vpack.i.bf16 %v125_v63, %v141_v0  ;;  %v193_v50 = vld [vmem:[%s8921_s6 + $0x290] sm:$0xff]  ;;  %v6523_v57 = vpack.i.bf16 %v209_v52, %v225_v53  ;;  %v210_v58 = vld [vmem:[%s8921_s6 + $0x318] sm:$0xff]  ;;  %v319_v0 = vld [vmem:[%s8922_s5 + $0x280] sm:$0xff] }
  0x49   :  { %5990 = vmatpush3.bf16.msra.mxu1 %v5989_v62  ;;  %5960 = vmatprep.subr.bf16.mxu0 %v5959_v6  ;;  %v226_v59 = vld [vmem:[%s8921_s6 + $0x398] sm:$0xff]  ;;  %v195_v62 = vld [vmem:[%s8921_s6 + $0x2a0] sm:$0xff]  ;;  %v5999_v6 = vpack.c.bf16 %v320_v1, %v319_v0  ;;  %v200_v35 = vld [vmem:[%s8921_s6 + $0x2c8] sm:$0xff] }
  0x4a   :  { %6429 = vxpose.xlu0.b32.cont [11/16] (narrow) %v6428_v13, 8  ;;  %v5961_v13 = vpack.c.bf16 %v252_v9, %v251_v8  ;;  %5992 = vmatprep.subr.bf16.mxu1 %v5991_v12  ;;  %v6525_v63 = vpack.i.bf16 %v210_v58, %v226_v59  ;;  %v6031_v8 = vpack.c.bf16 %v352_v7, %v351_v2  ;;  %v185_v40 = vld [vmem:[%s8921_s6 + $0x250] sm:$0xff]  ;;  %v186_v46 = vld [vmem:[%s8921_s6 + $0x258] sm:$0xff]  ;;  %v187_v52 = vld [vmem:[%s8921_s6 + $0x260] sm:$0xff] }
  0x4b   :  { %6466 = vxpose.xlu1.b32.cont [11/16] (narrow) %v6465_v19, 8  ;;  %v270_v19 = vld [vmem:[%s8922_s5 + $0xf8] sm:$0xff]  ;;  %v6490_v9 = vpack.i.bf16 %v179_v61, %v195_v62  ;;  %v201_v41 = vld [vmem:[%s8921_s6 + $0x2d0] sm:$0xff]  ;;  %v203_v53 = vld [vmem:[%s8921_s6 + $0x2e0] sm:$0xff] }
  0x4c   :  { %5962 = vmatpush3.bf16.msra.mxu0 %v5961_v13  ;;  %v5963_v20 = vpack.c.bf16 %v270_v19, %v269_v18  ;;  %v212_v13 = vld [vmem:[%s8921_s6 + $0x328] sm:$0xff]  ;;  %v213_v19 = vld [vmem:[%s8921_s6 + $0x330] sm:$0xff]  ;;  %v202_v47 = vld [vmem:[%s8921_s6 + $0x2d8] sm:$0xff] }
  0x4d   :  { %5994 = vmatpush3.bf16.msra.mxu1 %v5993_v17  ;;  %v197_v17 = vld [vmem:[%s8921_s6 + $0x2b0] sm:$0xff]  ;;  %v6529_v18 = vpack.i.bf16 %v212_v13, %v228_v14  ;;  %v188_v58 = vld [vmem:[%s8921_s6 + $0x268] sm:$0xff]  ;;  %v190_v7 = vld [vmem:[%s8921_s6 + $0x278] sm:$0xff] }
  0x4e   :  { %6431 = vxpose.xlu0.b32.cont [12/16] (narrow) %v6430_v31, 8  ;;  %v6473_v31 = vpack.i.bf16 %v157_v11, %v173_v16  ;;  %5964 = vmatprep.subr.bf16.mxu0 %v5963_v20  ;;  %v196_v11 = vld [vmem:[%s8921_s6 + $0x2a8] sm:$0xff]  ;;  %v181_v16 = vld [vmem:[%s8921_s6 + $0x230] sm:$0xff]  ;;  %v322_v23 = vld [vmem:[%s8922_s5 + $0x298] sm:$0xff] }
  0x4f   :  { %6468 = vxpose.xlu1.b32.cont [12/16] (narrow) %v6467_v37, 8  ;;  %5996 = vmatprep.subr.bf16.mxu1 %v5995_v25  ;;  %v175_v37 = vld [vmem:[%s8921_s6 + $0x200] sm:$0xff]  ;;  %v229_v20 = vld [vmem:[%s8921_s6 + $0x3b0] sm:$0xff]  ;;  %v6494_v21 = vpack.i.bf16 %v181_v16, %v197_v17  ;;  %v214_v25 = vld [vmem:[%s8921_s6 + $0x338] sm:$0xff] }
  0x50   :  { %5966 = vmatpush3.bf16.msra.mxu0 %v5965_v32  ;;  %v6482_v42 = vpack.i.bf16 %v175_v37, %v191_v38  ;;  %v6533_v30 = vpack.i.bf16 %v214_v25, %v230_v26  ;;  %v231_v32 = vld [vmem:[%s8921_s6 + $0x3c0] sm:$0xff]  ;;  %v216_v37 = vld [vmem:[%s8921_s6 + $0x348] sm:$0xff]  ;;  %v217_v43 = vld [vmem:[%s8921_s6 + $0x350] sm:$0xff] }
  0x51   :  { %5998 = vmatpush3.bf16.msra.mxu1 %v5997_v33  ;;  %6000 = vmatprep.subr.bf16.mxu0 %v5999_v6  ;;  %v6498_v33 = vpack.i.bf16 %v183_v28, %v199_v29  ;;  %v232_v38 = vld [vmem:[%s8921_s6 + $0x3c8] sm:$0xff]  ;;  %v233_v44 = vld [vmem:[%s8921_s6 + $0x3d0] sm:$0xff]  ;;  %v354_v25 = vld [vmem:[%s8922_s5 + $0x398] sm:$0xff] }
  0x52   :  { %6433 = vxpose.xlu0.b32.cont [13/16] (narrow) %v6432_v49, 8  ;;  %v177_v49 = vld [vmem:[%s8921_s6 + $0x210] sm:$0xff]  ;;  %6032 = vmatprep.subr.bf16.mxu1 %v6031_v8  ;;  %v204_v59 = vld [vmem:[%s8921_s6 + $0x2e8] sm:$0xff]  ;;  %v206_v8 = vld [vmem:[%s8921_s6 + $0x2f8] sm:$0xff] }
  0x53   :  { %6470 = vxpose.xlu1.b32.cont [13/16] (narrow) %v6469_v55, 8  ;;  %v6486_v54 = vpack.i.bf16 %v177_v49, %v193_v50  ;;  %v178_v55 = vld [vmem:[%s8921_s6 + $0x218] sm:$0xff]  ;;  %v220_v61 = vld [vmem:[%s8921_s6 + $0x368] sm:$0xff]  ;;  %v189_v0 = vld [vmem:[%s8921_s6 + $0x270] sm:$0xff] }
  0x54   :  { %v6488_v60 = vpack.i.bf16 %v178_v55, %v194_v56  ;;  %v218_v49 = vld [vmem:[%s8921_s6 + $0x358] sm:$0xff]  ;;  %v219_v55 = vld [vmem:[%s8921_s6 + $0x360] sm:$0xff]  ;;  %v236_v62 = vld [vmem:[%s8921_s6 + $0x3e8] sm:$0xff] }
  0x55   :  { %v234_v50 = vld [vmem:[%s8921_s6 + $0x3d8] sm:$0xff]  ;;  %v235_v56 = vld [vmem:[%s8921_s6 + $0x3e0] sm:$0xff]  ;;  %v205_v1 = vld [vmem:[%s8921_s6 + $0x2f0] sm:$0xff]  ;;  %v6545_v2 = vpack.i.bf16 %v220_v61, %v236_v62 }
  0x56   :  { %6435 = vxpose.xlu0.b32.cont [14/16] (narrow) %v6434_v5, 8  ;;  %v227_v5 = vld [vmem:[%s8921_s6 + $0x3a0] sm:$0xff]  ;;  %v6510_v6 = vpack.i.bf16 %v189_v0, %v205_v1  ;;  %v321_v22 = vld [vmem:[%s8922_s5 + $0x290] sm:$0xff]  ;;  %v358_v61 = vld [vmem:[%s8922_s5 + $0x3b8] sm:$0xff] }
  0x57   :  { %6472 = vxpose.xlu1.b32.cont [14/16] (narrow) %v6471_v10, 8  ;;  %v180_v10 = vld [vmem:[%s8921_s6 + $0x228] sm:$0xff]  ;;  %v6527_v12 = vpack.i.bf16 %v211_v4, %v227_v5  ;;  %v221_v4 = vld [vmem:[%s8921_s6 + $0x370] sm:$0xff] }
  0x58   :  { %v6492_v15 = vpack.i.bf16 %v180_v10, %v196_v11  ;;  %v237_v5 = vld [vmem:[%s8921_s6 + $0x3f0] sm:$0xff]  ;;  %v222_v10 = vld [vmem:[%s8921_s6 + $0x378] sm:$0xff] }
  0x59   :  { %v238_v11 = vld [vmem:[%s8921_s6 + $0x3f8] sm:$0xff] }
  0x5a   :  { %6437 = vxpose.xlu0.b32.cont [15/16] (narrow) %v6436_v24, 8  ;;  %v6531_v24 = vpack.i.bf16 %v213_v19, %v229_v20  ;;  %v6549_v13 = vpack.i.bf16 %v222_v10, %v238_v11  ;;  %v304_v19 = vld [vmem:[%s8922_s5 + $0x208] sm:$0xff]  ;;  %v335_v20 = vld [vmem:[%s8922_s5 + $0x300] sm:$0xff] }
  0x5b   :  { %6474 = vxpose.xlu1.b32.cont [15/16] (narrow) %v6473_v31, 8  ;;  %v215_v31 = vld [vmem:[%s8921_s6 + $0x340] sm:$0xff]  ;;  %v328_v11 = vld [vmem:[%s8922_s5 + $0x2c8] sm:$0xff] }
  0x5c   :  { %v327_v10 = vld [vmem:[%s8922_s5 + $0x2c0] sm:$0xff] }
  0x5e   :  { %6439 = vxpose.xlu0.b32.end [16/16] (narrow) %v6438_v36, 8  ;;  %v6535_v36 = vpack.i.bf16 %v215_v31, %v231_v32  ;;  %v6003_v31 = vpack.c.bf16 %v322_v23, %v321_v22  ;;  %v305_v32 = vld [vmem:[%s8922_s5 + $0x210] sm:$0xff]  ;;  %v6015_v22 = vpack.c.bf16 %v328_v11, %v327_v10  ;;  %v311_v23 = vld [vmem:[%s8922_s5 + $0x240] sm:$0xff]  ;;  %v318_v10 = vld [vmem:[%s8922_s5 + $0x278] sm:$0xff] }
  0x5f   :  { %6476 = vxpose.xlu1.b32.end [16/16] (narrow) %v6475_v39, 8  ;;  %v6500_v39 = vpack.i.bf16 %v184_v34, %v200_v35  ;;  %v337_v34 = vld [vmem:[%s8922_s5 + $0x310] sm:$0xff] }
  0x62   :  { %6483 = vxpose.xlu0.b32.start [1/16] (narrow) %v6482_v42, 8  ;;  %v6537_v42 = vpack.i.bf16 %v216_v37, %v232_v38  ;;  %v338_v37 = vld [vmem:[%s8922_s5 + $0x318] sm:$0xff]  ;;  %v323_v38 = vld [vmem:[%s8922_s5 + $0x2a0] sm:$0xff] }
  0x63   :  { %6520 = vxpose.xlu1.b32.start [1/16] (narrow) %v6519_v45, 8  ;;  %v6502_v45 = vpack.i.bf16 %v185_v40, %v201_v41  ;;  %v355_v40 = vld [vmem:[%s8922_s5 + $0x3a0] sm:$0xff]  ;;  %v356_v41 = vld [vmem:[%s8922_s5 + $0x3a8] sm:$0xff] }
  0x66   :  { %6485 = vxpose.xlu0.b32.cont [2/16] (narrow) %v6484_v48, 8  ;;  %v6539_v48 = vpack.i.bf16 %v217_v43, %v233_v44 }
  0x67   :  { %6522 = vxpose.xlu1.b32.cont [2/16] (narrow) %v6521_v51, 8  ;;  %v6504_v51 = vpack.i.bf16 %v186_v46, %v202_v47  ;;  %v6037_v47 = vpack.c.bf16 %v338_v37, %v337_v34  ;;  %v362_v37 = vld [vmem:[%s8922_s5 + $0x3d8] sm:$0xff] }
  0x6a   :  { %6487 = vxpose.xlu0.b32.cont [3/16] (narrow) %v6486_v54, 8  ;;  %v6541_v54 = vpack.i.bf16 %v218_v49, %v234_v50  ;;  %v307_v49 = vld [vmem:[%s8922_s5 + $0x220] sm:$0xff]  ;;  %v308_v50 = vld [vmem:[%s8922_s5 + $0x228] sm:$0xff] }
  0x6b   :  { %6524 = vxpose.xlu1.b32.cont [3/16] (narrow) %v6523_v57, 8  ;;  %v6506_v57 = vpack.i.bf16 %v187_v52, %v203_v53  ;;  %v6009_v62 = vpack.c.bf16 %v308_v50, %v307_v49  ;;  %v332_v49 = vld [vmem:[%s8922_s5 + $0x2e8] sm:$0xff]  ;;  %v363_v50 = vld [vmem:[%s8922_s5 + $0x3e0] sm:$0xff] }
  0x6e   :  { %6489 = vxpose.xlu0.b32.cont [4/16] (narrow) %v6488_v60, 8  ;;  %v6543_v60 = vpack.i.bf16 %v219_v55, %v235_v56  ;;  %v6039_v55 = vpack.c.bf16 %v356_v41, %v355_v40  ;;  %v340_v56 = vld [vmem:[%s8922_s5 + $0x328] sm:$0xff] }
  0x6f   :  { %6526 = vxpose.xlu1.b32.cont [4/16] (narrow) %v6525_v63, 8  ;;  %v6508_v63 = vpack.i.bf16 %v188_v58, %v204_v59  ;;  %v326_v58 = vld [vmem:[%s8922_s5 + $0x2b8] sm:$0xff] }
  0x72   :  { %6491 = vxpose.xlu0.b32.cont [5/16] (narrow) %v6490_v9, 8  ;;  %v6547_v9 = vpack.i.bf16 %v221_v4, %v237_v5  ;;  %v310_v4 = vld [vmem:[%s8922_s5 + $0x238] sm:$0xff]  ;;  %v341_v5 = vld [vmem:[%s8922_s5 + $0x330] sm:$0xff] }
  0x73   :  { %6528 = vxpose.xlu1.b32.cont [5/16] (narrow) %v6527_v12, 8  ;;  %v6512_v12 = vpack.i.bf16 %v190_v7, %v206_v8 }
  0x76   :  { %6493 = vxpose.xlu0.b32.cont [6/16] (narrow) %v6492_v15, 8 }
  0x77   :  { %6530 = vxpose.xlu1.b32.cont [6/16] (narrow) %v6529_v18, 8  ;;  %v303_v18 = vld [vmem:[%s8922_s5 + $0x200] sm:$0xff] }
  0x7a   :  { %6495 = vxpose.xlu0.b32.cont [7/16] (narrow) %v6494_v21, 8  ;;  %v336_v21 = vld [vmem:[%s8922_s5 + $0x308] sm:$0xff] }
  0x7b   :  { %6532 = vxpose.xlu1.b32.cont [7/16] (narrow) %v6531_v24, 8  ;;  %v353_v24 = vld [vmem:[%s8922_s5 + $0x390] sm:$0xff] }
  0x7e   :  { %6497 = vxpose.xlu0.b32.cont [8/16] (narrow) %v6496_v27, 8  ;;  %v6001_v27 = vpack.c.bf16 %v304_v19, %v303_v18  ;;  %v360_v18 = vld [vmem:[%s8922_s5 + $0x3c8] sm:$0xff] }
  0x7f   :  { %6534 = vxpose.xlu1.b32.cont [8/16] (narrow) %v6533_v30, 8  ;;  %v6033_v30 = vpack.c.bf16 %v336_v21, %v335_v20 }
  0x82   :  { %6499 = vxpose.xlu0.b32.cont [9/16] (narrow) %v6498_v33, 8  ;;  %v306_v33 = vld [vmem:[%s8922_s5 + $0x218] sm:$0xff] }
  0x83   :  { %6536 = vxpose.xlu1.b32.cont [9/16] (narrow) %v6535_v36, 8  ;;  %v6035_v36 = vpack.c.bf16 %v354_v25, %v353_v24  ;;  %v6005_v43 = vpack.c.bf16 %v306_v33, %v305_v32  ;;  %v312_v24 = vld [vmem:[%s8922_s5 + $0x248] sm:$0xff]  ;;  %v343_v25 = vld [vmem:[%s8922_s5 + $0x340] sm:$0xff]  ;;  %v330_v32 = vld [vmem:[%s8922_s5 + $0x2d8] sm:$0xff] }
  0x86   :  { %6501 = vxpose.xlu0.b32.cont [10/16] (narrow) %v6500_v39, 8  ;;  %v324_v39 = vld [vmem:[%s8922_s5 + $0x2a8] sm:$0xff] }
  0x87   :  { %6538 = vxpose.xlu1.b32.cont [10/16] (narrow) %v6537_v42, 8 }
  0x8a   :  { %6503 = vxpose.xlu0.b32.cont [11/16] (narrow) %v6502_v45, 8 }
  0x8b   :  { %6540 = vxpose.xlu1.b32.cont [11/16] (narrow) %v6539_v48, 8  ;;  %v6007_v48 = vpack.c.bf16 %v324_v39, %v323_v38  ;;  %v6017_v39 = vpack.c.bf16 %v312_v24, %v311_v23  ;;  %v6677_v23 = vmov 1   ;;  %v6678_v24 = vmov 0  }
  0x8e   :  { %6505 = vxpose.xlu0.b32.cont [12/16] (narrow) %v6504_v51, 8  ;;  %v339_v51 = vld [vmem:[%s8922_s5 + $0x320] sm:$0xff] }
  0x8f   :  { %6542 = vxpose.xlu1.b32.cont [12/16] (narrow) %v6541_v54, 8  ;;  %v6041_v0 = vpack.c.bf16 %v340_v56, %v339_v51  ;;  %v364_v51 = vld [vmem:[%s8922_s5 + $0x3e8] sm:$0xff] }
  0x92   :  { %6507 = vxpose.xlu0.b32.cont [13/16] (narrow) %v6506_v57, 8  ;;  %v325_v57 = vld [vmem:[%s8922_s5 + $0x2b0] sm:$0xff] }
  0x93   :  { %6544 = vxpose.xlu1.b32.cont [13/16] (narrow) %v6543_v60, 8  ;;  %v357_v60 = vld [vmem:[%s8922_s5 + $0x3b0] sm:$0xff]  ;;  %v6011_v1 = vpack.c.bf16 %v326_v58, %v325_v57  ;;  %v315_v57 = vld [vmem:[%s8922_s5 + $0x260] sm:$0xff]  ;;  %v316_v58 = vld [vmem:[%s8922_s5 + $0x268] sm:$0xff] }
  0x94   :  { %v6043_v8 = vpack.c.bf16 %v358_v61, %v357_v60  ;;  %v347_v60 = vld [vmem:[%s8922_s5 + $0x360] sm:$0xff]  ;;  %v6055_v61 = vpack.c.bf16 %v364_v51, %v363_v50 }
  0x96   :  { %6509 = vxpose.xlu0.b32.cont [14/16] (narrow) %v6508_v63, 8 }
  0x97   :  { %6546 = vxpose.xlu1.b32.cont [14/16] (narrow) %v6545_v2, 8  ;;  %v309_v2 = vld [vmem:[%s8922_s5 + $0x230] sm:$0xff] }
  0x98   :  { %v6013_v19 = vpack.c.bf16 %v310_v4, %v309_v2  ;;  %v365_v2 = vld [vmem:[%s8922_s5 + $0x3f0] sm:$0xff]  ;;  %v366_v4 = vld [vmem:[%s8922_s5 + $0x3f8] sm:$0xff] }
  0x99   :  { %v6059_v11 = vpack.c.bf16 %v366_v4, %v365_v2 }
  0x9a   :  { %6511 = vxpose.xlu0.b32.cont [15/16] (narrow) %v6510_v6, 8 }
  0x9b   :  { %6548 = vxpose.xlu1.b32.cont [15/16] (narrow) %v6547_v9, 8  ;;  %v342_v9 = vld [vmem:[%s8922_s5 + $0x338] sm:$0xff] }
  0x9c   :  { %v6045_v21 = vpack.c.bf16 %v342_v9, %v341_v5  ;;  %v6025_v5 = vpack.c.bf16 %v316_v58, %v315_v57  ;;  %v317_v9 = vld [vmem:[%s8922_s5 + $0x270] sm:$0xff] }
  0x9e   :  { %6513 = vxpose.xlu0.b32.end [16/16] (narrow) %v6512_v12, 8 }
  0x9f   :  { %6550 = vxpose.xlu1.b32.end [16/16] (narrow) %v6549_v13, 8  ;;  %v359_v13 = vld [vmem:[%s8922_s5 + $0x3c0] sm:$0xff] }
  0xa2   :  { %v7512_v14 = vpop.trf.xlu0 }
  0xa3   :  { %v7514_v15 = vpop.trf.xlu1 }
  0xbd   :  { %6557 = vset.pattern.permute.xlu1 %v6677_v23 }
  0xc7   :  { %6556 = vset.pattern.permute.xlu0 %v6678_v24 }
  0xe2   :  { %v7516_v16 = vpop.trf.xlu0 }
  0xe3   :  { %v7518_v17 = vpop.trf.xlu1 }
  0xeb   :  { %v466_v26 = vpop.f32.mrb[0].mxu0 }
  0xec   :  { %v543_v28 = vpop.f32.mrb[0].mxu1  ;;  %v468_v29 = vpop.f32.mrb[1].mxu0 }
  0xed   :  { %v545_v35 = vpop.f32.mrb[1].mxu1  ;;  %772 = vmatprep.mubr.f32.mxu0 %v468_v29 }
  0xee   :  { %847 = vmatprep.mubr.f32.mxu1 %v545_v35  ;;  %773 = vmatmul.mubr.f32.vlgmr.msra.gmra.mrb[8].mxu0 %v466_v26 }
  0xef   :  { %848 = vmatmul.mubr.f32.vlgmr.msra.gmra.mrb[8].mxu1 %v543_v28  ;;  %6002 = vmatpush3.bf16.msra.mxu0 %v6001_v27  ;;  %v472_v42 = vpop.f32.mrb[2].mxu0 }
  0xf0   :  { %6034 = vmatpush3.bf16.msra.mxu1 %v6033_v30  ;;  %v7568_v44 = vpack.c.bf16 %v472_v42, %v466_v26  ;;  %v549_v45 = vpop.f32.mrb[2].mxu1  ;;  %v474_v46 = vpop.f32.mrb[3].mxu0  ;;  %6004 = vmatprep.subr.bf16.mxu0 %v6003_v31  ;;  %v344_v30 = vld [vmem:[%s8922_s5 + $0x348] sm:$0xff]  ;;  %v329_v31 = vld [vmem:[%s8922_s5 + $0x2d0] sm:$0xff] }
  0xf1   :  { %v7579_v52 = vpack.c.bf16 %v549_v45, %v543_v28  ;;  %v7581_v53 = vpack.c.bf16 %v474_v46, %v468_v29  ;;  %v551_v54 = vpop.f32.mrb[3].mxu1  ;;  %6036 = vmatprep.subr.bf16.mxu1 %v6035_v36  ;;  %777 = vmatprep.mubr.f32.mxu0 %v474_v46  ;;  %v6047_v29 = vpack.c.bf16 %v360_v18, %v359_v13  ;;  %v361_v36 = vld [vmem:[%s8922_s5 + $0x3d0] sm:$0xff]  ;;  %v350_v13 = vld [vmem:[%s8922_s5 + $0x378] sm:$0xff] }
  0xf2   :  { %v7592_v59 = vpack.c.bf16 %v551_v54, %v545_v35  ;;  %852 = vmatprep.mubr.f32.mxu1 %v551_v54  ;;  %778 = vmatmul.mubr.f32.gmra.mrb[10].mxu0 %v472_v42  ;;  %v6049_v40 = vpack.c.bf16 %v344_v30, %v343_v25  ;;  %v6019_v41 = vpack.c.bf16 %v330_v32, %v329_v31  ;;  %v313_v42 = vld [vmem:[%s8922_s5 + $0x250] sm:$0xff] }
  0xf3   :  { %6006 = vmatpush3.bf16.msra.mxu0 %v6005_v43  ;;  %853 = vmatmul.mubr.f32.gmra.mrb[10].mxu1 %v549_v45  ;;  %v7600_v63 = vpop.f32.mrb[4].mxu0  ;;  %v314_v43 = vld [vmem:[%s8922_s5 + $0x258] sm:$0xff]  ;;  %v345_v45 = vld [vmem:[%s8922_s5 + $0x350] sm:$0xff]  ;;  %v6051_v46 = vpack.c.bf16 %v362_v37, %v361_v36  ;;  %v6029_v18 = vpack.c.bf16 %v318_v10, %v317_v9 }
  0xf4   :  { %6038 = vmatpush3.bf16.msra.mxu1 %v6037_v47  ;;  %6008 = vmatprep.subr.bf16.mxu0 %v6007_v48  ;;  %v622_v6 = vpop.f32.mrb[5].mxu0  ;;  %v7611_v7 = vpop.f32.mrb[4].mxu1  ;;  %v346_v47 = vld [vmem:[%s8922_s5 + $0x358] sm:$0xff]  ;;  %v331_v48 = vld [vmem:[%s8922_s5 + $0x2e0] sm:$0xff]  ;;  %v6021_v54 = vpack.c.bf16 %v314_v43, %v313_v42 }
  0xf5   :  { %6040 = vmatprep.subr.bf16.mxu1 %v6039_v55  ;;  %v699_v12 = vpop.f32.mrb[5].mxu1  ;;  %922 = vmatprep.mubr.f32.mxu0 %v622_v6  ;;  %v6053_v55 = vpack.c.bf16 %v346_v47, %v345_v45  ;;  %v6023_v56 = vpack.c.bf16 %v332_v49, %v331_v48 }
  0xf6   :  { %997 = vmatprep.mubr.f32.mxu1 %v699_v12 }
  0xf7   :  { %6010 = vmatpush3.bf16.msra.mxu0 %v6009_v62  ;;  %v7628_v20 = vpop.f32.mrb[6].mxu0  ;;  %v348_v62 = vld [vmem:[%s8922_s5 + $0x368] sm:$0xff] }
  0xf8   :  { %6042 = vmatpush3.bf16.msra.mxu1 %v6041_v0  ;;  %6012 = vmatprep.subr.bf16.mxu0 %v6011_v1  ;;  %v7641_v26 = vpack.c.bf16 %v7628_v20, %v7600_v63  ;;  %v7643_v27 = vpop.f32.mrb[7].mxu0  ;;  %v7645_v28 = vpop.f32.mrb[6].mxu1  ;;  %v333_v0 = vld [vmem:[%s8922_s5 + $0x2f0] sm:$0xff]  ;;  %v334_v1 = vld [vmem:[%s8922_s5 + $0x2f8] sm:$0xff] }
  0xf9   :  { %6044 = vmatprep.subr.bf16.mxu1 %v6043_v8  ;;  %v7657_v33 = vpack.c.bf16 %v7643_v27, %v622_v6  ;;  %v7661_v34 = vpack.c.bf16 %v7645_v28, %v7611_v7  ;;  %v705_v35 = vpop.f32.mrb[7].mxu1  ;;  %v6057_v6 = vpack.c.bf16 %v348_v62, %v347_v60  ;;  %v6027_v8 = vpack.c.bf16 %v334_v1, %v333_v0 }
  0xfa   :  { %v7669_v38 = vpack.c.bf16 %v705_v35, %v699_v12  ;;  %v349_v12 = vld [vmem:[%s8922_s5 + $0x370] sm:$0xff]  ;;  %v6679_v60 = vmov 2   ;;  %v6681_v62 = vmov 5   ;;  %v6682_v0 = vmov 3  }
  0xfb   :  { %6014 = vmatpush3.bf16.msra.mxu0 %v6013_v19  ;;  %v6061_v19 = vpack.c.bf16 %v350_v13, %v349_v12  ;;  %v6683_v1 = vmov 7   ;;  %v7772_v13 = vld [vmem:[%s8923_s29] sm:$0xff] }
  0xfc   :  { %6046 = vmatpush3.bf16.msra.mxu1 %v6045_v21  ;;  %6016 = vmatprep.subr.bf16.mxu0 %v6015_v22  ;;  %v6441_v21 = vunpack.i.l.bf16 %v7512_v14  ;;  %v6481_v22 = vunpack.i.h.bf16 %v7514_v15  ;;  %vm1566_vm3 = vcmp.gt.f32.partialorder %v7772_v13, 0.0 }
  0xfd   :  { %6048 = vmatprep.subr.bf16.mxu1 %v6047_v29 }
  0xff   :  { %6018 = vmatpush3.bf16.msra.mxu0 %v6017_v39 }
 0x100   :  { %6050 = vmatpush3.bf16.msra.mxu1 %v6049_v40  ;;  %6020 = vmatprep.subr.bf16.mxu0 %v6019_v41 }
 0x101   :  { %6052 = vmatprep.subr.bf16.mxu1 %v6051_v46 }
 0x103   :  { %6022 = vmatpush3.bf16.msra.mxu0 %v6021_v54 }
 0x104   :  { %6054 = vmatpush3.bf16.msra.mxu1 %v6053_v55  ;;  %6024 = vmatprep.subr.bf16.mxu0 %v6023_v56 }
 0x105   :  { %6056 = vmatprep.subr.bf16.mxu1 %v6055_v61  ;;  %v6680_v61 = vmov 4  }
 0x107   :  { %6026 = vmatpush3.bf16.msra.mxu0 %v6025_v5  ;;  %v6684_v5 = vmov 6  }
 0x108   :  { %6058 = vmatpush3.bf16.msra.mxu1 %v6057_v6  ;;  %6028 = vmatprep.subr.bf16.mxu0 %v6027_v8  ;;  %v1554_v6 = vlaneseq }
 0x109   :  { %6060 = vmatprep.subr.bf16.mxu1 %v6059_v11 }
 0x10a   :  { %v7762_v8 = vshrl.u32 %v1554_v6, 7 }
 0x10b   :  { %6030 = vmatpush3.bf16.msra.mxu0 %v6029_v18 }
 0x10c   :  { %6062 = vmatpush3.bf16.msra.mxu1 %v6061_v19  ;;  %6064 = vmatprep.subr.bf16.mxu0 %v7581_v53  ;;  %v7765_v9 = vsub.s32 0, %v7762_v8  ;;  %v1684_v18 = vsub.s32 1, %v7762_v8  ;;  %v2184_v6 = vsub.s32 5, %v7762_v8 }
 0x10d   :  { %6080 = vmatprep.subr.bf16.mxu1 %v7568_v44 }
 0x10e   :  { %923 = vmatmul.mubr.f32.vlgmr.msra.gmra.mrb[12].mxu0 %v7600_v63  ;;  %v6444_v63 = vunpack.i.h.bf16 %v7512_v14  ;;  %v6518_v14 = vunpack.i.h.bf16 %v7516_v16 }
 0x10f   :  { %998 = vmatmul.mubr.f32.vlgmr.msra.gmra.mrb[12].mxu1 %v7611_v7  ;;  %927 = vmatprep.mubr.f32.mxu0 %v7643_v27  ;;  %v6478_v7 = vunpack.i.l.bf16 %v7514_v15  ;;  %v6555_v15 = vunpack.i.h.bf16 %v7518_v17 }
 0x110   :  { %6082 = vmatpush3.bf16.msra.mxu1 %v7568_v44  ;;  %1002 = vmatprep.mubr.f32.mxu1 %v705_v35 }
 0x111   :  { %6084 = vmatprep.subr.bf16.mxu1 %v7581_v53 }
 0x112   :  { %928 = vmatmul.mubr.f32.gmra.mrb[14].mxu0 %v7628_v20  ;;  %v6515_v20 = vunpack.i.l.bf16 %v7516_v16 }
 0x113   :  { %1003 = vmatmul.mubr.f32.gmra.mrb[14].mxu1 %v7645_v28  ;;  %1328 = vmatprep.mubr.f32.mxu0 %v6441_v21 }
 0x114   :  { %6066 = vmatpush1.bf16.xpose.msra.mxu0 %v7568_v44  ;;  %v6552_v44 = vunpack.i.l.bf16 %v7518_v17 }
 0x115   :  { %6068 = vmatprep.subr.bf16.mxu0 %v7592_v59 }
 0x11b   :  { %1329 = vmatmul.mubr.f32.vlgmr.msra.gmra.mrb[16].mxu0 %v6444_v63 }
 0x11c   :  { %6070 = vmatpush1.bf16.xpose.msra.mxu0 %v7579_v52  ;;  %1398 = vmatprep.mubr.f32.mxu0 %v6478_v7  ;;  %v1809_v7 = vsub.s32 2, %v7762_v8 }
 0x11d   :  { %6072 = vmatprep.subr.bf16.mxu0 %v7657_v33 }
 0x123   :  { %1399 = vmatmul.mubr.f32.vlgmr.msra.gmra.mrb[16].mxu0 %v6481_v22 }
 0x124   :  { %6074 = vmatpush1.bf16.xpose.msra.mxu0 %v7641_v26  ;;  %1468 = vmatprep.mubr.f32.mxu0 %v6515_v20 }
 0x125   :  { %6076 = vmatprep.subr.bf16.mxu0 %v7669_v38 }
 0x12b   :  { %1469 = vmatmul.mubr.f32.vlgmr.msra.gmra.mrb[16].mxu0 %v6518_v14 }
 0x12c   :  { %6078 = vmatpush1.bf16.xpose.msra.mxu0 %v7661_v34  ;;  %1538 = vmatprep.mubr.f32.mxu0 %v6552_v44 }
 0x12d   :  { %6108 = vmatprep.subr.bf16.mxu0 %v7669_v38 }
 0x133   :  { %1539 = vmatmul.mubr.f32.vlgmr.msra.gmra.mrb[16].mxu0 %v6555_v15 }
 0x134   :  { %6110 = vmatpush3.bf16.msra.mxu0 %v7669_v38 }
 0x1c1   :  { %v5220_v25 = vpop.f32.mrb[8].mxu0 }
 0x1c2   :  { %v5258_v16 = vpop.f32.mrb[8].mxu1  ;;  %v5221_v27 = vpop.f32.mrb[9].mxu0 }
 0x1c3   :  { %v5222_v28 = vadd.f32 %v5221_v27, %v5220_v25  ;;  %v5259_v29 = vpop.f32.mrb[9].mxu1 }
 0x1c4   :  { %v5260_v30 = vadd.f32 %v5259_v29, %v5258_v16 }
 0x1c5   :  { %v5223_v31 = vpop.f32.mrb[10].mxu0 }
 0x1c6   :  { %v850_v32 = vadd.f32 %v5260_v30, %v5222_v28  ;;  %v5261_v35 = vpop.f32.mrb[10].mxu1  ;;  %v5224_v36 = vpop.f32.mrb[11].mxu0 }
 0x1c7   :  { %v5225_v37 = vadd.f32 %v5224_v36, %v5223_v31  ;;  %v5262_v17 = vpop.f32.mrb[11].mxu1  ;;  %v7792_v31 = vld [vmem:[%s8923_s29 + $0x8] sm:$0xff]  ;;  %v1934_v36 = vsub.s32 3, %v7762_v8 }
 0x1c8   :  { %v5263_v39 = vadd.f32 %v5262_v17, %v5261_v35  ;;  %v2059_v35 = vsub.s32 4, %v7762_v8  ;;  %vm1567_vm7 = vcmp.gt.f32.partialorder %v7792_v31, 0.0 }
 0x1ca   :  { %v855_v40 = vadd.f32 %v5263_v39, %v5225_v37 }
 0x1e1   :  { %v5296_v38 = vpop.f32.mrb[12].mxu0 }
 0x1e2   :  { %v5334_v41 = vpop.f32.mrb[12].mxu1  ;;  %v5297_v42 = vpop.f32.mrb[13].mxu0 }
 0x1e3   :  { %v5298_v43 = vadd.f32 %v5297_v42, %v5296_v38  ;;  %v5335_v45 = vpop.f32.mrb[13].mxu1 }
 0x1e4   :  { %v5336_v46 = vadd.f32 %v5335_v45, %v5334_v41 }
 0x1e5   :  { %v925_v47 = vadd.f32 %v5298_v43, %v850_v32  ;;  %v5299_v48 = vpop.f32.mrb[14].mxu0 }
 0x1e6   :  { %v5300_v49 = vpop.f32.mrb[15].mxu0  ;;  %v5337_v50 = vpop.f32.mrb[14].mxu1 }
 0x1e7   :  { %v1000_v51 = vadd.f32 %v5336_v46, %v925_v47  ;;  %v5301_v54 = vadd.f32 %v5300_v49, %v5299_v48  ;;  %v5338_v55 = vpop.f32.mrb[15].mxu1 }
 0x1e8   :  { %v5339_v56 = vadd.f32 %v5338_v55, %v5337_v50 }
 0x1e9   :  { %v930_v57 = vadd.f32 %v5301_v54, %v855_v40  ;;  %1675 = vperm.xlu1 %6557, %v1000_v51   ;;  %1546 = vperm.xlu0 %6556, %v1000_v51  }
 0x1eb   :  { %v1005_v58 = vadd.f32 %v5339_v56, %v930_v57 }
 0x1ed   :  { %6558 = vset.pattern.permute.xlu1 %v6679_v60  ;;  %6562 = vset.pattern.permute.xlu0 %v6679_v60 }
 0x1ee   :  { %1800 = vperm.xlu1 %6558, %v1000_v51   ;;  %1804 = vperm.xlu0 %6562, %v1005_v58  }
 0x1f2   :  { %6559 = vset.pattern.permute.xlu1 %v6678_v24  ;;  %6563 = vset.pattern.permute.xlu0 %v6680_v61 }
 0x1f3   :  { %1551 = vperm.xlu1 %6559, %v1005_v58   ;;  %2050 = vperm.xlu0 %6563, %v1000_v51  }
 0x1f7   :  { %6560 = vset.pattern.permute.xlu1 %v6677_v23  ;;  %6568 = vset.pattern.permute.xlu0 %v6681_v62 }
 0x1f8   :  { %1679 = vperm.xlu1 %6560, %v1005_v58   ;;  %2179 = vperm.xlu0 %6568, %v1005_v58  }
 0x1fc   :  { %6561 = vset.pattern.permute.xlu1 %v6682_v0  ;;  %6569 = vset.pattern.permute.xlu0 %v6683_v1 }
 0x1fd   :  { %1925 = vperm.xlu1 %6561, %v1000_v51   ;;  %2429 = vperm.xlu0 %6569, %v1005_v58  }
 0x201   :  { %1929 = vperm.xlu1 %6561, %v1005_v58  }
 0x205   :  { %6564 = vset.pattern.permute.xlu1 %v6681_v62 }
 0x206   :  { %2175 = vperm.xlu1 %6564, %v1000_v51   ;;  %v7759_v2 = vpop.f32.mrb[16].mxu0 }
 0x207   :  { %v1542_v4 = vpop.f32.mrb[17].mxu0  ;;  %v1557_v10 = vrot.slane %v7759_v2, %v7765_v9  ;;  %v1685_v63 = vrot.slane %v7759_v2, %v1684_v18  ;;  %v1810_v25 = vrot.slane %v7759_v2, %v1809_v7  ;;  %v7804_v45 = vrot.slane %v7759_v2, %v2059_v35 }
 0x208   :  { %v1935_v50 = vrot.slane %v7759_v2, %v1934_v36 }
 0x20a   :  { %6565 = vset.pattern.permute.xlu1 %v6683_v1 }
 0x20b   :  { %2425 = vperm.xlu1 %6565, %v1000_v51  }
 0x20f   :  { %6566 = vset.pattern.permute.xlu1 %v6680_v61 }
 0x210   :  { %2054 = vperm.xlu1 %6566, %v1005_v58  }
 0x214   :  { %6567 = vset.pattern.permute.xlu1 %v6684_v5 }
 0x215   :  { %2300 = vperm.xlu1 %6567, %v1000_v51  }
 0x219   :  { %2304 = vperm.xlu1 %6567, %v1005_v58  }
 0x21d   :  { %6570 = vset.pattern.permute.xlu1 %v6678_v24 }
 0x268   :  { %v1676_v11 = vpop.permute.xlu1 %1675  ;;  %v1547_v12 = vpop.permute.xlu0 %1546 }
 0x269   :  { %v1558_v19 = vadd.f32 %v1557_v10, %v1547_v12  ;;  %v1686_v44 = vadd.f32 %v1685_v63, %v1676_v11  ;;  %v2434_v11 = vsub.s32 7, %v7762_v8 }
 0x26b   :  { %v1562_v21 = vmul.f32 0.2, %v1558_v19  ;;  %vm1560_vm2 = vcmp.gt.f32.partialorder %v1558_v19, 0.0  ;;  %v1690_v27 = vmul.f32 0.2, %v1686_v44  ;;  %vm1688_vm5 = vcmp.gt.f32.partialorder %v1686_v44, 0.0 }
 0x26d   :  { %v1801_v22 = vpop.permute.xlu1 %1800  ;;  %v1564_v20 = vsel %vm1560_vm2, %v1558_v19, %v1562_v21  ;;  %v1805_v23 = vpop.permute.xlu0 %1804  ;;  %v1692_v38 = vsel %vm1688_vm5, %v1686_v44, %v1690_v27 }
 0x26e   :  { %v7782_v14 = vsel %vm1566_vm3, %v1564_v20, -1e+30  ;;  %v1811_v28 = vadd.f32 %v1810_v25, %v1801_v22  ;;  %v1812_v29 = vadd.f32 %v1810_v25, %v1805_v23  ;;  %v7810_v48 = vsel %vm1566_vm3, %v1692_v38, -1e+30 }
 0x26f   :  { %v1571_v15 = vsel %vm1570_vm4, %v7782_v14, -inf  ;;  %v1696_v58 = vsel %vm1570_vm4, %v7810_v48, -inf  ;;  %v2435_v25 = vrot.slane %v7759_v2, %v2434_v11 }
 0x270   :  { %1572 = vmax.xlane.f32.xlu1 %v1571_v15  ;;  %v1815_v37 = vmul.f32 0.2, %v1811_v28  ;;  %v1816_v17 = vmul.f32 0.2, %v1812_v29  ;;  %vm1813_vm8 = vcmp.gt.f32.partialorder %v1811_v28, 0.0  ;;  %vm1814_vm9 = vcmp.gt.f32.partialorder %v1812_v29, 0.0 }
 0x271   :  { %v2185_v15 = vrot.slane %v7759_v2, %v2184_v6 }
 0x272   :  { %v1552_v16 = vpop.permute.xlu1 %1551  ;;  %v2051_v41 = vpop.permute.xlu0 %2050  ;;  %v1817_v51 = vsel %vm1813_vm8, %v1811_v28, %v1815_v37  ;;  %v1818_v54 = vsel %vm1814_vm9, %v1812_v29, %v1816_v17 }
 0x273   :  { %v1559_v30 = vadd.f32 %v1557_v10, %v1552_v16  ;;  %v2061_v49 = vadd.f32 %v7804_v45, %v2051_v41  ;;  %v7826_v0 = vsel %vm1566_vm3, %v1817_v51, -1e+30  ;;  %v7830_v1 = vsel %vm1567_vm7, %v1818_v54, -1e+30 }
 0x274   :  { %v1821_v19 = vsel %vm1570_vm4, %v7826_v0, -inf }
 0x275   :  { %v1563_v32 = vmul.f32 0.2, %v1559_v30  ;;  %vm1561_vm6 = vcmp.gt.f32.partialorder %v1559_v30, 0.0  ;;  %v2065_v4 = vmul.f32 0.2, %v2061_v49  ;;  %vm2063_vm12 = vcmp.gt.f32.partialorder %v2061_v49, 0.0 }
 0x277   :  { %v1680_v39 = vpop.permute.xlu1 %1679  ;;  %v1565_v40 = vsel %vm1561_vm6, %v1559_v30, %v1563_v32  ;;  %v2180_v61 = vpop.permute.xlu0 %2179  ;;  %v2067_v44 = vsel %vm2063_vm12, %v2061_v49, %v2065_v4 }
 0x278   :  { %v1687_v42 = vadd.f32 %v1685_v63, %v1680_v39  ;;  %v7799_v43 = vsel %vm1567_vm7, %v1565_v40, -1e+30  ;;  %v1824_v63 = vsel %vm1570_vm4, %v7830_v1, -inf  ;;  %v7856_v32 = vsel %vm1566_vm3, %v2067_v44, -1e+30 }
 0x279   :  { %v1574_v46 = vsel %vm1570_vm4, %v7799_v43, -inf  ;;  %v2071_v40 = vsel %vm1570_vm4, %v7856_v32, -inf }
 0x27a   :  { %v1691_v47 = vmul.f32 0.2, %v1687_v42  ;;  %1575 = vmax.xlane.f32.xlu0 %v1574_v46  ;;  %vm1689_vm10 = vcmp.gt.f32.partialorder %v1687_v42, 0.0 }
 0x27c   :  { %v1926_v55 = vpop.permute.xlu1 %1925  ;;  %v1693_v56 = vsel %vm1689_vm10, %v1687_v42, %v1691_v47  ;;  %v2430_v23 = vpop.permute.xlu0 %2429  ;;  %vm6686_vm10 = vmmov 0  }
 0x27d   :  { %v1936_v57 = vadd.f32 %v1935_v50, %v1926_v55  ;;  %v7820_v60 = vsel %vm1567_vm7, %v1693_v56, -1e+30  ;;  %v2437_v37 = vadd.f32 %v2435_v25, %v2430_v23  ;;  %v2309_v55 = vsub.s32 6, %v7762_v8 }
 0x27e   :  { %1697 = vmax.xlane.f32.xlu0 %v1696_v58  ;;  %v1699_v62 = vsel %vm1570_vm4, %v7820_v60, -inf }
 0x27f   :  { %v1940_v5 = vmul.f32 0.2, %v1936_v57  ;;  %1700 = vmax.xlane.f32.xlu1 %v1699_v62  ;;  %vm1938_vm11 = vcmp.gt.f32.partialorder %v1936_v57, 0.0  ;;  %v2441_v42 = vmul.f32 0.2, %v2437_v37  ;;  %vm2439_vm15 = vcmp.gt.f32.partialorder %v2437_v37, 0.0 }
 0x280   :  { %v1930_v10 = vpop.permute.xlu1 %1929 }
 0x281   :  { %v1937_v12 = vadd.f32 %v1935_v50, %v1930_v10  ;;  %v1942_v21 = vsel %vm1938_vm11, %v1936_v57, %v1940_v5  ;;  %v2443_v56 = vsel %vm2439_vm15, %v2437_v37, %v2441_v42  ;;  %v2310_v5 = vrot.slane %v7759_v2, %v2309_v55 }
 0x282   :  { %1822 = vmax.xlane.f32.xlu0 %v1821_v19  ;;  %v7840_v22 = vsel %vm1566_vm3, %v1942_v21, -1e+30  ;;  %v7878_v4 = vsel %vm1567_vm7, %v2443_v56, -1e+30  ;;  %vm3077_vm11 = vcmask 818176   ;;  %vm3520_vm15 = vcmask 654336  }
 0x283   :  { %v1941_v20 = vmul.f32 0.2, %v1937_v12  ;;  %1825 = vmax.xlane.f32.xlu1 %v1824_v63  ;;  %vm1939_vm13 = vcmp.gt.f32.partialorder %v1937_v12, 0.0  ;;  %v1946_v27 = vsel %vm1570_vm4, %v7840_v22, -inf  ;;  %v2449_v63 = vsel %vm1570_vm4, %v7878_v4, -inf  ;;  %vm6265_vm12 = vmpackc.low %vm3077_vm11, %vm3077_vm11 }
 0x285   :  { %v2176_v16 = vpop.permute.xlu1 %2175  ;;  %v1943_v28 = vsel %vm1939_vm13, %v1937_v12, %v1941_v20  ;;  %v2187_v12 = vadd.f32 %v2185_v15, %v2180_v61 }
 0x286   :  { %v2186_v29 = vadd.f32 %v2185_v15, %v2176_v16  ;;  %1947 = vmax.xlane.f32.xlu0 %v1946_v27  ;;  %v7852_v30 = vsel %vm1567_vm7, %v1943_v28, -1e+30 }
 0x287   :  { %v1949_v17 = vsel %vm1570_vm4, %v7852_v30, -inf  ;;  %v2191_v44 = vmul.f32 0.2, %v2187_v12  ;;  %vm2189_vm8 = vcmp.gt.f32.partialorder %v2187_v12, 0.0 }
 0x288   :  { %v2190_v39 = vmul.f32 0.2, %v2186_v29  ;;  %1950 = vmax.xlane.f32.xlu1 %v1949_v17  ;;  %vm2188_vm14 = vcmp.gt.f32.partialorder %v2186_v29, 0.0 }
 0x289   :  { %v2193_v28 = vsel %vm2189_vm8, %v2187_v12, %v2191_v44  ;;  %vm3944_vm8 = vcmask 326656  }
 0x28a   :  { %v2426_v38 = vpop.permute.xlu1 %2425  ;;  %2072 = vmax.xlane.f32.xlu0 %v2071_v40  ;;  %v2192_v41 = vsel %vm2188_vm14, %v2186_v29, %v2190_v39  ;;  %v7899_v37 = vsel %vm1567_vm7, %v2193_v28, -1e+30 }
 0x28b   :  { %v2436_v46 = vadd.f32 %v2435_v25, %v2426_v38  ;;  %v7864_v47 = vsel %vm1566_vm3, %v2192_v41, -1e+30  ;;  %v2199_v39 = vsel %vm1570_vm4, %v7899_v37, -inf }
 0x28c   :  { %v2196_v49 = vsel %vm1570_vm4, %v7864_v47, -inf }
 0x28d   :  { %v2440_v50 = vmul.f32 0.2, %v2436_v46  ;;  %vm2438_vm2 = vcmp.gt.f32.partialorder %v2436_v46, 0.0 }
 0x28e   :  { %2197 = vmax.xlane.f32.xlu0 %v2196_v49 }
 0x28f   :  { %v2055_v51 = vpop.permute.xlu1 %2054  ;;  %v2442_v54 = vsel %vm2438_vm2, %v2436_v46, %v2440_v50  ;;  %vm6317_vm2 = vmpackc.low %vm3520_vm15, %vm3520_vm15 }
 0x290   :  { %v7871_v57 = vsel %vm1566_vm3, %v2442_v54, -1e+30  ;;  %v2062_v58 = vadd.f32 %v7804_v45, %v2055_v51 }
 0x291   :  { %v2446_v62 = vsel %vm1570_vm4, %v7871_v57, -inf }
 0x292   :  { %2447 = vmax.xlane.f32.xlu0 %v2446_v62  ;;  %v2066_v19 = vmul.f32 0.2, %v2062_v58  ;;  %vm2064_vm5 = vcmp.gt.f32.partialorder %v2062_v58, 0.0 }
 0x294   :  { %v2301_v10 = vpop.permute.xlu1 %2300  ;;  %v2068_v16 = vsel %vm2064_vm5, %v2062_v58, %v2066_v19 }
 0x295   :  { %v2311_v21 = vadd.f32 %v2310_v5, %v2301_v10  ;;  %v7893_v61 = vsel %vm1567_vm7, %v2068_v16, -1e+30 }
 0x296   :  { %2450 = vmax.xlane.f32.xlu0 %v2449_v63  ;;  %v2074_v29 = vsel %vm1570_vm4, %v7893_v61, -inf }
 0x297   :  { %v2315_v45 = vmul.f32 0.2, %v2311_v21  ;;  %vm2313_vm6 = vcmp.gt.f32.partialorder %v2311_v21, 0.0 }
 0x298   :  { %v2305_v20 = vpop.permute.xlu1 %2304 }
 0x299   :  { %v2312_v23 = vadd.f32 %v2310_v5, %v2305_v20  ;;  %v2317_v25 = vsel %vm2313_vm6, %v2311_v21, %v2315_v45 }
 0x29a   :  { %v7887_v27 = vsel %vm1566_vm3, %v2317_v25, -1e+30 }
 0x29b   :  { %v2321_v2 = vsel %vm1570_vm4, %v7887_v27, -inf  ;;  %v2316_v15 = vmul.f32 0.2, %v2312_v23  ;;  %vm2314_vm9 = vcmp.gt.f32.partialorder %v2312_v23, 0.0 }
 0x29c   :  { %2322 = vmax.xlane.f32.xlu1 %v2321_v2 }
 0x29d   :  { %v2318_v17 = vsel %vm2314_vm9, %v2312_v23, %v2316_v15  ;;  %vm6353_vm9 = vmpackc.low %vm3944_vm8, %vm3944_vm8 }
 0x29e   :  { %v7905_v40 = vsel %vm1567_vm7, %v2318_v17, -1e+30 }
 0x29f   :  { %v2324_v38 = vsel %vm1570_vm4, %v7905_v40, -inf }
 0x2a0   :  { %2075 = vmax.xlane.f32.xlu1 %v2074_v29 }
 0x2a4   :  { %2200 = vmax.xlane.f32.xlu1 %v2199_v39 }
 0x2a8   :  { %2325 = vmax.xlane.f32.xlu1 %v2324_v38 }
 0x2fd   :  { %v1573_v41 = vpop.xlane.xlu1 %1572 }
 0x2fe   :  { %v1577_v42 = vsub.f32 %v7782_v14, %v1573_v41 }
 0x300   :  { %v1579_v46 = vmul.f32 1.442695, %v1577_v42 }
 0x302   :  { %6572 = vpow2.f32 %v1579_v46 }
 0x307   :  { %v1576_v49 = vpop.xlane.xlu0 %1575 }
 0x308   :  { %v1578_v50 = vsub.f32 %v7799_v43, %v1576_v49 }
 0x30a   :  { %v1581_v51 = vmul.f32 1.442695, %v1578_v50 }
 0x30b   :  { %v1698_v54 = vpop.xlane.xlu0 %1697 }
 0x30c   :  { %v7911_v56 = vpop.eup %6572  ;;  %6574 = vpow2.f32 %v1581_v51  ;;  %v1702_v58 = vsub.f32 %v7810_v48, %v1698_v54  ;;  %v1701_v62 = vpop.xlane.xlu1 %1700 }
 0x30d   :  { %v1703_v5 = vsub.f32 %v7820_v60, %v1701_v62  ;;  %v1583_v10 = vsel %vm1570_vm4, %v7911_v56, 0.0 }
 0x30e   :  { %v1704_v12 = vmul.f32 1.442695, %v1702_v58  ;;  %1584 = vadd.xlane.f32.xlu0 %v1583_v10 }
 0x30f   :  { %v1706_v14 = vmul.f32 1.442695, %v1703_v5  ;;  %v1823_v19 = vpop.xlane.xlu0 %1822 }
 0x310   :  { %6576 = vpow2.f32 %v1704_v12  ;;  %v1827_v43 = vsub.f32 %v7826_v0, %v1823_v19  ;;  %v1826_v21 = vpop.xlane.xlu1 %1825 }
 0x311   :  { %6578 = vpow2.f32 %v1706_v14  ;;  %v1828_v63 = vsub.f32 %v7830_v1, %v1826_v21 }
 0x312   :  { %v1829_v45 = vmul.f32 1.442695, %v1827_v43 }
 0x313   :  { %v1831_v20 = vmul.f32 1.442695, %v1828_v63  ;;  %v1948_v48 = vpop.xlane.xlu0 %1947 }
 0x314   :  { %6580 = vpow2.f32 %v1829_v45  ;;  %v1952_v60 = vsub.f32 %v7840_v22, %v1948_v48 }
 0x315   :  { %6582 = vpow2.f32 %v1831_v20  ;;  %v1951_v44 = vpop.xlane.xlu1 %1950 }
 0x316   :  { %v7920_v23 = vpop.eup %6574  ;;  %v1954_v25 = vmul.f32 1.442695, %v1952_v60  ;;  %v1953_v16 = vsub.f32 %v7852_v30, %v1951_v44 }
 0x317   :  { %v2073_v2 = vpop.xlane.xlu0 %2072  ;;  %v1586_v0 = vsel %vm1570_vm4, %v7920_v23, 0.0 }
 0x318   :  { %6584 = vpow2.f32 %v1954_v25  ;;  %v1956_v15 = vmul.f32 1.442695, %v1953_v16  ;;  %v2077_v1 = vsub.f32 %v7856_v32, %v2073_v2  ;;  %1587 = vadd.xlane.f32.xlu1 %v1586_v0 }
 0x31a   :  { %v7926_v28 = vpop.eup %6576  ;;  %6586 = vpow2.f32 %v1956_v15  ;;  %v2079_v22 = vmul.f32 1.442695, %v2077_v1 }
 0x31b   :  { %v7928_v29 = vpop.eup %6578  ;;  %v2198_v17 = vpop.xlane.xlu0 %2197  ;;  %v1708_v39 = vsel %vm1570_vm4, %v7926_v28, 0.0 }
 0x31c   :  { %6588 = vpow2.f32 %v2079_v22  ;;  %v2202_v30 = vsub.f32 %v7864_v47, %v2198_v17  ;;  %1709 = vadd.xlane.f32.xlu0 %v1708_v39  ;;  %v1711_v38 = vsel %vm1570_vm4, %v7928_v29, 0.0 }
 0x31d   :  { %1712 = vadd.xlane.f32.xlu1 %v1711_v38 }
 0x31e   :  { %v7935_v32 = vpop.eup %6580  ;;  %v2204_v41 = vmul.f32 1.442695, %v2202_v30 }
 0x31f   :  { %v7937_v42 = vpop.eup %6582  ;;  %v2448_v46 = vpop.xlane.xlu0 %2447  ;;  %v1833_v49 = vsel %vm1570_vm4, %v7935_v32, 0.0 }
 0x320   :  { %6590 = vpow2.f32 %v2204_v41  ;;  %v2452_v50 = vsub.f32 %v7871_v57, %v2448_v46  ;;  %1834 = vadd.xlane.f32.xlu0 %v1833_v49  ;;  %v1836_v47 = vsel %vm1570_vm4, %v7937_v42, 0.0  ;;  %v2670_v49 = vld [vmem:[%s8924_s12 + $0x180] sm:$0xff] }
 0x321   :  { %1837 = vadd.xlane.f32.xlu1 %v1836_v47 }
 0x322   :  { %v7944_v51 = vpop.eup %6584  ;;  %v2454_v54 = vmul.f32 1.442695, %v2452_v50  ;;  %v2671_v50 = vld [vmem:[%s8924_s12 + $0x188] sm:$0xff] }
 0x323   :  { %v2451_v58 = vpop.xlane.xlu0 %2450  ;;  %v1958_v62 = vsel %vm1570_vm4, %v7944_v51, 0.0  ;;  %v6143_v47 = vpack.c.bf16 %v2671_v50, %v2670_v49 }
 0x324   :  { %v7948_v5 = vpop.eup %6586  ;;  %6592 = vpow2.f32 %v2454_v54  ;;  %v2453_v10 = vsub.f32 %v7878_v4, %v2451_v58  ;;  %1959 = vadd.xlane.f32.xlu0 %v1958_v62 }
 0x325   :  { %v1961_v57 = vsel %vm1570_vm4, %v7948_v5, 0.0  ;;  %6144 = vmatprep.subr.bf16.mxu0 %v6143_v47  ;;  %v2656_v47 = vld [vmem:[%s8924_s12 + $0x110] sm:$0xff] }
 0x326   :  { %v7953_v12 = vpop.eup %6588  ;;  %v2456_v14 = vmul.f32 1.442695, %v2453_v10  ;;  %1962 = vadd.xlane.f32.xlu1 %v1961_v57 }
 0x327   :  { %v2083_v19 = vsel %vm1570_vm4, %v7953_v12, 0.0 }
 0x328   :  { %6594 = vpow2.f32 %v2456_v14  ;;  %2084 = vadd.xlane.f32.xlu0 %v2083_v19 }
 0x329   :  { %v2323_v43 = vpop.xlane.xlu1 %2322 }
 0x32a   :  { %v7957_v21 = vpop.eup %6590  ;;  %v2327_v63 = vsub.f32 %v7887_v27, %v2323_v43 }
 0x32b   :  { %v2208_v4 = vsel %vm1570_vm4, %v7957_v21, 0.0 }
 0x32c   :  { %v2329_v45 = vmul.f32 1.442695, %v2327_v63  ;;  %2209 = vadd.xlane.f32.xlu0 %v2208_v4 }
 0x32d   :  { %v2076_v20 = vpop.xlane.xlu1 %2075 }
 0x32e   :  { %v7962_v48 = vpop.eup %6592  ;;  %6596 = vpow2.f32 %v2329_v45  ;;  %v2078_v60 = vsub.f32 %v7893_v61, %v2076_v20 }
 0x32f   :  { %v2458_v44 = vsel %vm1570_vm4, %v7962_v48, 0.0 }
 0x330   :  { %v2081_v25 = vmul.f32 1.442695, %v2078_v60  ;;  %2459 = vadd.xlane.f32.xlu0 %v2458_v44 }
 0x331   :  { %v2201_v16 = vpop.xlane.xlu1 %2200 }
 0x332   :  { %v7967_v2 = vpop.eup %6594  ;;  %6598 = vpow2.f32 %v2081_v25  ;;  %v2203_v27 = vsub.f32 %v7899_v37, %v2201_v16 }
 0x333   :  { %v2461_v0 = vsel %vm1570_vm4, %v7967_v2, 0.0 }
 0x334   :  { %v2206_v15 = vmul.f32 1.442695, %v2203_v27  ;;  %2462 = vadd.xlane.f32.xlu0 %v2461_v0 }
 0x335   :  { %v2326_v1 = vpop.xlane.xlu1 %2325 }
 0x336   :  { %6600 = vpow2.f32 %v2206_v15  ;;  %v2328_v61 = vsub.f32 %v7905_v40, %v2326_v1 }
 0x338   :  { %v7973_v22 = vpop.eup %6596  ;;  %v2331_v17 = vmul.f32 1.442695, %v2328_v61 }
 0x339   :  { %v2333_v39 = vsel %vm1570_vm4, %v7973_v22, 0.0 }
 0x33a   :  { %6602 = vpow2.f32 %v2331_v17  ;;  %2334 = vadd.xlane.f32.xlu1 %v2333_v39 }
 0x33c   :  { %v7977_v30 = vpop.eup %6598 }
 0x33d   :  { %v2086_v37 = vsel %vm1570_vm4, %v7977_v30, 0.0 }
 0x33e   :  { %2087 = vadd.xlane.f32.xlu1 %v2086_v37  ;;  %v2655_v37 = vld [vmem:[%s8924_s12 + $0x108] sm:$0xff] }
 0x340   :  { %v7981_v38 = vpop.eup %6600 }
 0x341   :  { %v2211_v41 = vsel %vm1570_vm4, %v7981_v38, 0.0 }
 0x342   :  { %2212 = vadd.xlane.f32.xlu1 %v2211_v41 }
 0x344   :  { %v7985_v40 = vpop.eup %6602 }
 0x345   :  { %v2336_v46 = vsel %vm1570_vm4, %v7985_v40, 0.0 }
 0x346   :  { %2337 = vadd.xlane.f32.xlu1 %v2336_v46 }
 0x39b   :  { %v1585_v54 = vpop.xlane.xlu0 %1584 }
 0x39c   :  { %6604 = vrcp.f32 %v1585_v54  ;;  %v2657_v54 = vld [vmem:[%s8924_s12 + $0x118] sm:$0xff] }
 0x3a5   :  { %v1588_v58 = vpop.xlane.xlu1 %1587 }
 0x3a6   :  { %v6605_v62 = vpop.eup %6604  ;;  %6606 = vrcp.f32 %v1588_v58  ;;  %v2674_v58 = vld [vmem:[%s8924_s12 + $0x1a0] sm:$0xff] }
 0x3a7   :  { %v1590_v10 = vmul.f32 %v6605_v62, %v7911_v56  ;;  %v2675_v62 = vld [vmem:[%s8924_s12 + $0x1a8] sm:$0xff] }
 0x3a9   :  { %5644 = vmatprep.mubr.msk.f32.mxu1 %vm1570_vm4, %v1590_v10  ;;  %v1710_v57 = vpop.xlane.xlu0 %1709 }
 0x3aa   :  { %6608 = vrcp.f32 %v1710_v57  ;;  %v1713_v14 = vpop.xlane.xlu1 %1712  ;;  %v6151_v57 = vpack.c.bf16 %v2675_v62, %v2674_v58  ;;  %v2676_v58 = vld [vmem:[%s8924_s12 + $0x1b0] sm:$0xff] }
 0x3ab   :  { %6610 = vrcp.f32 %v1713_v14  ;;  %v2658_v14 = vld [vmem:[%s8924_s12 + $0x120] sm:$0xff] }
 0x3ad   :  { %v1835_v19 = vpop.xlane.xlu0 %1834 }
 0x3ae   :  { %6612 = vrcp.f32 %v1835_v19  ;;  %v1838_v43 = vpop.xlane.xlu1 %1837  ;;  %v2659_v19 = vld [vmem:[%s8924_s12 + $0x128] sm:$0xff] }
 0x3af   :  { %6614 = vrcp.f32 %v1838_v43 }
 0x3b0   :  { %v6607_v63 = vpop.eup %6606 }
 0x3b1   :  { %v1592_v4 = vmul.f32 %v6607_v63, %v7920_v23  ;;  %v1960_v45 = vpop.xlane.xlu0 %1959  ;;  %v6153_v63 = vpack.c.bf16 %v2659_v19, %v2658_v14 }
 0x3b2   :  { %6616 = vrcp.f32 %v1960_v45 }
 0x3b3   :  { %v1963_v20 = vpop.xlane.xlu1 %1962  ;;  %5645 = vmatmul.mubr.msk.f32.vlgmr.msra.gmra.mrb[16].mxu1 %vm1570_vm4, %v1592_v4 }
 0x3b4   :  { %v6609_v60 = vpop.eup %6608  ;;  %6618 = vrcp.f32 %v1963_v20  ;;  %6086 = vmatpush3.bf16.msra.mxu1 %v7581_v53 }
 0x3b5   :  { %v6611_v56 = vpop.eup %6610  ;;  %6088 = vmatprep.subr.bf16.mxu1 %v7579_v52  ;;  %v2085_v44 = vpop.xlane.xlu0 %2084  ;;  %v1715_v25 = vmul.f32 %v6609_v60, %v7926_v28 }
 0x3b6   :  { %v1717_v16 = vmul.f32 %v6611_v56, %v7928_v29  ;;  %6620 = vrcp.f32 %v2085_v44  ;;  %v2638_v56 = vld [vmem:[%s8924_s12 + $0x80] sm:$0xff]  ;;  %v2639_v44 = vld [vmem:[%s8924_s12 + $0x88] sm:$0xff] }
 0x3b7   :  { %5651 = vmatprep.mubr.msk.f32.mxu1 %vm1570_vm4, %v1715_v25 }
 0x3b8   :  { %v6613_v23 = vpop.eup %6612  ;;  %5652 = vmatmul.mubr.msk.f32.vlgmr.msra.gmra.mrb[18].mxu1 %vm1570_vm4, %v1717_v16 }
 0x3b9   :  { %v6615_v27 = vpop.eup %6614  ;;  %6090 = vmatpush3.bf16.msra.mxu1 %v7579_v52  ;;  %v2210_v0 = vpop.xlane.xlu0 %2209  ;;  %v1840_v53 = vmul.f32 %v6613_v23, %v7935_v32  ;;  %v2622_v23 = vld [vmem:[%s8924_s12] sm:$0xff] }
 0x3ba   :  { %v1842_v15 = vmul.f32 %v6615_v27, %v7937_v42  ;;  %6092 = vmatprep.subr.bf16.mxu1 %v7592_v59  ;;  %v2623_v27 = vld [vmem:[%s8924_s12 + $0x8] sm:$0xff] }
 0x3bb   :  { %5658 = vmatprep.mubr.msk.f32.mxu1 %vm1570_vm4, %v1840_v53 }
 0x3bc   :  { %v6617_v28 = vpop.eup %6616  ;;  %5659 = vmatmul.mubr.msk.f32.vlgmr.msra.gmra.mrb[20].mxu1 %vm1570_vm4, %v1842_v15  ;;  %v6113_v15 = vpack.c.bf16 %v2623_v27, %v2622_v23  ;;  %v2662_v23 = vld [vmem:[%s8924_s12 + $0x140] sm:$0xff]  ;;  %v2663_v27 = vld [vmem:[%s8924_s12 + $0x148] sm:$0xff] }
 0x3bd   :  { %6094 = vmatpush3.bf16.msra.mxu1 %v7592_v59  ;;  %v2460_v29 = vpop.xlane.xlu0 %2459  ;;  %v1965_v1 = vmul.f32 %v6617_v28, %v7944_v51 }
 0x3be   :  { %v6619_v61 = vpop.eup %6618  ;;  %6096 = vmatprep.subr.bf16.mxu1 %v7641_v26  ;;  %6622 = vrcp.f32 %v2460_v29  ;;  %v2624_v29 = vld [vmem:[%s8924_s12 + $0x10] sm:$0xff] }
 0x3bf   :  { %v1967_v52 = vmul.f32 %v6619_v61, %v7948_v5  ;;  %5665 = vmatprep.mubr.msk.f32.mxu1 %vm1570_vm4, %v1965_v1  ;;  %v2654_v5 = vld [vmem:[%s8924_s12 + $0x100] sm:$0xff]  ;;  %v2625_v1 = vld [vmem:[%s8924_s12 + $0x18] sm:$0xff] }
 0x3c0   :  { %v6621_v32 = vpop.eup %6620  ;;  %v6145_v46 = vpack.c.bf16 %v2655_v37, %v2654_v5  ;;  %v2642_v61 = vld [vmem:[%s8924_s12 + $0xa0] sm:$0xff]  ;;  %v2628_v5 = vld [vmem:[%s8924_s12 + $0x30] sm:$0xff]  ;;  %v2629_v37 = vld [vmem:[%s8924_s12 + $0x38] sm:$0xff] }
 0x3c1   :  { %5666 = vmatmul.mubr.msk.f32.vlgmr.msra.gmra.mrb[22].mxu1 %vm1570_vm4, %v1967_v52  ;;  %v2463_v42 = vpop.xlane.xlu0 %2462  ;;  %v2090_v17 = vmul.f32 %v6621_v32, %v7953_v12  ;;  %v2673_v12 = vld [vmem:[%s8924_s12 + $0x198] sm:$0xff]  ;;  %v2626_v32 = vld [vmem:[%s8924_s12 + $0x20] sm:$0xff] }
 0x3c2   :  { %6098 = vmatpush3.bf16.msra.mxu1 %v7641_v26  ;;  %6624 = vrcp.f32 %v2463_v42  ;;  %v2672_v26 = vld [vmem:[%s8924_s12 + $0x190] sm:$0xff]  ;;  %v2627_v42 = vld [vmem:[%s8924_s12 + $0x28] sm:$0xff] }
 0x3c3   :  { %6100 = vmatprep.subr.bf16.mxu1 %v7657_v33  ;;  %5672 = vmatprep.mubr.msk.f32.mxu1 %vm1570_vm4, %v2090_v17  ;;  %6626 = vrcp.f32 %v2210_v0  ;;  %v6147_v50 = vpack.c.bf16 %v2673_v12, %v2672_v26  ;;  %v2644_v17 = vld [vmem:[%s8924_s12 + $0xb0] sm:$0xff]  ;;  %v2646_v26 = vld [vmem:[%s8924_s12 + $0xc0] sm:$0xff]  ;;  %v2647_v12 = vld [vmem:[%s8924_s12 + $0xc8] sm:$0xff] }
 0x3c7   :  { %v2335_v59 = vpop.xlane.xlu1 %2334 }
 0x3c8   :  { %v6623_v51 = vpop.eup %6622 }
 0x3c9   :  { %v2465_v39 = vmul.f32 %v6623_v51, %v7962_v48  ;;  %v6121_v51 = vpack.c.bf16 %v2627_v42, %v2626_v32  ;;  %v2682_v32 = vld [vmem:[%s8924_s12 + $0x1e0] sm:$0xff]  ;;  %v2683_v42 = vld [vmem:[%s8924_s12 + $0x1e8] sm:$0xff] }
 0x3cb   :  { %v2088_v41 = vpop.xlane.xlu1 %2087  ;;  %5693 = vmatprep.mubr.msk.f32.mxu0 %vm1570_vm4, %v2465_v39 }
 0x3cc   :  { %v6625_v48 = vpop.eup %6624  ;;  %6628 = vrcp.f32 %v2088_v41  ;;  %v6125_v41 = vpack.c.bf16 %v2629_v37, %v2628_v5  ;;  %v2684_v5 = vld [vmem:[%s8924_s12 + $0x1f0] sm:$0xff]  ;;  %v2685_v37 = vld [vmem:[%s8924_s12 + $0x1f8] sm:$0xff] }
 0x3cd   :  { %v2467_v49 = vmul.f32 %v6625_v48, %v7967_v2  ;;  %6630 = vrcp.f32 %v2335_v59  ;;  %v6149_v2 = vpack.c.bf16 %v2657_v54, %v2656_v47  ;;  %v6627_v4 = vpop.eup %6626  ;;  %v2645_v59 = vld [vmem:[%s8924_s12 + $0xb8] sm:$0xff]  ;;  %v6127_v48 = vpack.c.bf16 %v2647_v12, %v2646_v26  ;;  %v2648_v47 = vld [vmem:[%s8924_s12 + $0xd0] sm:$0xff] }
 0x3ce   :  { %v2215_v60 = vmul.f32 %v6627_v4, %v7957_v21  ;;  %v6111_v21 = vpack.c.bf16 %v2639_v44, %v2638_v56  ;;  %v6123_v39 = vpack.c.bf16 %v2645_v59, %v2644_v17  ;;  %v2649_v54 = vld [vmem:[%s8924_s12 + $0xd8] sm:$0xff]  ;;  %v2679_v44 = vld [vmem:[%s8924_s12 + $0x1c8] sm:$0xff]  ;;  %v6167_v17 = vpack.c.bf16 %v2683_v42, %v2682_v32  ;;  %v2666_v59 = vld [vmem:[%s8924_s12 + $0x160] sm:$0xff] }
 0x3cf   :  { %v2213_v10 = vpop.xlane.xlu1 %2212  ;;  %5694 = vmatmul.mubr.msk.f32.vlgmr.msra.gmra.mrb[18].mxu0 %vm1570_vm4, %v2467_v49  ;;  %v2631_v49 = vld [vmem:[%s8924_s12 + $0x48] sm:$0xff]  ;;  %v6131_v62 = vpack.c.bf16 %v2649_v54, %v2648_v47  ;;  %v6171_v26 = vpack.c.bf16 %v2685_v37, %v2684_v5  ;;  %v2668_v12 = vld [vmem:[%s8924_s12 + $0x170] sm:$0xff]  ;;  %v2734_v47 = vld [vmem:[%s8924_s12 + $0x380] sm:$0xff] }
 0x3d0   :  { %6632 = vrcp.f32 %v2213_v10  ;;  %6146 = vmatpush3.bf16.msra.mxu0 %v6145_v46  ;;  %v2630_v46 = vld [vmem:[%s8924_s12 + $0x40] sm:$0xff]  ;;  %v2677_v10 = vld [vmem:[%s8924_s12 + $0x1b8] sm:$0xff]  ;;  %v2735_v54 = vld [vmem:[%s8924_s12 + $0x388] sm:$0xff] }
 0x3d1   :  { %6148 = vmatprep.subr.bf16.mxu0 %v6147_v50  ;;  %v6129_v50 = vpack.c.bf16 %v2631_v49, %v2630_v46  ;;  %v6155_v14 = vpack.c.bf16 %v2677_v10, %v2676_v58  ;;  %v2703_v49 = vld [vmem:[%s8924_s12 + $0x288] sm:$0xff]  ;;  %v6207_v58 = vpack.c.bf16 %v2735_v54, %v2734_v47  ;;  %v2688_v32 = vld [vmem:[%s8924_s12 + $0x210] sm:$0xff]  ;;  %v2689_v42 = vld [vmem:[%s8924_s12 + $0x218] sm:$0xff] }
 0x3d2   :  { %v2751_v10 = vld [vmem:[%s8925_s2 + $0x8] sm:$0xff]  ;;  %v6181_v37 = vpack.c.bf16 %v2689_v42, %v2688_v32  ;;  %v2736_v47 = vld [vmem:[%s8924_s12 + $0x390] sm:$0xff] }
 0x3d3   :  { %v2338_v43 = vpop.xlane.xlu1 %2337 }
 0x3d4   :  { %6634 = vrcp.f32 %v2338_v43  ;;  %6150 = vmatpush3.bf16.msra.mxu0 %v6149_v2  ;;  %v2632_v2 = vld [vmem:[%s8924_s12 + $0x50] sm:$0xff] }
 0x3d5   :  { %6152 = vmatprep.subr.bf16.mxu0 %v6151_v57  ;;  %v2633_v57 = vld [vmem:[%s8924_s12 + $0x58] sm:$0xff]  ;;  %v2660_v43 = vld [vmem:[%s8924_s12 + $0x130] sm:$0xff] }
 0x3d6   :  { %v6629_v45 = vpop.eup %6628  ;;  %v6133_v19 = vpack.c.bf16 %v2633_v57, %v2632_v2  ;;  %v2752_v2 = vld [vmem:[%s8925_s2 + $0x10] sm:$0xff]  ;;  %v2753_v57 = vld [vmem:[%s8925_s2 + $0x18] sm:$0xff] }
 0x3d7   :  { %v2092_v20 = vmul.f32 %v6629_v45, %v7977_v30  ;;  %v6631_v25 = vpop.eup %6630  ;;  %v2650_v45 = vld [vmem:[%s8924_s12 + $0xe0] sm:$0xff] }
 0x3d8   :  { %6154 = vmatpush3.bf16.msra.mxu0 %v6153_v63  ;;  %v2340_v0 = vmul.f32 %v6631_v25, %v7973_v22  ;;  %v2661_v63 = vld [vmem:[%s8924_s12 + $0x138] sm:$0xff]  ;;  %v2634_v25 = vld [vmem:[%s8924_s12 + $0x60] sm:$0xff] }
 0x3d9   :  { %5673 = vmatmul.mubr.msk.f32.vlgmr.msra.gmra.mrb[24].mxu1 %vm1570_vm4, %v2092_v20  ;;  %v6157_v4 = vpack.c.bf16 %v2661_v63, %v2660_v43  ;;  %6156 = vmatprep.subr.bf16.mxu0 %v6155_v14  ;;  %v2651_v20 = vld [vmem:[%s8924_s12 + $0xe8] sm:$0xff]  ;;  %v2754_v14 = vld [vmem:[%s8925_s2 + $0x20] sm:$0xff]  ;;  %v2756_v43 = vld [vmem:[%s8925_s2 + $0x30] sm:$0xff] }
 0x3da   :  { %v6633_v16 = vpop.eup %6632  ;;  %6102 = vmatpush3.bf16.msra.mxu1 %v7657_v33  ;;  %5679 = vmatprep.mubr.msk.f32.mxu1 %vm1570_vm4, %v2215_v60  ;;  %v2640_v33 = vld [vmem:[%s8924_s12 + $0x90] sm:$0xff]  ;;  %v2678_v60 = vld [vmem:[%s8924_s12 + $0x1c0] sm:$0xff]  ;;  %v6135_v56 = vpack.c.bf16 %v2651_v20, %v2650_v45  ;;  %v2757_v63 = vld [vmem:[%s8925_s2 + $0x38] sm:$0xff] }
 0x3db   :  { %v2217_v30 = vmul.f32 %v6633_v16, %v7981_v38  ;;  %6104 = vmatprep.subr.bf16.mxu1 %v7661_v34  ;;  %v2641_v38 = vld [vmem:[%s8924_s12 + $0x98] sm:$0xff]  ;;  %v2635_v16 = vld [vmem:[%s8924_s12 + $0x68] sm:$0xff]  ;;  %v2760_v20 = vld [vmem:[%s8925_s2 + $0x50] sm:$0xff] }
 0x3dc   :  { %v6115_v22 = vpack.c.bf16 %v2641_v38, %v2640_v33  ;;  %6158 = vmatpush3.bf16.msra.mxu0 %v6157_v4  ;;  %v2652_v33 = vld [vmem:[%s8924_s12 + $0xf0] sm:$0xff]  ;;  %v2653_v38 = vld [vmem:[%s8924_s12 + $0xf8] sm:$0xff]  ;;  %v2758_v4 = vld [vmem:[%s8925_s2 + $0x40] sm:$0xff] }
 0x3dd   :  { %5680 = vmatmul.mubr.msk.f32.vlgmr.msra.gmra.mrb[26].mxu1 %vm1570_vm4, %v2217_v30  ;;  %v6159_v30 = vpack.c.bf16 %v2679_v44, %v2678_v60  ;;  %v2759_v45 = vld [vmem:[%s8925_s2 + $0x48] sm:$0xff]  ;;  %v2761_v60 = vld [vmem:[%s8925_s2 + $0x58] sm:$0xff]  ;;  %v8278_v44 = vld [vmem:[%s8926_s10] sm:$0xff] }
 0x3de   :  { %v6635_v53 = vpop.eup %6634  ;;  %6106 = vmatpush3.bf16.msra.mxu1 %v7661_v34  ;;  %5686 = vmatprep.mubr.msk.f32.mxu1 %vm1570_vm4, %v2340_v0  ;;  %v2643_v34 = vld [vmem:[%s8924_s12 + $0xa8] sm:$0xff]  ;;  %v6161_v0 = vpack.c.bf16 %v2663_v27, %v2662_v23  ;;  %v2565_v5 = vrot.slane %v8278_v44, %v1934_v36  ;;  %v2718_v36 = vld [vmem:[%s8924_s12 + $0x300] sm:$0xff] }
 0x3df   :  { %v2342_v28 = vmul.f32 %v6635_v53, %v7985_v40  ;;  %6112 = vmatprep.subr.bf16.mxu1 %v6111_v21  ;;  %v6117_v40 = vpack.c.bf16 %v2625_v1, %v2624_v29  ;;  %v6119_v52 = vpack.c.bf16 %v2643_v34, %v2642_v61  ;;  %v6137_v21 = vpack.c.bf16 %v2635_v16, %v2634_v25  ;;  %v2680_v53 = vld [vmem:[%s8924_s12 + $0x1d0] sm:$0xff]  ;;  %v2637_v29 = vld [vmem:[%s8924_s12 + $0x78] sm:$0xff] }
 0x3e0   :  { %6160 = vmatprep.subr.bf16.mxu0 %v6159_v30  ;;  %v2664_v34 = vld [vmem:[%s8924_s12 + $0x150] sm:$0xff]  ;;  %v2553_v30 = vrot.slane %v8278_v44, %v7765_v9 }
 0x3e1   :  { %5687 = vmatmul.mubr.msk.f32.vlgmr.msra.gmra.mrb[28].mxu1 %vm1570_vm4, %v2342_v28  ;;  %6162 = vmatpush3.bf16.msra.mxu0 %v6161_v0  ;;  %v2681_v28 = vld [vmem:[%s8924_s12 + $0x1d8] sm:$0xff] }
 0x3e2   :  { %6114 = vmatpush3.bf16.msra.mxu1 %v6113_v15  ;;  %v6139_v15 = vpack.c.bf16 %v2653_v38, %v2652_v33  ;;  %v6163_v1 = vpack.c.bf16 %v2681_v28, %v2680_v53  ;;  %v2686_v33 = vld [vmem:[%s8924_s12 + $0x200] sm:$0xff]  ;;  %v2687_v38 = vld [vmem:[%s8924_s12 + $0x208] sm:$0xff]  ;;  %v2704_v28 = vld [vmem:[%s8924_s12 + $0x290] sm:$0xff] }
 0x3e3   :  { %6116 = vmatprep.subr.bf16.mxu1 %v6115_v22  ;;  %v2636_v22 = vld [vmem:[%s8924_s12 + $0x70] sm:$0xff] }
 0x3e4   :  { %v6141_v61 = vpack.c.bf16 %v2637_v29, %v2636_v22  ;;  %6164 = vmatprep.subr.bf16.mxu0 %v6163_v1  ;;  %v6177_v1 = vpack.c.bf16 %v2687_v38, %v2686_v33  ;;  %v2722_v38 = vld [vmem:[%s8924_s12 + $0x320] sm:$0xff] }
 0x3e6   :  { %6118 = vmatpush3.bf16.msra.mxu1 %v6117_v40  ;;  %v2665_v40 = vld [vmem:[%s8924_s12 + $0x158] sm:$0xff] }
 0x3e7   :  { %6120 = vmatprep.subr.bf16.mxu1 %v6119_v52  ;;  %v6165_v52 = vpack.c.bf16 %v2665_v40, %v2664_v34 }
 0x3e9   :  { %6166 = vmatpush3.bf16.msra.mxu0 %v6165_v52 }
 0x3ea   :  { %6122 = vmatpush3.bf16.msra.mxu1 %v6121_v51  ;;  %v2667_v51 = vld [vmem:[%s8924_s12 + $0x168] sm:$0xff]  ;;  %6168 = vmatprep.subr.bf16.mxu0 %v6167_v17 }
 0x3eb   :  { %6124 = vmatprep.subr.bf16.mxu1 %v6123_v39  ;;  %v6169_v39 = vpack.c.bf16 %v2667_v51, %v2666_v59  ;;  %v2561_v59 = vrot.slane %v8278_v44, %v1809_v7  ;;  %v2706_v51 = vld [vmem:[%s8924_s12 + $0x2a0] sm:$0xff] }
 0x3ed   :  { %6170 = vmatpush3.bf16.msra.mxu0 %v6169_v39  ;;  %v2707_v39 = vld [vmem:[%s8924_s12 + $0x2a8] sm:$0xff] }
 0x3ee   :  { %6126 = vmatpush3.bf16.msra.mxu1 %v6125_v41  ;;  %v2669_v41 = vld [vmem:[%s8924_s12 + $0x178] sm:$0xff]  ;;  %6172 = vmatprep.subr.bf16.mxu0 %v6171_v26  ;;  %v6183_v7 = vpack.c.bf16 %v2707_v39, %v2706_v51  ;;  %v2724_v39 = vld [vmem:[%s8924_s12 + $0x330] sm:$0xff] }
 0x3ef   :  { %6128 = vmatprep.subr.bf16.mxu1 %v6127_v48  ;;  %v2702_v48 = vld [vmem:[%s8924_s12 + $0x280] sm:$0xff]  ;;  %v6173_v46 = vpack.c.bf16 %v2669_v41, %v2668_v12 }
 0x3f0   :  { %v2690_v41 = vld [vmem:[%s8924_s12 + $0x220] sm:$0xff] }
 0x3f1   :  { %6174 = vmatpush3.bf16.msra.mxu0 %v6173_v46 }
 0x3f2   :  { %6130 = vmatpush3.bf16.msra.mxu1 %v6129_v50  ;;  %v6175_v50 = vpack.c.bf16 %v2703_v49, %v2702_v48  ;;  %6208 = vmatprep.subr.bf16.mxu0 %v6207_v58  ;;  %v2691_v48 = vld [vmem:[%s8924_s12 + $0x228] sm:$0xff] }
 0x3f3   :  { %6132 = vmatprep.subr.bf16.mxu1 %v6131_v62  ;;  %v2750_v62 = vld [vmem:[%s8925_s2] sm:$0xff] }
 0x3f4   :  { %3162 = vxpose.xlu0.b32.start [1/13] (short) (narrow) %v2750_v62, 8  ;;  %v2737_v62 = vld [vmem:[%s8924_s12 + $0x398] sm:$0xff] }
 0x3f6   :  { %6134 = vmatpush3.bf16.msra.mxu1 %v6133_v19  ;;  %v2755_v19 = vld [vmem:[%s8925_s2 + $0x28] sm:$0xff] }
 0x3f7   :  { %6136 = vmatprep.subr.bf16.mxu1 %v6135_v56  ;;  %v2762_v56 = vld [vmem:[%s8925_s2 + $0x60] sm:$0xf] }
 0x3f8   :  { %3163 = vxpose.xlu0.b32.cont [2/13] (short) (narrow) %v2751_v10, 8  ;;  %v2708_v10 = vld [vmem:[%s8924_s12 + $0x2b0] sm:$0xff] }
 0x3fa   :  { %6138 = vmatpush3.bf16.msra.mxu1 %v6137_v21  ;;  %v2557_v21 = vrot.slane %v8278_v44, %v1684_v18  ;;  %v2705_v18 = vld [vmem:[%s8924_s12 + $0x298] sm:$0xff] }
 0x3fb   :  { %6140 = vmatprep.subr.bf16.mxu1 %v6139_v15  ;;  %v6179_v52 = vpack.c.bf16 %v2705_v18, %v2704_v28  ;;  %v2695_v28 = vld [vmem:[%s8924_s12 + $0x248] sm:$0xff] }
 0x3fc   :  { %3164 = vxpose.xlu0.b32.cont [3/13] (short) (narrow) %v2752_v2, 8  ;;  %v2709_v2 = vld [vmem:[%s8924_s12 + $0x2b8] sm:$0xff] }
 0x3fe   :  { %6142 = vmatpush3.bf16.msra.mxu1 %v6141_v61 }
 0x3ff   :  { %6176 = vmatprep.subr.bf16.mxu1 %v6175_v50  ;;  %v2719_v50 = vld [vmem:[%s8924_s12 + $0x308] sm:$0xff] }
 0x400   :  { %3165 = vxpose.xlu0.b32.cont [4/13] (short) (narrow) %v2753_v57, 8  ;;  %v6185_v57 = vpack.c.bf16 %v2691_v48, %v2690_v41 }
 0x404   :  { %3166 = vxpose.xlu0.b32.cont [5/13] (short) (narrow) %v2754_v14, 8 }
 0x408   :  { %3167 = vxpose.xlu0.b32.cont [6/13] (short) (narrow) %v2755_v19, 8  ;;  %v6209_v19 = vpack.c.bf16 %v2719_v50, %v2718_v36  ;;  %v2726_v36 = vld [vmem:[%s8924_s12 + $0x340] sm:$0xff] }
 0x409   :  { %v2698_v50 = vld [vmem:[%s8924_s12 + $0x260] sm:$0xff] }
 0x40c   :  { %3168 = vxpose.xlu0.b32.cont [7/13] (short) (narrow) %v2756_v43, 8  ;;  %v2720_v43 = vld [vmem:[%s8924_s12 + $0x310] sm:$0xff] }
 0x410   :  { %3169 = vxpose.xlu0.b32.cont [8/13] (short) (narrow) %v2757_v63, 8  ;;  %v2692_v63 = vld [vmem:[%s8924_s12 + $0x230] sm:$0xff] }
 0x414   :  { %3170 = vxpose.xlu0.b32.cont [9/13] (short) (narrow) %v2758_v4, 8  ;;  %v2693_v4 = vld [vmem:[%s8924_s12 + $0x238] sm:$0xff] }
 0x418   :  { %3171 = vxpose.xlu0.b32.cont [10/13] (short) (narrow) %v2759_v45, 8 }
 0x41c   :  { %3172 = vxpose.xlu0.b32.cont [11/13] (short) (narrow) %v2760_v20, 8 }
 0x420   :  { %3173 = vxpose.xlu0.b32.cont [12/13] (short) (narrow) %v2761_v60, 8  ;;  %v6211_v60 = vpack.c.bf16 %v2737_v62, %v2736_v47  ;;  %v2699_v47 = vld [vmem:[%s8924_s12 + $0x268] sm:$0xff] }
 0x424   :  { %3174 = vxpose.xlu0.b32.end [13/13] (short) (narrow) %v2762_v56, 8  ;;  %v2721_v56 = vld [vmem:[%s8924_s12 + $0x318] sm:$0xff] }
 0x425   :  { %v6213_v33 = vpack.c.bf16 %v2721_v56, %v2720_v43  ;;  %v6201_v43 = vpack.c.bf16 %v2699_v47, %v2698_v50  ;;  %v2728_v56 = vld [vmem:[%s8924_s12 + $0x350] sm:$0xff]  ;;  %v2767_v47 = vld [vmem:[%s8927_s8 + $0x20] sm:$0xff] }
 0x44d   :  { %6571 = vset.pattern.permute.xlu0 %v6678_v24 }
 0x486   :  { %v5646_v25 = vpop.f32.mrb[16].mxu1 }
 0x487   :  { %v1665_v16 = vpop.f32.mrb[17].mxu1  ;;  %v2598_v61 = vadd.f32 %v5646_v25, %v2553_v30  ;;  %v6187_v25 = vpack.c.bf16 %v2709_v2, %v2708_v10  ;;  %v2716_v10 = vld [vmem:[%s8924_s12 + $0x2f0] sm:$0xff]  ;;  %v2717_v2 = vld [vmem:[%s8924_s12 + $0x2f8] sm:$0xff] }
 0x488   :  { %v2590_v27 = vadd.f32 %v2553_v30, %v1665_v16  ;;  %v2710_v16 = vld [vmem:[%s8924_s12 + $0x2c0] sm:$0xff]  ;;  %v2711_v30 = vld [vmem:[%s8924_s12 + $0x2c8] sm:$0xff] }
 0x489   :  { %v2614_v26 = vmax.f32 %v2598_v61, 0.0  ;;  %v2740_v61 = vld [vmem:[%s8924_s12 + $0x3b0] sm:$0xff] }
 0x48a   :  { %v2606_v34 = vmax.f32 %v2590_v27, 0.0  ;;  %v2739_v27 = vld [vmem:[%s8924_s12 + $0x3a8] sm:$0xff] }
 0x48b   :  { %v5653_v23 = vpop.f32.mrb[18].mxu1 }
 0x48c   :  { %v1790_v0 = vpop.f32.mrb[19].mxu1  ;;  %v2599_v53 = vadd.f32 %v5653_v23, %v2557_v21  ;;  %v2738_v23 = vld [vmem:[%s8924_s12 + $0x3a0] sm:$0xff] }
 0x48d   :  { %v2591_v15 = vadd.f32 %v2557_v21, %v1790_v0  ;;  %v6189_v0 = vpack.c.bf16 %v2693_v4, %v2692_v63  ;;  %v6215_v18 = vpack.c.bf16 %v2739_v27, %v2738_v23  ;;  %v6203_v4 = vpack.c.bf16 %v2717_v2, %v2716_v10  ;;  %v2770_v10 = vld [vmem:[%s8927_s8 + $0x38] sm:$0xff] }
 0x48e   :  { %v2615_v17 = vmax.f32 %v2599_v53, 0.0  ;;  %v6191_v53 = vpack.c.bf16 %v2711_v30, %v2710_v16  ;;  %v2746_v16 = vld [vmem:[%s8924_s12 + $0x3e0] sm:$0xff]  ;;  %v2747_v30 = vld [vmem:[%s8924_s12 + $0x3e8] sm:$0xff] }
 0x48f   :  { %v2607_v22 = vmax.f32 %v2591_v15, 0.0  ;;  %v5660_v29 = vpop.f32.mrb[20].mxu1  ;;  %v2694_v15 = vld [vmem:[%s8924_s12 + $0x240] sm:$0xff] }
 0x490   :  { %v1915_v40 = vpop.f32.mrb[21].mxu1  ;;  %v2600_v45 = vadd.f32 %v5660_v29, %v2561_v59  ;;  %v2712_v29 = vld [vmem:[%s8924_s12 + $0x2d0] sm:$0xff] }
 0x491   :  { %2841 = vmatprep.mubr.f32.mxu1 %v2607_v22  ;;  %v2592_v46 = vadd.f32 %v2561_v59, %v1915_v40  ;;  %v2723_v22 = vld [vmem:[%s8924_s12 + $0x328] sm:$0xff]  ;;  %v6193_v40 = vpack.c.bf16 %v2695_v28, %v2694_v15  ;;  %v2697_v59 = vld [vmem:[%s8924_s12 + $0x258] sm:$0xff]  ;;  %v2573_v28 = vrot.slane %v8278_v44, %v2184_v6  ;;  %v2732_v6 = vld [vmem:[%s8924_s12 + $0x370] sm:$0xff] }
 0x492   :  { %2842 = vmatmul.mubr.f32.vlgmr.msra.gmra.mrb[30].mxu1 %v2606_v34  ;;  %v2616_v24 = vmax.f32 %v2600_v45, 0.0  ;;  %v2741_v34 = vld [vmem:[%s8924_s12 + $0x3b8] sm:$0xff]  ;;  %v6217_v32 = vpack.c.bf16 %v2723_v22, %v2722_v38  ;;  %v2700_v45 = vld [vmem:[%s8924_s12 + $0x270] sm:$0xff]  ;;  %v6231_v38 = vpack.c.bf16 %v2747_v30, %v2746_v16  ;;  %v2731_v15 = vld [vmem:[%s8924_s12 + $0x368] sm:$0xff] }
 0x493   :  { %2846 = vmatprep.mubr.f32.mxu1 %v2615_v17  ;;  %6178 = vmatpush3.bf16.msra.mxu1 %v6177_v1  ;;  %v2608_v20 = vmax.f32 %v2592_v46, 0.0  ;;  %v2713_v1 = vld [vmem:[%s8924_s12 + $0x2d8] sm:$0xff]  ;;  %v2696_v17 = vld [vmem:[%s8924_s12 + $0x250] sm:$0xff]  ;;  %v6219_v51 = vpack.c.bf16 %v2741_v34, %v2740_v61 }
 0x494   :  { %v5667_v12 = vpop.f32.mrb[22].mxu1  ;;  %6180 = vmatprep.subr.bf16.mxu1 %v6179_v52  ;;  %v8391_v52 = vrot.slane %v8278_v44, %v2434_v11  ;;  %v6195_v42 = vpack.c.bf16 %v2713_v1, %v2712_v29  ;;  %v2725_v11 = vld [vmem:[%s8924_s12 + $0x338] sm:$0xff]  ;;  %v6197_v48 = vpack.c.bf16 %v2697_v59, %v2696_v17 }
 0x495   :  { %v2040_v49 = vpop.f32.mrb[23].mxu1  ;;  %v2601_v54 = vadd.f32 %v5667_v12, %v2565_v5  ;;  %v2714_v12 = vld [vmem:[%s8924_s12 + $0x2e0] sm:$0xff]  ;;  %v2733_v34 = vld [vmem:[%s8924_s12 + $0x378] sm:$0xff] }
 0x496   :  { %v2593_v58 = vadd.f32 %v2565_v5, %v2040_v49  ;;  %2847 = vmatmul.mubr.f32.gmra.mrb[32].mxu1 %v2614_v26  ;;  %v2742_v5 = vld [vmem:[%s8924_s12 + $0x3c0] sm:$0xff]  ;;  %v2743_v26 = vld [vmem:[%s8924_s12 + $0x3c8] sm:$0xff]  ;;  %v6221_v49 = vpack.c.bf16 %v2725_v11, %v2724_v39 }
 0x497   :  { %6182 = vmatpush3.bf16.msra.mxu1 %v6181_v37  ;;  %v2617_v21 = vmax.f32 %v2601_v54, 0.0  ;;  %v6223_v54 = vpack.c.bf16 %v2743_v26, %v2742_v5 }
 0x498   :  { %v2609_v14 = vmax.f32 %v2593_v58, 0.0  ;;  %6184 = vmatprep.subr.bf16.mxu1 %v6183_v7  ;;  %v2715_v7 = vld [vmem:[%s8924_s12 + $0x2e8] sm:$0xff] }
 0x499   :  { %v2727_v58 = vld [vmem:[%s8924_s12 + $0x348] sm:$0xff]  ;;  %v6199_v62 = vpack.c.bf16 %v2715_v7, %v2714_v12 }
 0x49a   :  { %2916 = vmatprep.mubr.f32.mxu0 %v2609_v14  ;;  %v2744_v14 = vld [vmem:[%s8924_s12 + $0x3d0] sm:$0xff]  ;;  %v6225_v63 = vpack.c.bf16 %v2727_v58, %v2726_v36  ;;  %v2766_v36 = vld [vmem:[%s8927_s8 + $0x18] sm:$0xff] }
 0x49b   :  { %2917 = vmatmul.mubr.f32.vlgmr.msra.gmra.mrb[20].mxu0 %v2608_v20  ;;  %6186 = vmatpush3.bf16.msra.mxu1 %v6185_v57  ;;  %v2701_v20 = vld [vmem:[%s8924_s12 + $0x278] sm:$0xff] }
 0x49c   :  { %6210 = vmatpush3.bf16.msra.mxu0 %v6209_v19  ;;  %2921 = vmatprep.mubr.f32.mxu0 %v2617_v21  ;;  %v2745_v19 = vld [vmem:[%s8924_s12 + $0x3d8] sm:$0xff]  ;;  %v6205_v21 = vpack.c.bf16 %v2701_v20, %v2700_v45  ;;  %v2775_v45 = vld [vmem:[%s8927_s8 + $0x60] sm:$0xf]  ;;  %v6685_v20 = vmov 0.0|0.0  }
 0x49d   :  { %6212 = vmatprep.subr.bf16.mxu0 %v6211_v60  ;;  %6188 = vmatprep.subr.bf16.mxu1 %v6187_v25  ;;  %v6227_v60 = vpack.c.bf16 %v2745_v19, %v2744_v14  ;;  %v2729_v25 = vld [vmem:[%s8924_s12 + $0x358] sm:$0xff]  ;;  %v2772_v14 = vld [vmem:[%s8927_s8 + $0x48] sm:$0xff] }
 0x49e   :  { %v6229_v27 = vpack.c.bf16 %v2729_v25, %v2728_v56 }
 0x49f   :  { %2922 = vmatmul.mubr.f32.gmra.mrb[22].mxu0 %v2616_v24  ;;  %6190 = vmatpush3.bf16.msra.mxu1 %v6189_v0  ;;  %v2569_v0 = vrot.slane %v8278_v44, %v2059_v35  ;;  %v2748_v24 = vld [vmem:[%s8924_s12 + $0x3f0] sm:$0xff]  ;;  %v2749_v35 = vld [vmem:[%s8924_s12 + $0x3f8] sm:$0xff] }
 0x4a0   :  { %6214 = vmatpush3.bf16.msra.mxu0 %v6213_v33  ;;  %6192 = vmatprep.subr.bf16.mxu1 %v6191_v53  ;;  %v2730_v53 = vld [vmem:[%s8924_s12 + $0x360] sm:$0xff]  ;;  %v6235_v61 = vpack.c.bf16 %v2749_v35, %v2748_v24 }
 0x4a1   :  { %6216 = vmatprep.subr.bf16.mxu0 %v6215_v18  ;;  %v6233_v22 = vpack.c.bf16 %v2731_v15, %v2730_v53 }
 0x4a2   :  { %v8408_v37 = vpop.f32.mrb[18].mxu0 }
 0x4a3   :  { %v2540_v41 = vpop.f32.mrb[19].mxu0  ;;  %6194 = vmatpush3.bf16.msra.mxu1 %v6193_v40  ;;  %v2605_v26 = vadd.f32 %v8408_v37, %v8391_v52  ;;  %v2765_v37 = vld [vmem:[%s8927_s8 + $0x10] sm:$0xff] }
 0x4a4   :  { %v2597_v46 = vadd.f32 %v8391_v52, %v2540_v41  ;;  %6218 = vmatpush3.bf16.msra.mxu0 %v6217_v32  ;;  %6196 = vmatprep.subr.bf16.mxu1 %v6195_v42  ;;  %v2577_v42 = vrot.slane %v8278_v44, %v2309_v55  ;;  %v2764_v52 = vld [vmem:[%s8927_s8 + $0x8] sm:$0xff]  ;;  %v6243_v50 = vpack.c.bf16 %v2766_v36, %v2765_v37 }
 0x4a5   :  { %6220 = vmatprep.subr.bf16.mxu0 %v6219_v51  ;;  %v6237_v51 = vpack.c.bf16 %v2733_v34, %v2732_v6  ;;  %v2621_v44 = vmax.f32 %v2605_v26, 0.0 }
 0x4a6   :  { %v2613_v57 = vmax.f32 %v2597_v46, 0.0  ;;  %v2763_v46 = vld [vmem:[%s8927_s8] sm:$0xff] }
 0x4a7   :  { %6198 = vmatpush3.bf16.msra.mxu1 %v6197_v48 }
 0x4a8   :  { %6222 = vmatpush3.bf16.msra.mxu0 %v6221_v49  ;;  %3066 = vmatprep.mubr.f32.mxu0 %v2613_v57  ;;  %v6239_v49 = vpack.c.bf16 %v2764_v52, %v2763_v46  ;;  %v2771_v57 = vld [vmem:[%s8927_s8 + $0x40] sm:$0xff] }
 0x4a9   :  { %6224 = vmatprep.subr.bf16.mxu0 %v6223_v54  ;;  %6200 = vmatprep.subr.bf16.mxu1 %v6199_v62  ;;  %v2768_v54 = vld [vmem:[%s8927_s8 + $0x28] sm:$0xff]  ;;  %v2769_v62 = vld [vmem:[%s8927_s8 + $0x30] sm:$0xff]  ;;  %v6255_v19 = vpack.c.bf16 %v2772_v14, %v2771_v57 }
 0x4aa   :  { %v6247_v58 = vpack.c.bf16 %v2768_v54, %v2767_v47  ;;  %v6251_v2 = vpack.c.bf16 %v2770_v10, %v2769_v62 }
 0x4ab   :  { %6202 = vmatpush3.bf16.msra.mxu1 %v6201_v43  ;;  %v2773_v43 = vld [vmem:[%s8927_s8 + $0x50] sm:$0xff] }
 0x4ac   :  { %6226 = vmatpush3.bf16.msra.mxu0 %v6225_v63  ;;  %v5674_v23 = vpop.f32.mrb[24].mxu1  ;;  %6204 = vmatprep.subr.bf16.mxu1 %v6203_v4  ;;  %v2774_v63 = vld [vmem:[%s8927_s8 + $0x58] sm:$0xff]  ;;  %s8929_s8 = sld [smem:[#allocation12_spill]] }
 0x4ad   :  { %v2165_v33 = vpop.f32.mrb[25].mxu1  ;;  %6228 = vmatprep.subr.bf16.mxu0 %v6227_v60  ;;  %v2602_v39 = vadd.f32 %v5674_v23, %v2569_v0  ;;  %v6259_v4 = vpack.c.bf16 %v2774_v63, %v2773_v43 }
 0x4ae   :  { %v2594_v29 = vadd.f32 %v2569_v0, %v2165_v33 }
 0x4af   :  { %6206 = vmatpush3.bf16.msra.mxu1 %v6205_v21  ;;  %v2618_v8 = vmax.f32 %v2602_v39, 0.0 }
 0x4b0   :  { %6230 = vmatpush3.bf16.msra.mxu0 %v6229_v27  ;;  %v5681_v18 = vpop.f32.mrb[26].mxu1  ;;  %v2610_v11 = vmax.f32 %v2594_v29, 0.0  ;;  %6240 = vmatprep.subr.bf16.mxu1 %v6239_v49 }
 0x4b1   :  { %v2290_v1 = vpop.f32.mrb[27].mxu1  ;;  %6232 = vmatprep.subr.bf16.mxu0 %v6231_v38  ;;  %v2603_v40 = vadd.f32 %v5681_v18, %v2573_v28 }
 0x4b2   :  { %v2595_v32 = vadd.f32 %v2573_v28, %v2290_v1 }
 0x4b3   :  { %v2619_v12 = vmax.f32 %v2603_v40, 0.0 }
 0x4b4   :  { %v2611_v17 = vmax.f32 %v2595_v32, 0.0  ;;  %6234 = vmatpush3.bf16.msra.mxu0 %v6233_v22  ;;  %v5688_v59 = vpop.f32.mrb[28].mxu1 }
 0x4b5   :  { %v2415_v5 = vpop.f32.mrb[29].mxu1  ;;  %6236 = vmatprep.subr.bf16.mxu0 %v6235_v61  ;;  %v2604_v55 = vadd.f32 %v5688_v59, %v2577_v42 }
 0x4b6   :  { %v2596_v7 = vadd.f32 %v2577_v42, %v2415_v5  ;;  %2991 = vmatprep.mubr.f32.mxu1 %v2611_v17  ;;  %v3178_v5 = vpop.trf.xlu0 }
 0x4b7   :  { %2992 = vmatmul.mubr.f32.vlgmr.msra.gmra.mrb[34].mxu1 %v2610_v11  ;;  %v2620_v48 = vmax.f32 %v2604_v55, 0.0 }
 0x4b8   :  { %v2612_v41 = vmax.f32 %v2596_v7, 0.0  ;;  %6238 = vmatpush3.bf16.msra.mxu0 %v6237_v51  ;;  %2996 = vmatprep.mubr.f32.mxu1 %v2619_v12 }
 0x4b9   :  { %6242 = vmatpush3.bf16.msra.mxu1 %v6239_v49  ;;  %6263 = vmatprep.subr.bf16.mxu0 %v6685_v20 }
 0x4ba   :  { %6244 = vmatprep.subr.bf16.mxu1 %v6243_v50 }
 0x4bb   :  { %3067 = vmatmul.mubr.f32.vlgmr.msra.gmra.mrb[24].mxu0 %v2612_v41  ;;  %2997 = vmatmul.mubr.f32.gmra.mrb[36].mxu1 %v2618_v8 }
 0x4bc   :  { %3071 = vmatprep.mubr.f32.mxu0 %v2621_v44 }
 0x4bd   :  { %6246 = vmatpush3.bf16.msra.mxu1 %v6243_v50 }
 0x4be   :  { %6248 = vmatprep.subr.bf16.mxu1 %v6247_v58 }
 0x4bf   :  { %3072 = vmatmul.mubr.f32.gmra.mrb[26].mxu0 %v2620_v48 }
 0x4c0   :  { %5729 = vmatprep.mubr.msk.f32.mxu0 %vm6686_vm10, %v6676_v3 }
 0x4c1   :  { %6250 = vmatpush3.bf16.msra.mxu1 %v6247_v58 }
 0x4c2   :  { %6252 = vmatprep.subr.bf16.mxu1 %v6251_v2 }
 0x4c5   :  { %6254 = vmatpush3.bf16.msra.mxu1 %v6251_v2 }
 0x4c6   :  { %6256 = vmatprep.subr.bf16.mxu1 %v6255_v19 }
 0x4c9   :  { %6258 = vmatpush3.bf16.msra.mxu1 %v6255_v19 }
 0x4ca   :  { %6260 = vmatprep.subr.bf16.mxu1 %v6259_v4 }
 0x4cd   :  { %6262 = vmatpush3.bf16.msra.mxu1 %v6259_v4 }
 0x4ce   :  { %5720 = vmatprep.subr.msk.mxu1 %vm375_vm0, %v2775_v45 }
 0x4d1   :  { %5721 = vmatpush3.msk.msra.mxu1 %vm375_vm0, %v2775_v45 }
 0x565   :  { %v5404_v60 = vpop.f32.mrb[30].mxu1 }
 0x566   :  { %v5405_v56 = vpop.f32.mrb[31].mxu1 }
 0x567   :  { %v5406_v25 = vadd.f32 %v5405_v56, %v5404_v60  ;;  %v3402_v60 = vld [vmem:[%s8928_s4] sm:$0xff]  ;;  %v3403_v56 = vld [vmem:[%s8928_s4 + $0x8] sm:$0xff] }
 0x569   :  { %v5407_v16 = vpop.f32.mrb[32].mxu1 }
 0x56a   :  { %v5408_v30 = vpop.f32.mrb[33].mxu1 }
 0x56b   :  { %v5409_v21 = vadd.f32 %v5408_v30, %v5407_v16 }
 0x56e   :  { %v5442_v23 = vpop.f32.mrb[20].mxu0 }
 0x56f   :  { %v5443_v27 = vpop.f32.mrb[21].mxu0 }
 0x570   :  { %v5444_v0 = vadd.f32 %v5443_v27, %v5442_v23  ;;  %v3404_v27 = vld [vmem:[%s8928_s4 + $0x10] sm:$0xff] }
 0x572   :  { %v2919_v33 = vadd.f32 %v5444_v0, %v5406_v25  ;;  %v5445_v38 = vpop.f32.mrb[22].mxu0  ;;  %v6271_v25 = vpack.c.bf16 %v3403_v56, %v3402_v60  ;;  %v3405_v0 = vld [vmem:[%s8928_s4 + $0x18] sm:$0xff] }
 0x573   :  { %v5446_v53 = vpop.f32.mrb[23].mxu0 }
 0x574   :  { %v5447_v15 = vadd.f32 %v5446_v53, %v5445_v38  ;;  %v6275_v53 = vpack.c.bf16 %v3405_v0, %v3404_v27 }
 0x576   :  { %v2924_v28 = vadd.f32 %v5447_v15, %v5409_v21  ;;  %v3406_v15 = vld [vmem:[%s8928_s4 + $0x20] sm:$0xff] }
 0x58a   :  { %v5480_v24 = vpop.f32.mrb[34].mxu1 }
 0x58b   :  { %v5481_v35 = vpop.f32.mrb[35].mxu1 }
 0x58c   :  { %v5482_v18 = vadd.f32 %v5481_v35, %v5480_v24  ;;  %v3408_v35 = vld [vmem:[%s8928_s4 + $0x30] sm:$0xff] }
 0x58e   :  { %v2994_v22 = vadd.f32 %v5482_v18, %v2919_v33  ;;  %v5518_v29 = vpop.f32.mrb[24].mxu0  ;;  %v5483_v1 = vpop.f32.mrb[36].mxu1  ;;  %v3409_v18 = vld [vmem:[%s8928_s4 + $0x38] sm:$0xff] }
 0x58f   :  { %v5519_v61 = vpop.f32.mrb[25].mxu0  ;;  %v5484_v6 = vpop.f32.mrb[37].mxu1 }
 0x590   :  { %v5520_v34 = vadd.f32 %v5519_v61, %v5518_v29  ;;  %v5485_v40 = vadd.f32 %v5484_v6, %v5483_v1  ;;  %v3410_v29 = vld [vmem:[%s8928_s4 + $0x40] sm:$0xff]  ;;  %v3411_v1 = vld [vmem:[%s8928_s4 + $0x48] sm:$0xff]  ;;  %v3412_v6 = vld [vmem:[%s8928_s4 + $0x50] sm:$0xff] }
 0x591   :  { %v6287_v61 = vpack.c.bf16 %v3411_v1, %v3410_v29 }
 0x592   :  { %v3069_v32 = vadd.f32 %v5520_v34, %v2994_v22  ;;  %v2999_v42 = vadd.f32 %v5485_v40, %v2924_v28  ;;  %v5521_v17 = vpop.f32.mrb[26].mxu0  ;;  %v3407_v28 = vld [vmem:[%s8928_s4 + $0x28] sm:$0xff]  ;;  %v6283_v22 = vpack.c.bf16 %v3409_v18, %v3408_v35  ;;  %v3413_v34 = vld [vmem:[%s8928_s4 + $0x58] sm:$0xff] }
 0x593   :  { %v5522_v59 = vpop.f32.mrb[27].mxu0  ;;  %v6279_v24 = vpack.c.bf16 %v3407_v28, %v3406_v15  ;;  %v6291_v40 = vpack.c.bf16 %v3413_v34, %v3412_v6 }
 0x594   :  { %v5523_v51 = vadd.f32 %v5522_v59, %v5521_v17  ;;  %5722 = vmatprep.mubr.msk.f32.mxu1 %vm3077_vm11, %v3069_v32  ;;  %v3426_v17 = vld [vmem:[%s8929_s8 + $0x8] sm:$0xff]  ;;  %v3427_v59 = vld [vmem:[%s8929_s8 + $0x10] sm:$0xff] }
 0x596   :  { %v3074_v39 = vadd.f32 %v5523_v51, %v2999_v42  ;;  %v3425_v42 = vld [vmem:[%s8929_s8] sm:$0xff] }
 0x597   :  { %v6295_v51 = vpack.c.bf16 %v3426_v17, %v3425_v42 }
 0x598   :  { %v6264_v11 = vpack.c.bf16 %v3074_v39, %v3069_v32  ;;  %5723 = vmatmul.mubr.msk.f32.vlgmr.msra.gmra.mrb[38].mxu1 %vm3077_vm11, %v3074_v39  ;;  %v3414_v32 = vld [vmem:[%s8928_s4 + $0x60] sm:$0xf]  ;;  %v3428_v39 = vld [vmem:[%s8929_s8 + $0x18] sm:$0xff] }
 0x599   :  { %6296 = vmatprep.subr.bf16.mxu1 %v6295_v51 }
 0x59a   :  { %6266 = vmatpush3.bf16.xpose.msk.msra.mxu0 %vm6265_vm12, %v6264_v11  ;;  %6298 = vmatpush3.bf16.msra.mxu1 %v6295_v51 }
 0x59b   :  { %6268 = vmatprep.subr.bf16.mxu0 %v6264_v11 }
 0x5a1   :  { %5730 = vmatmul.mubr.msk.f32.vlgmr.msra.gmra.mrb[28].mxu0 %vm3077_vm11, %v3178_v5  ;;  %v3429_v5 = vld [vmem:[%s8929_s8 + $0x20] sm:$0xff] }
 0x5a2   :  { %6270 = vmatpush3.bf16.msra.mxu0 %v6264_v11  ;;  %v6299_v11 = vpack.c.bf16 %v3428_v39, %v3427_v59  ;;  %v3842_v39 = vld [vmem:[%s8884_s14] sm:$0xff] }
 0x5a3   :  { %6272 = vmatprep.subr.bf16.mxu0 %v6271_v25 }
 0x5a4   :  { %6300 = vmatprep.subr.bf16.mxu1 %v6299_v11 }
 0x5a5   :  { %6302 = vmatpush3.bf16.msra.mxu1 %v6299_v11  ;;  %v3843_v11 = vld [vmem:[%s8884_s14 + $0x8] sm:$0xff] }
 0x66b   :  { %v5724_v26 = vpop.f32.mrb[38].mxu1 }
 0x66c   :  { %v3153_v12 = vpop.f32.mrb[39].mxu1 }
 0x66d   :  { %3269 = vperm.xlu1 %6570, %v3153_v12   ;;  %v3415_v12 = vld [vmem:[%s8882_s11] sm:$0xff] }
 0x671   :  { %3274 = vperm.xlu1 %6570, %v5724_v26   ;;  %v3430_v26 = vld [vmem:[%s8929_s8 + $0x28] sm:$0xff] }
 0x674   :  { %v3263_v7 = vpop.f32.mrb[28].mxu0 }
 0x675   :  { %v5731_v41 = vpop.f32.mrb[29].mxu0  ;;  %v3280_v8 = vrot.slane %v3263_v7, %v7765_v9  ;;  %v6303_v7 = vpack.c.bf16 %v3430_v26, %v3429_v5  ;;  %v3844_v5 = vld [vmem:[%s8884_s14 + $0x10] sm:$0xff]  ;;  %v6323_v26 = vpack.c.bf16 %v3843_v11, %v3842_v39 }
 0x676   :  { %v3431_v41 = vld [vmem:[%s8929_s8 + $0x30] sm:$0xff] }
 0x677   :  { %6304 = vmatprep.subr.bf16.mxu1 %v6303_v7 }
 0x678   :  { %6306 = vmatpush3.bf16.msra.mxu1 %v6303_v7 }
 0x6ec   :  { %v3270_v55 = vpop.permute.xlu1 %3269 }
 0x6ed   :  { %v3281_v44 = vadd.f32 %v3280_v8, %v3270_v55 }
 0x6ef   :  { %v3285_v48 = vmul.f32 0.2, %v3281_v44  ;;  %vm3283_vm13 = vcmp.gt.f32.partialorder %v3281_v44, 0.0 }
 0x6f0   :  { %v3275_v46 = vpop.permute.xlu1 %3274 }
 0x6f1   :  { %v3282_v52 = vadd.f32 %v3280_v8, %v3275_v46  ;;  %v3287_v37 = vsel %vm3283_vm13, %v3281_v44, %v3285_v48  ;;  %v3432_v8 = vld [vmem:[%s8929_s8 + $0x38] sm:$0xff]  ;;  %v3433_v44 = vld [vmem:[%s8929_s8 + $0x40] sm:$0xff]  ;;  %v3434_v48 = vld [vmem:[%s8929_s8 + $0x48] sm:$0xff] }
 0x6f2   :  { %v3289_v49 = vsel %vm1566_vm3, %v3287_v37, -1e+30  ;;  %v6307_v55 = vpack.c.bf16 %v3432_v8, %v3431_v41  ;;  %v6311_v46 = vpack.c.bf16 %v3434_v48, %v3433_v44  ;;  %v3846_v41 = vld [vmem:[%s8884_s14 + $0x20] sm:$0xff]  ;;  %v3847_v8 = vld [vmem:[%s8884_s14 + $0x28] sm:$0xff]  ;;  %v3848_v44 = vld [vmem:[%s8884_s14 + $0x30] sm:$0xff] }
 0x6f3   :  { %v3286_v36 = vmul.f32 0.2, %v3282_v52  ;;  %v3291_v50 = vsel %vm1570_vm4, %v3289_v49, -inf  ;;  %vm3284_vm14 = vcmp.gt.f32.partialorder %v3282_v52, 0.0  ;;  %v3849_v48 = vld [vmem:[%s8884_s14 + $0x38] sm:$0xff]  ;;  %vm6373_vm13 = vmpackc.low %vm368_vm1, %vm368_vm1 }
 0x6f4   :  { %3292 = vmax.xlane.f32.xlu1 %v3291_v50  ;;  %6308 = vmatprep.subr.bf16.mxu1 %v6307_v55 }
 0x6f5   :  { %v3288_v47 = vsel %vm3284_vm14, %v3282_v52, %v3286_v36  ;;  %6310 = vmatpush3.bf16.msra.mxu1 %v6307_v55  ;;  %v5141_v52 = vld [vmem:[%s8883_s9] ss:$0 sm:$0xff]  ;;  %v6331_v55 = vpack.c.bf16 %v3847_v8, %v3846_v41 }
 0x6f6   :  { %v3290_v54 = vsel %vm1567_vm7, %v3288_v47, -1e+30  ;;  %6312 = vmatprep.subr.bf16.mxu1 %v6311_v46 }
 0x6f7   :  { %v3294_v58 = vsel %vm1570_vm4, %v3290_v54, -inf }
 0x6f8   :  { %3295 = vmax.xlane.f32.xlu1 %v3294_v58  ;;  %v3416_v58 = vld [vmem:[%s8882_s11 + $0x8] sm:$0xff] }
 0x6f9   :  { %6314 = vmatpush3.bf16.msra.mxu1 %v6311_v46  ;;  %v6335_v46 = vpack.c.bf16 %v3849_v48, %v3848_v44 }
 0x781   :  { %v3293_v62 = vpop.xlane.xlu1 %3292 }
 0x782   :  { %v3297_v10 = vsub.f32 %v3289_v49, %v3293_v62  ;;  %v3417_v62 = vld [vmem:[%s8882_s11 + $0x10] sm:$0xff] }
 0x784   :  { %v3299_v2 = vmul.f32 1.442695, %v3297_v10  ;;  %v3418_v10 = vld [vmem:[%s8882_s11 + $0x18] sm:$0xff] }
 0x785   :  { %v3296_v57 = vpop.xlane.xlu1 %3295 }
 0x786   :  { %6636 = vpow2.f32 %v3299_v2  ;;  %v3298_v14 = vsub.f32 %v3290_v54, %v3296_v57  ;;  %v3419_v2 = vld [vmem:[%s8882_s11 + $0x20] sm:$0xff]  ;;  %v3420_v57 = vld [vmem:[%s8882_s11 + $0x28] sm:$0xff] }
 0x788   :  { %v3301_v19 = vmul.f32 1.442695, %v3298_v14  ;;  %v3421_v14 = vld [vmem:[%s8882_s11 + $0x30] sm:$0xff] }
 0x78a   :  { %6638 = vpow2.f32 %v3301_v19  ;;  %v3422_v19 = vld [vmem:[%s8882_s11 + $0x38] sm:$0xff] }
 0x790   :  { %v6637_v43 = vpop.eup %6636 }
 0x791   :  { %v3303_v63 = vsel %vm1570_vm4, %v6637_v43, 0.0 }
 0x792   :  { %3304 = vadd.xlane.f32.xlu1 %v3303_v63  ;;  %v3424_v63 = vld [vmem:[%s8882_s11 + $0x48] sm:$0xff] }
 0x794   :  { %v6639_v4 = vpop.eup %6638 }
 0x795   :  { %v3306_v45 = vsel %vm1570_vm4, %v6639_v4, 0.0 }
 0x796   :  { %3307 = vadd.xlane.f32.xlu1 %v3306_v45 }
 0x7c9   :  { %3602 = vxpose.xlu1.b32.start [1/10] (short) (narrow) %v3415_v12, 8  ;;  %v3845_v12 = vld [vmem:[%s8884_s14 + $0x18] sm:$0xff] }
 0x7ca   :  { %v6327_v7 = vpack.c.bf16 %v3845_v12, %v3844_v5 }
 0x7cd   :  { %3603 = vxpose.xlu1.b32.cont [2/10] (short) (narrow) %v3416_v58, 8  ;;  %v3851_v58 = vld [vmem:[%s8884_s14 + $0x48] sm:$0xff] }
 0x7d1   :  { %3604 = vxpose.xlu1.b32.cont [3/10] (short) (narrow) %v3417_v62, 8 }
 0x7d5   :  { %3605 = vxpose.xlu1.b32.cont [4/10] (short) (narrow) %v3418_v10, 8  ;;  %v3852_v10 = vld [vmem:[%s8885_s15] sm:$0xff] }
 0x7d9   :  { %3606 = vxpose.xlu1.b32.cont [5/10] (short) (narrow) %v3419_v2, 8  ;;  %v3853_v2 = vld [vmem:[%s8885_s15 + $0x8] sm:$0xff] }
 0x7dd   :  { %3607 = vxpose.xlu1.b32.cont [6/10] (short) (narrow) %v3420_v57, 8  ;;  %v3857_v57 = vld [vmem:[%s8886_s16] sm:$0xff] }
 0x7e1   :  { %3608 = vxpose.xlu1.b32.cont [7/10] (short) (narrow) %v3421_v14, 8  ;;  %v3858_v14 = vld [vmem:[%s8886_s16 + $0x8] sm:$0xff] }
 0x7e5   :  { %3609 = vxpose.xlu1.b32.cont [8/10] (short) (narrow) %v3422_v19, 8  ;;  %v3859_v19 = vld [vmem:[%s8886_s16 + $0x10] sm:$0xff] }
 0x81f   :  { %v3305_v16 = vpop.xlane.xlu1 %3304 }
 0x820   :  { %6640 = vrcp.f32 %v3305_v16 }
 0x823   :  { %v3308_v30 = vpop.xlane.xlu1 %3307 }
 0x824   :  { %6642 = vrcp.f32 %v3308_v30 }
 0x82a   :  { %v6641_v21 = vpop.eup %6640 }
 0x82b   :  { %v3310_v23 = vmul.f32 %v6641_v21, %v6637_v43  ;;  %v3423_v43 = vld [vmem:[%s8882_s11 + $0x40] sm:$0xff] }
 0x82c   :  { %3610 = vxpose.xlu1.b32.cont [9/10] (short) (narrow) %v3423_v43, 8  ;;  %v3860_v43 = vld [vmem:[%s8886_s16 + $0x18] sm:$0xff] }
 0x82d   :  { %5736 = vmatprep.mubr.msk.f32.mxu0 %vm1570_vm4, %v3310_v23 }
 0x82e   :  { %v6643_v33 = vpop.eup %6642 }
 0x82f   :  { %v3312_v38 = vmul.f32 %v6643_v33, %v6639_v4 }
 0x830   :  { %3611 = vxpose.xlu1.b32.end [10/10] (short) (narrow) %v3424_v63, 8  ;;  %v6343_v63 = vpack.c.bf16 %v3858_v14, %v3857_v57  ;;  %v4270_v14 = vld [vmem:[%s8888_s18 + $0x20] sm:$0xff] }
 0x831   :  { %5737 = vmatmul.mubr.msk.f32.vlgmr.msra.gmra.mrb[30].mxu0 %vm1570_vm4, %v3312_v38 }
 0x832   :  { %6274 = vmatpush3.bf16.msra.mxu0 %v6271_v25 }
 0x833   :  { %6276 = vmatprep.subr.bf16.mxu0 %v6275_v53 }
 0x836   :  { %6278 = vmatpush3.bf16.msra.mxu0 %v6275_v53 }
 0x837   :  { %6280 = vmatprep.subr.bf16.mxu0 %v6279_v24 }
 0x83a   :  { %6282 = vmatpush3.bf16.msra.mxu0 %v6279_v24 }
 0x83b   :  { %6284 = vmatprep.subr.bf16.mxu0 %v6283_v22 }
 0x83e   :  { %6286 = vmatpush3.bf16.msra.mxu0 %v6283_v22 }
 0x83f   :  { %6288 = vmatprep.subr.bf16.mxu0 %v6287_v61 }
 0x842   :  { %6290 = vmatpush3.bf16.msra.mxu0 %v6287_v61 }
 0x843   :  { %6292 = vmatprep.subr.bf16.mxu0 %v6291_v40 }
 0x846   :  { %6294 = vmatpush3.bf16.msra.mxu0 %v6291_v40 }
 0x847   :  { %5763 = vmatprep.subr.msk.mxu0 %vm375_vm0, %v3414_v32 }
 0x84a   :  { %5764 = vmatpush3.msk.msra.mxu0 %vm375_vm0, %v3414_v32 }
 0x84b   :  { %6315 = vmatprep.subr.bf16.mxu0 %v6685_v20 }
 0x88c   :  { %v3618_v56 = vpop.trf.xlu1 }
 0x904   :  { %v5738_v37 = vpop.f32.mrb[30].mxu0 }
 0x905   :  { %v3397_v49 = vadd.f32 %v5738_v37, %v5141_v52  ;;  %v3391_v36 = vpop.f32.mrb[31].mxu0 }
 0x906   :  { %v3392_v50 = vadd.f32 %v5141_v52, %v3391_v36 }
 0x907   :  { %v3401_v54 = vmax.f32 %v3397_v49, 0.0 }
 0x908   :  { %v3400_v47 = vmax.f32 %v3392_v50, 0.0 }
 0x90a   :  { %5765 = vmatprep.mubr.msk.f32.mxu0 %vm3077_vm11, %v3400_v47 }
 0x90b   :  { %5766 = vmatmul.mubr.msk.f32.vlgmr.msra.gmra.mrb[32].mxu0 %vm3077_vm11, %v3401_v54  ;;  %v3850_v54 = vld [vmem:[%s8884_s14 + $0x40] sm:$0xff] }
 0x90c   :  { %5795 = vmatprep.mubr.msk.f32.mxu0 %vm6686_vm10, %v6676_v3  ;;  %v6339_v62 = vpack.c.bf16 %v3851_v58, %v3850_v54 }
 0x9de   :  { %v5767_v4 = vpop.f32.mrb[32].mxu0 }
 0x9df   :  { %v3511_v45 = vpop.f32.mrb[33].mxu0 }
 0x9e0   :  { %v6316_v60 = vpack.c.bf16 %v5767_v4, %v3511_v45  ;;  %5788 = vmatprep.mubr.msk.f32.mxu1 %vm3520_vm15, %v3511_v45  ;;  %v3854_v45 = vld [vmem:[%s8885_s15 + $0x10] sm:$0xff] }
 0x9e1   :  { %5789 = vmatmul.mubr.msk.f32.vlgmr.msra.gmra.mrb[40].mxu1 %vm3520_vm15, %v5767_v4  ;;  %v6347_v4 = vpack.c.bf16 %v3860_v43, %v3859_v19  ;;  %v4274_v19 = vld [vmem:[%s8889_s20] sm:$0xff]  ;;  %v4275_v43 = vld [vmem:[%s8889_s20 + $0x8] sm:$0xff] }
 0x9e2   :  { %6318 = vmatpush3.bf16.xpose.msk.msra.mxu0 %vm6317_vm2, %v6316_v60  ;;  %6320 = vmatprep.subr.bf16.mxu1 %v6316_v60  ;;  %vm4780_vm2 = vcmask 1042432  }
 0x9e3   :  { %6322 = vmatpush3.bf16.msra.mxu1 %v6316_v60  ;;  %6324 = vmatprep.subr.bf16.mxu0 %v6323_v26  ;;  %v3861_v60 = vld [vmem:[%s8886_s16 + $0x20] sm:$0xff] }
 0x9e4   :  { %6344 = vmatprep.subr.bf16.mxu1 %v6343_v63 }
 0x9e9   :  { %5796 = vmatmul.mubr.msk.f32.vlgmr.msra.gmra.mrb[34].mxu0 %vm3520_vm15, %v3618_v56  ;;  %v3855_v56 = vld [vmem:[%s8885_s15 + $0x18] sm:$0xff] }
 0x9ea   :  { %6326 = vmatpush3.bf16.msra.mxu0 %v6323_v26 }
 0x9eb   :  { %6328 = vmatprep.subr.bf16.mxu0 %v6327_v7 }
 0x9ee   :  { %6330 = vmatpush3.bf16.msra.mxu0 %v6327_v7 }
 0x9ef   :  { %6332 = vmatprep.subr.bf16.mxu0 %v6331_v55 }
 0x9f2   :  { %6334 = vmatpush3.bf16.msra.mxu0 %v6331_v55 }
 0x9f3   :  { %6336 = vmatprep.subr.bf16.mxu0 %v6335_v46 }
 0x9f6   :  { %6338 = vmatpush3.bf16.msra.mxu0 %v6335_v46 }
 0x9f7   :  { %6340 = vmatprep.subr.bf16.mxu0 %v6339_v62 }
 0x9fa   :  { %6342 = vmatpush3.bf16.msra.mxu0 %v6339_v62 }
 0xab4   :  { %v5790_v25 = vpop.f32.mrb[40].mxu1 }
 0xab5   :  { %v3593_v16 = vpop.f32.mrb[41].mxu1 }
 0xab6   :  { %3709 = vperm.xlu0 %6571, %v3593_v16   ;;  %v5152_v16 = vld [vmem:[%s8887_s13] ss:$0 sm:$0xff] }
 0xaba   :  { %3714 = vperm.xlu0 %6571, %v5790_v25   ;;  %v3856_v25 = vld [vmem:[%s8885_s15 + $0x20] sm:$0xff] }
 0xabc   :  { %v3703_v30 = vpop.f32.mrb[34].mxu0 }
 0xabd   :  { %v5797_v21 = vpop.f32.mrb[35].mxu0  ;;  %v3720_v23 = vrot.slane %v3703_v30, %v7765_v9 }
 0xb35   :  { %v3710_v27 = vpop.permute.xlu0 %3709 }
 0xb36   :  { %v3721_v0 = vadd.f32 %v3720_v23, %v3710_v27 }
 0xb38   :  { %v3725_v33 = vmul.f32 0.2, %v3721_v0  ;;  %vm3723_vm5 = vcmp.gt.f32.partialorder %v3721_v0, 0.0 }
 0xb39   :  { %v3715_v38 = vpop.permute.xlu0 %3714 }
 0xb3a   :  { %v3722_v53 = vadd.f32 %v3720_v23, %v3715_v38  ;;  %v3727_v15 = vsel %vm3723_vm5, %v3721_v0, %v3725_v33 }
 0xb3b   :  { %v3729_v28 = vsel %vm1566_vm3, %v3727_v15, -1e+30 }
 0xb3c   :  { %v3726_v24 = vmul.f32 0.2, %v3722_v53  ;;  %v3731_v35 = vsel %vm1570_vm4, %v3729_v28, -inf  ;;  %vm3724_vm6 = vcmp.gt.f32.partialorder %v3722_v53, 0.0 }
 0xb3d   :  { %3732 = vmax.xlane.f32.xlu0 %v3731_v35 }
 0xb3e   :  { %v3728_v18 = vsel %vm3724_vm6, %v3722_v53, %v3726_v24 }
 0xb3f   :  { %v3730_v22 = vsel %vm1567_vm7, %v3728_v18, -1e+30 }
 0xb40   :  { %v3734_v29 = vsel %vm1570_vm4, %v3730_v22, -inf }
 0xb41   :  { %3735 = vmax.xlane.f32.xlu1 %v3734_v29 }
 0xbca   :  { %v3733_v1 = vpop.xlane.xlu0 %3732 }
 0xbcb   :  { %v3737_v61 = vsub.f32 %v3729_v28, %v3733_v1 }
 0xbcd   :  { %v3739_v6 = vmul.f32 1.442695, %v3737_v61 }
 0xbce   :  { %v3736_v34 = vpop.xlane.xlu1 %3735 }
 0xbcf   :  { %6644 = vpow2.f32 %v3739_v6  ;;  %v3738_v40 = vsub.f32 %v3730_v22, %v3736_v34 }
 0xbd1   :  { %v3741_v32 = vmul.f32 1.442695, %v3738_v40 }
 0xbd3   :  { %6646 = vpow2.f32 %v3741_v32 }
 0xbd9   :  { %v6645_v42 = vpop.eup %6644 }
 0xbda   :  { %v3743_v17 = vsel %vm1570_vm4, %v6645_v42, 0.0 }
 0xbdb   :  { %3744 = vadd.xlane.f32.xlu0 %v3743_v17 }
 0xbdd   :  { %v6647_v59 = vpop.eup %6646 }
 0xbde   :  { %v3746_v51 = vsel %vm1570_vm4, %v6647_v59, 0.0 }
 0xbdf   :  { %3747 = vadd.xlane.f32.xlu0 %v3746_v51 }
 0xc0c   :  { %4026 = vxpose.xlu0.b32.start [1/5] (short) (narrow) %v3852_v10, 8  ;;  %v4268_v10 = vld [vmem:[%s8888_s18 + $0x10] sm:$0xff] }
 0xc10   :  { %4027 = vxpose.xlu0.b32.cont [2/5] (short) (narrow) %v3853_v2, 8  ;;  %v4269_v2 = vld [vmem:[%s8888_s18 + $0x18] sm:$0xff] }
 0xc11   :  { %v6363_v57 = vpack.c.bf16 %v4269_v2, %v4268_v10  ;;  %v4687_v10 = vld [vmem:[%s8893_s24] sm:$0x7] }
 0xc12   :  { %v4686_v2 = vld [vmem:[%s8894_s23] sm:$0x7] }
 0xc14   :  { %4028 = vxpose.xlu0.b32.cont [3/5] (short) (narrow) %v3854_v45, 8  ;;  %v4276_v45 = vld [vmem:[%s8889_s20 + $0x10] sm:$0xf] }
 0xc18   :  { %4029 = vxpose.xlu0.b32.cont [4/5] (short) (narrow) %v3855_v56, 8 }
 0xc1c   :  { %4030 = vxpose.xlu0.b32.end [5/5] (short) (narrow) %v3856_v25, 8 }
 0xc68   :  { %v3745_v52 = vpop.xlane.xlu0 %3744 }
 0xc69   :  { %6648 = vrcp.f32 %v3745_v52  ;;  %v4266_v52 = vld [vmem:[%s8888_s18] sm:$0xff] }
 0xc6c   :  { %v3748_v37 = vpop.xlane.xlu0 %3747 }
 0xc6d   :  { %6650 = vrcp.f32 %v3748_v37  ;;  %v4267_v37 = vld [vmem:[%s8888_s18 + $0x8] sm:$0xff] }
 0xc73   :  { %v6649_v49 = vpop.eup %6648 }
 0xc74   :  { %v3750_v36 = vmul.f32 %v6649_v49, %v6645_v42  ;;  %v6359_v49 = vpack.c.bf16 %v4267_v37, %v4266_v52 }
 0xc76   :  { %5802 = vmatprep.mubr.msk.f32.mxu1 %vm1570_vm4, %v3750_v36  ;;  %6360 = vmatprep.subr.bf16.mxu0 %v6359_v49 }
 0xc77   :  { %v6651_v50 = vpop.eup %6650 }
 0xc78   :  { %v3752_v47 = vmul.f32 %v6651_v50, %v6647_v59 }
 0xc7a   :  { %5803 = vmatmul.mubr.msk.f32.vlgmr.msra.gmra.mrb[42].mxu1 %vm1570_vm4, %v3752_v47 }
 0xc7b   :  { %6346 = vmatpush3.bf16.msra.mxu1 %v6343_v63  ;;  %v6367_v63 = vpack.c.bf16 %v4275_v43, %v4274_v19 }
 0xc7c   :  { %6348 = vmatprep.subr.bf16.mxu1 %v6347_v4 }
 0xc7f   :  { %6350 = vmatpush3.bf16.msra.mxu1 %v6347_v4  ;;  %v4271_v4 = vld [vmem:[%s8890_s19] sm:$0xff] }
 0xc80   :  { %5836 = vmatprep.subr.mxu1 %v3861_v60 }
 0xc83   :  { %5837 = vmatpush3.msra.mxu1 %v3861_v60  ;;  %v5162_v60 = vld [vmem:[%s8891_s17] ss:$0 sm:$0xff] }
 0xc84   :  { %6351 = vmatprep.subr.bf16.mxu1 %v6685_v20 }
 0xc8c   :  { %v4042_v28 = vpop.trf.xlu0 }
 0xd4d   :  { %v5804_v30 = vpop.f32.mrb[42].mxu1 }
 0xd4e   :  { %v3837_v21 = vadd.f32 %v5804_v30, %v5152_v16  ;;  %v3831_v23 = vpop.f32.mrb[43].mxu1 }
 0xd4f   :  { %v3832_v27 = vadd.f32 %v5152_v16, %v3831_v23 }
 0xd50   :  { %v3841_v33 = vmax.f32 %v3837_v21, 0.0 }
 0xd51   :  { %v3840_v0 = vmax.f32 %v3832_v27, 0.0  ;;  %v4272_v27 = vld [vmem:[%s8890_s19 + $0x8] sm:$0xff] }
 0xd53   :  { %5825 = vmatprep.mubr.msk.f32.mxu0 %vm3520_vm15, %v3840_v0  ;;  %v4273_v0 = vld [vmem:[%s8890_s19 + $0x10] sm:$0xf] }
 0xd54   :  { %5826 = vmatmul.mubr.msk.f32.vlgmr.msra.gmra.mrb[36].mxu0 %vm3520_vm15, %v3841_v33 }
 0xd55   :  { %6362 = vmatpush3.bf16.msra.mxu0 %v6359_v49 }
 0xd56   :  { %6364 = vmatprep.subr.bf16.mxu0 %v6363_v57 }
 0xd59   :  { %6366 = vmatpush3.bf16.msra.mxu0 %v6363_v57  ;;  %v5173_v57 = vld [vmem:[%s8895_s21] ss:$0 sm:$0xff] }
 0xd5a   :  { %5863 = vmatprep.subr.mxu0 %v4270_v14 }
 0xd5d   :  { %5864 = vmatpush3.msra.mxu0 %v4270_v14 }
 0xe27   :  { %v5827_v38 = vpop.f32.mrb[36].mxu0 }
 0xe28   :  { %v3935_v53 = vpop.f32.mrb[37].mxu0 }
 0xe29   :  { %v6352_v15 = vpack.c.bf16 %v5827_v38, %v3935_v53  ;;  %5838 = vmatprep.mubr.msk.f32.mxu1 %vm3944_vm8, %v3935_v53 }
 0xe2a   :  { %5839 = vmatmul.mubr.msk.f32.vlgmr.msra.gmra.mrb[44].mxu1 %vm3944_vm8, %v5827_v38 }
 0xe2b   :  { %6354 = vmatpush3.bf16.xpose.msk.msra.mxu1 %vm6353_vm9, %v6352_v15  ;;  %5845 = vmatprep.mubr.msk.f32.mxu1 %vm6686_vm10, %v6676_v3 }
 0xe2c   :  { %6356 = vmatprep.subr.bf16.mxu1 %v6352_v15 }
 0xe32   :  { %5846 = vmatmul.mubr.msk.f32.vlgmr.msra.gmra.mrb[46].mxu1 %vm3944_vm8, %v4042_v28 }
 0xe33   :  { %6358 = vmatpush3.bf16.msra.mxu1 %v6352_v15 }
 0xe34   :  { %6368 = vmatprep.subr.bf16.mxu1 %v6367_v63 }
 0xefd   :  { %v5840_v24 = vpop.f32.mrb[44].mxu1 }
 0xefe   :  { %v4017_v35 = vpop.f32.mrb[45].mxu1 }
 0xeff   :  { %4133 = vperm.xlu1 %6570, %v4017_v35  }
 0xf03   :  { %4138 = vperm.xlu1 %6570, %v5840_v24  }
 0xf05   :  { %v4127_v18 = vpop.f32.mrb[46].mxu1 }
 0xf06   :  { %v5847_v22 = vpop.f32.mrb[47].mxu1  ;;  %v4144_v29 = vrot.slane %v4127_v18, %v7765_v9 }
 0xf7e   :  { %v4134_v1 = vpop.permute.xlu1 %4133 }
 0xf7f   :  { %v4145_v61 = vadd.f32 %v4144_v29, %v4134_v1 }
 0xf81   :  { %v4149_v6 = vmul.f32 0.2, %v4145_v61  ;;  %vm4147_vm11 = vcmp.gt.f32.partialorder %v4145_v61, 0.0 }
 0xf82   :  { %v4139_v34 = vpop.permute.xlu1 %4138 }
 0xf83   :  { %v4146_v40 = vadd.f32 %v4144_v29, %v4139_v34  ;;  %v4151_v32 = vsel %vm4147_vm11, %v4145_v61, %v4149_v6 }
 0xf84   :  { %v4153_v42 = vsel %vm1566_vm3, %v4151_v32, -1e+30 }
 0xf85   :  { %v4150_v17 = vmul.f32 0.2, %v4146_v40  ;;  %v4155_v59 = vsel %vm1570_vm4, %v4153_v42, -inf  ;;  %vm4148_vm12 = vcmp.gt.f32.partialorder %v4146_v40, 0.0 }
 0xf86   :  { %4156 = vmax.xlane.f32.xlu1 %v4155_v59 }
 0xf87   :  { %v4152_v51 = vsel %vm4148_vm12, %v4146_v40, %v4150_v17 }
 0xf88   :  { %v4154_v39 = vsel %vm1567_vm7, %v4152_v51, -1e+30 }
 0xf89   :  { %v4158_v11 = vsel %vm1570_vm4, %v4154_v39, -inf }
 0xf8a   :  { %4159 = vmax.xlane.f32.xlu0 %v4158_v11 }
0x1013   :  { %v4157_v5 = vpop.xlane.xlu1 %4156 }
0x1014   :  { %v4161_v26 = vsub.f32 %v4153_v42, %v4157_v5 }
0x1016   :  { %v4163_v12 = vmul.f32 1.442695, %v4161_v26 }
0x1017   :  { %v4160_v7 = vpop.xlane.xlu0 %4159 }
0x1018   :  { %6652 = vpow2.f32 %v4163_v12  ;;  %v4162_v41 = vsub.f32 %v4154_v39, %v4160_v7 }
0x101a   :  { %v4165_v8 = vmul.f32 1.442695, %v4162_v41 }
0x101c   :  { %6654 = vpow2.f32 %v4165_v8 }
0x1022   :  { %v6653_v55 = vpop.eup %6652 }
0x1023   :  { %v4167_v44 = vsel %vm1570_vm4, %v6653_v55, 0.0 }
0x1024   :  { %4168 = vadd.xlane.f32.xlu1 %v4167_v44 }
0x1026   :  { %v6655_v48 = vpop.eup %6654 }
0x1027   :  { %v4170_v46 = vsel %vm1570_vm4, %v6655_v48, 0.0 }
0x1028   :  { %4171 = vadd.xlane.f32.xlu1 %v4170_v46 }
0x105b   :  { %4443 = vxpose.xlu1.b32.start [1/3] (short) (narrow) %v4271_v4, 8 }
0x105f   :  { %4444 = vxpose.xlu1.b32.cont [2/3] (short) (narrow) %v4272_v27, 8 }
0x1063   :  { %4445 = vxpose.xlu1.b32.end [3/3] (short) (narrow) %v4273_v0, 8 }
0x10b1   :  { %v4169_v36 = vpop.xlane.xlu1 %4168 }
0x10b2   :  { %6656 = vrcp.f32 %v4169_v36 }
0x10b5   :  { %v4172_v50 = vpop.xlane.xlu1 %4171 }
0x10b6   :  { %6658 = vrcp.f32 %v4172_v50 }
0x10bc   :  { %v6657_v47 = vpop.eup %6656 }
0x10bd   :  { %v4174_v54 = vmul.f32 %v6657_v47, %v6653_v55  ;;  %v4683_v47 = vld [vmem:[%s8892_s22] sm:$0xff] }
0x10bf   :  { %5852 = vmatprep.mubr.msk.f32.mxu1 %vm1570_vm4, %v4174_v54  ;;  %v4684_v54 = vld [vmem:[%s8892_s22 + $0x8] sm:$0xff] }
0x10c0   :  { %v6659_v58 = vpop.eup %6658 }
0x10c1   :  { %v4176_v62 = vmul.f32 %v6659_v58, %v6655_v48  ;;  %v6379_v58 = vpack.c.bf16 %v4684_v54, %v4683_v47 }
0x10c3   :  { %5853 = vmatmul.mubr.msk.f32.vlgmr.msra.gmra.mrb[48].mxu1 %vm1570_vm4, %v4176_v62  ;;  %v4685_v62 = vld [vmem:[%s8892_s22 + $0x10] sm:$0xf] }
0x10c4   :  { %6370 = vmatpush3.bf16.msra.mxu1 %v6367_v63 }
0x10c5   :  { %5872 = vmatprep.subr.msk.mxu1 %vm375_vm0, %v4276_v45 }
0x10c8   :  { %5873 = vmatpush3.msk.msra.mxu1 %vm375_vm0, %v4276_v45 }
0x10c9   :  { %6371 = vmatprep.subr.bf16.mxu1 %v6685_v20 }
0x10db   :  { %v4459_v15 = vpop.trf.xlu1 }
0x1196   :  { %v5854_v56 = vpop.f32.mrb[48].mxu1 }
0x1197   :  { %v4261_v25 = vadd.f32 %v5854_v56, %v5162_v60  ;;  %v4255_v16 = vpop.f32.mrb[49].mxu1 }
0x1198   :  { %v4256_v30 = vadd.f32 %v5162_v60, %v4255_v16 }
0x1199   :  { %v4265_v23 = vmax.f32 %v4261_v25, 0.0 }
0x119a   :  { %v4264_v21 = vmax.f32 %v4256_v30, 0.0 }
0x119c   :  { %5865 = vmatprep.mubr.msk.f32.mxu0 %vm3944_vm8, %v4264_v21 }
0x119d   :  { %5866 = vmatmul.mubr.msk.f32.vlgmr.msra.gmra.mrb[38].mxu0 %vm3944_vm8, %v4265_v23 }
0x1270   :  { %v5867_v33 = vpop.f32.mrb[38].mxu0 }
0x1271   :  { %v4350_v38 = vpop.f32.mrb[39].mxu0 }
0x1272   :  { %v6372_v53 = vpack.c.bf16 %v5867_v33, %v4350_v38  ;;  %5874 = vmatprep.mubr.msk.f32.mxu1 %vm368_vm1, %v4350_v38 }
0x1273   :  { %5875 = vmatmul.mubr.msk.f32.vlgmr.msra.gmra.mrb[50].mxu1 %vm368_vm1, %v5867_v33 }
0x1274   :  { %6374 = vmatpush3.bf16.xpose.msk.msra.mxu1 %vm6373_vm13, %v6372_v53  ;;  %6376 = vmatprep.subr.bf16.mxu0 %v6372_v53 }
0x1275   :  { %6378 = vmatpush3.bf16.msra.mxu0 %v6372_v53  ;;  %5881 = vmatprep.mubr.msk.f32.mxu1 %vm6686_vm10, %v6676_v3 }
0x1276   :  { %6380 = vmatprep.subr.bf16.mxu0 %v6379_v58  ;;  %5900 = vmatprep.subr.msk.mxu1 %vm4780_vm2, %v4687_v10 }
0x127b   :  { %5882 = vmatmul.mubr.msk.f32.vlgmr.msra.gmra.mrb[52].mxu1 %vm368_vm1, %v4459_v15 }
0x127c   :  { %5901 = vmatpush3.msk.msra.mxu1 %vm4780_vm2, %v4687_v10 }
0x1346   :  { %v5876_v28 = vpop.f32.mrb[50].mxu1 }
0x1347   :  { %v4434_v24 = vpop.f32.mrb[51].mxu1 }
0x1348   :  { %4550 = vperm.xlu0 %6571, %v4434_v24  }
0x134c   :  { %4555 = vperm.xlu0 %6571, %v5876_v28  }
0x134e   :  { %v4544_v35 = vpop.f32.mrb[52].mxu1 }
0x134f   :  { %v5883_v18 = vpop.f32.mrb[53].mxu1  ;;  %v4561_v22 = vrot.slane %v4544_v35, %v7765_v9 }
0x13c7   :  { %v4551_v29 = vpop.permute.xlu0 %4550 }
0x13c8   :  { %v4562_v1 = vadd.f32 %v4561_v22, %v4551_v29 }
0x13ca   :  { %v4566_v61 = vmul.f32 0.2, %v4562_v1  ;;  %vm4564_vm14 = vcmp.gt.f32.partialorder %v4562_v1, 0.0 }
0x13cb   :  { %v4556_v6 = vpop.permute.xlu0 %4555 }
0x13cc   :  { %v4563_v34 = vadd.f32 %v4561_v22, %v4556_v6  ;;  %v4568_v40 = vsel %vm4564_vm14, %v4562_v1, %v4566_v61 }
0x13cd   :  { %v4570_v32 = vsel %vm1566_vm3, %v4568_v40, -1e+30 }
0x13ce   :  { %v4567_v42 = vmul.f32 0.2, %v4563_v34  ;;  %v4572_v17 = vsel %vm1570_vm4, %v4570_v32, -inf  ;;  %vm4565_vm15 = vcmp.gt.f32.partialorder %v4563_v34, 0.0 }
0x13cf   :  { %4573 = vmax.xlane.f32.xlu0 %v4572_v17 }
0x13d0   :  { %v4569_v59 = vsel %vm4565_vm15, %v4563_v34, %v4567_v42 }
0x13d1   :  { %v4571_v51 = vsel %vm1567_vm7, %v4569_v59, -1e+30 }
0x13d2   :  { %v4575_v39 = vsel %vm1570_vm4, %v4571_v51, -inf }
0x13d3   :  { %4576 = vmax.xlane.f32.xlu1 %v4575_v39 }
0x145c   :  { %v4574_v11 = vpop.xlane.xlu0 %4573 }
0x145d   :  { %v4578_v5 = vsub.f32 %v4570_v32, %v4574_v11 }
0x145f   :  { %v4580_v26 = vmul.f32 1.442695, %v4578_v5 }
0x1460   :  { %v4577_v12 = vpop.xlane.xlu1 %4576 }
0x1461   :  { %6660 = vpow2.f32 %v4580_v26  ;;  %v4579_v7 = vsub.f32 %v4571_v51, %v4577_v12  ;;  %v5185_v26 = vld [vmem:[%s8896_s25] ss:$0 sm:$0xff] }
0x1463   :  { %v4582_v41 = vmul.f32 1.442695, %v4579_v7 }
0x1465   :  { %6662 = vpow2.f32 %v4582_v41 }
0x146b   :  { %v6661_v8 = vpop.eup %6660 }
0x146c   :  { %v4584_v55 = vsel %vm1570_vm4, %v6661_v8, 0.0 }
0x146d   :  { %4585 = vadd.xlane.f32.xlu0 %v4584_v55 }
0x146f   :  { %v6663_v44 = vpop.eup %6662 }
0x1470   :  { %v4587_v48 = vsel %vm1570_vm4, %v6663_v44, 0.0 }
0x1471   :  { %4588 = vadd.xlane.f32.xlu0 %v4587_v48 }
0x149e   :  { %4859 = vxpose.xlu0.b32.start.end [1/1] (short) (narrow) %v4686_v2, 8 }
0x14fa   :  { %v4586_v46 = vpop.xlane.xlu0 %4585 }
0x14fb   :  { %6664 = vrcp.f32 %v4586_v46 }
0x14fe   :  { %v4589_v52 = vpop.xlane.xlu0 %4588 }
0x14ff   :  { %6666 = vrcp.f32 %v4589_v52 }
0x1505   :  { %v6665_v37 = vpop.eup %6664 }
0x1506   :  { %v4591_v49 = vmul.f32 %v6665_v37, %v6661_v8 }
0x1508   :  { %5888 = vmatprep.mubr.msk.f32.mxu0 %vm1570_vm4, %v4591_v49 }
0x1509   :  { %v6667_v36 = vpop.eup %6666 }
0x150a   :  { %v4593_v50 = vmul.f32 %v6667_v36, %v6663_v44 }
0x150c   :  { %5889 = vmatmul.mubr.msk.f32.vlgmr.msra.gmra.mrb[40].mxu0 %vm1570_vm4, %v4593_v50 }
0x150d   :  { %6382 = vmatpush3.bf16.msra.mxu0 %v6379_v58 }
0x150e   :  { %5895 = vmatprep.subr.msk.mxu0 %vm375_vm0, %v4685_v62 }
0x1511   :  { %5896 = vmatpush3.msk.msra.mxu0 %vm375_vm0, %v4685_v62  ;;  %vm4773_vm0 = vcmask 23552  }
0x1512   :  { %6383 = vmatprep.subr.bf16.mxu0 %v6685_v20  ;;  %vm6385_vm5 = vmpackc.low %vm4773_vm0, %vm4773_vm0 }
0x151e   :  { %v4875_v25 = vpop.trf.xlu0 }
0x15df   :  { %v5890_v14 = vpop.f32.mrb[40].mxu0 }
0x15e0   :  { %v4678_v19 = vadd.f32 %v5890_v14, %v5173_v57  ;;  %v4672_v43 = vpop.f32.mrb[41].mxu0 }
0x15e1   :  { %v4673_v63 = vadd.f32 %v5173_v57, %v4672_v43 }
0x15e2   :  { %v4682_v4 = vmax.f32 %v4678_v19, 0.0 }
0x15e3   :  { %v4681_v20 = vmax.f32 %v4673_v63, 0.0 }
0x15e5   :  { %5897 = vmatprep.mubr.msk.f32.mxu0 %vm368_vm1, %v4681_v20 }
0x15e6   :  { %5898 = vmatmul.mubr.msk.f32.vlgmr.msra.gmra.mrb[42].mxu0 %vm368_vm1, %v4682_v4 }
0x15e7   :  { %5909 = vmatprep.mubr.msk.f32.mxu0 %vm6686_vm10, %v6676_v3 }
0x16b9   :  { %v5899_v45 = vpop.f32.mrb[42].mxu0 }
0x16ba   :  { %v4764_v60 = vpop.f32.mrb[43].mxu0 }
0x16bb   :  { %v6384_v56 = vpack.c.bf16 %v5899_v45, %v4764_v60  ;;  %5902 = vmatprep.mubr.msk.f32.mxu1 %vm4773_vm0, %v4764_v60 }
0x16bc   :  { %5903 = vmatmul.mubr.msk.f32.vlgmr.msra.gmra.mrb[54].mxu1 %vm4773_vm0, %v5899_v45 }
0x16bd   :  { %6386 = vmatpush3.bf16.xpose.msk.msra.mxu0 %vm6385_vm5, %v6384_v56  ;;  %6388 = vmatprep.subr.bf16.mxu1 %v6384_v56 }
0x16be   :  { %6390 = vmatpush3.bf16.msra.mxu1 %v6384_v56 }
0x16c4   :  { %5910 = vmatmul.mubr.msk.f32.vlgmr.msra.gmra.mrb[44].mxu0 %vm4773_vm0, %v4875_v25 }
0x178f   :  { %v5904_v16 = vpop.f32.mrb[54].mxu1 }
0x1790   :  { %v4850_v30 = vpop.f32.mrb[55].mxu1 }
0x1791   :  { %4966 = vperm.xlu1 %6570, %v4850_v30  }
0x1795   :  { %4971 = vperm.xlu1 %6570, %v5904_v16  }
0x1797   :  { %v4960_v3 = vpop.f32.mrb[44].mxu0 }
0x1798   :  { %v5911_v21 = vpop.f32.mrb[45].mxu0  ;;  %v4977_v23 = vrot.slane %v4960_v3, %v7765_v9 }
0x1810   :  { %v4967_v27 = vpop.permute.xlu1 %4966 }
0x1811   :  { %v4978_v0 = vadd.f32 %v4977_v23, %v4967_v27 }
0x1813   :  { %v4982_v33 = vmul.f32 0.2, %v4978_v0  ;;  %vm4980_vm1 = vcmp.gt.f32.partialorder %v4978_v0, 0.0 }
0x1814   :  { %v4972_v38 = vpop.permute.xlu1 %4971 }
0x1815   :  { %v4979_v53 = vadd.f32 %v4977_v23, %v4972_v38  ;;  %v4984_v15 = vsel %vm4980_vm1, %v4978_v0, %v4982_v33 }
0x1816   :  { %v4986_v28 = vsel %vm1566_vm3, %v4984_v15, -1e+30 }
0x1817   :  { %v4983_v24 = vmul.f32 0.2, %v4979_v53  ;;  %v4988_v35 = vsel %vm1570_vm4, %v4986_v28, -inf  ;;  %vm4981_vm10 = vcmp.gt.f32.partialorder %v4979_v53, 0.0 }
0x1818   :  { %4989 = vmax.xlane.f32.xlu1 %v4988_v35 }
0x1819   :  { %v4985_v18 = vsel %vm4981_vm10, %v4979_v53, %v4983_v24 }
0x181a   :  { %v4987_v22 = vsel %vm1567_vm7, %v4985_v18, -1e+30 }
0x181b   :  { %v4991_v9 = vsel %vm1570_vm4, %v4987_v22, -inf }
0x181c   :  { %4992 = vmax.xlane.f32.xlu0 %v4991_v9 }
0x18a5   :  { %v4990_v29 = vpop.xlane.xlu1 %4989 }
0x18a6   :  { %v4994_v1 = vsub.f32 %v4986_v28, %v4990_v29 }
0x18a8   :  { %v4996_v61 = vmul.f32 1.442695, %v4994_v1 }
0x18a9   :  { %v4993_v6 = vpop.xlane.xlu0 %4992 }
0x18aa   :  { %6668 = vpow2.f32 %v4996_v61  ;;  %v4995_v34 = vsub.f32 %v4987_v22, %v4993_v6 }
0x18ac   :  { %v4998_v13 = vmul.f32 1.442695, %v4995_v34 }
0x18ae   :  { %6670 = vpow2.f32 %v4998_v13 }
0x18b4   :  { %v6669_v40 = vpop.eup %6668 }
0x18b5   :  { %v5000_v32 = vsel %vm1570_vm4, %v6669_v40, 0.0 }
0x18b6   :  { %5001 = vadd.xlane.f32.xlu1 %v5000_v32 }
0x18b8   :  { %v6671_v42 = vpop.eup %6670 }
0x18b9   :  { %v5003_v17 = vsel %vm1570_vm4, %v6671_v42, 0.0 }
0x18ba   :  { %5004 = vadd.xlane.f32.xlu1 %v5003_v17 }
0x1943   :  { %v5002_v31 = vpop.xlane.xlu1 %5001 }
0x1944   :  { %6672 = vrcp.f32 %v5002_v31 }
0x1947   :  { %v5005_v59 = vpop.xlane.xlu1 %5004 }
0x1948   :  { %6674 = vrcp.f32 %v5005_v59 }
0x194e   :  { %v6673_v51 = vpop.eup %6672 }
0x194f   :  { %v5007_v39 = vmul.f32 %v6673_v51, %v6669_v40 }
0x1951   :  { %5916 = vmatprep.mubr.msk.f32.mxu1 %vm1570_vm4, %v5007_v39 }
0x1952   :  { %v6675_v11 = vpop.eup %6674 }
0x1953   :  { %v5009_v5 = vmul.f32 %v6675_v11, %v6671_v42 }
0x1955   :  { %5917 = vmatmul.mubr.msk.f32.vlgmr.msra.gmra.mrb[56].mxu1 %vm1570_vm4, %v5009_v5 }
0x1a28   :  { %v5918_v12 = vpop.f32.mrb[56].mxu1 }
0x1a29   :  { %v5094_v7 = vadd.f32 %v5918_v12, %v5185_v26  ;;  %v5088_v41 = vpop.f32.mrb[57].mxu1 }
0x1a2a   :  { %v5089_v8 = vadd.f32 %v5185_v26, %v5088_v41 }
0x1a2b   :  { %5098 = vst.msk [vmem:[%s8897_s26 + $0x8] sm:$0xff] %vm4773_vm0, %v5094_v7 }
0x1a2c   :  { %5097 = vst.msk [vmem:[%s8897_s26] sm:$0xff] %vm4773_vm0, %v5089_v8 }

</bundles_post_ra>
